<compile_context>
chip_gen: v7x
topology: tpu7x:2x2x1
jax: 0.10.0
libtpu: 0.0.40
codegen_flags: <defaults>
</compile_context>

<pallas_src>
import numpy as np
import jax
import jax.numpy as jnp
from jax import lax
from jax.experimental import pallas as pl
from jax.experimental.pallas import tpu as pltpu

# ----------------------------- model geometry ------------------------------
H_IN, W_IN = 22, 489          # input rows / cols, 1 input channel
K1 = 25                       # conv1 kernel (1, 25), 1 -> 40 channels
C1 = 40
C2 = 40
W1OUT = W_IN - K1 + 1         # 465
K2H = 22                      # conv2 kernel (22, 1) eats all rows
POOL_K, POOL_S = 75, 15       # AvgPool2d((1, 75), stride=(1, 15))
W_POOL = (W1OUT - POOL_K) // POOL_S + 1   # 27
FEAT = C2 * W_POOL            # 1080
NCLS = 4

# ----------------------------- kernel layout --------------------------------
H_PAD = 32                    # conv rows padded 22 -> 32 (bf16 sublane tiles)
W_SAMP = 512                  # per-sample lane stride (>= 489, 128-aligned)
LANE_PAD = 128                # per-block tail pad (>= K1 - 1)
P_PAD = 128                   # pooled columns padded 27 -> 128 (lane dense)
K_DIM = K1 * H_PAD            # 800, contraction dim of the fused conv matmul


def _pick_block_batch():
    """Per-grid-step batch. v6e: 1 TensorCore + 128 MiB VMEM -> B=16 amortizes
    the ~0.35us/step overhead; v5e (1 vst slot) and v7x (2 TCs, 64 MiB VMEM)
    stay at 8 so the grid keeps >= 2 blocks for megacore sharding."""
    try:
        kind = jax.devices()[0].device_kind.lower()
    except Exception:
        return 8
    return 16 if "v6" in kind else 8


B_MAX = _pick_block_batch()


def _make_kernel(batch_per_step):
    """Kernel processing `batch_per_step` samples per grid step."""
    B = batch_per_step
    BN = B * W_SAMP
    B8 = ((B + 7) // 8) * 8   # sublane-padded row count for the selector matmul

    def kernel(x_ref, w_ref, be_ref, pmat_ref, wlw_ref, sel_ref, q_ref,
               brow_ref, out_ref):
        x = x_ref[...]                                   # (32, BN+128) bf16
        # im2col: K1 lane-shifted copies stacked on (tile-aligned) sublanes.
        # TODO(synk): on v7x, chunked MRB accumulation could avoid materializing
        # this (800, BN) buffer entirely; kept single-matmul for portability.
        xcol = jnp.concatenate([x[:, k:k + BN] for k in range(K1)],
                               axis=0)                   # (800, BN) bf16
        # Fused conv1+conv2: one MXU matmul, bf16 operands, f32 accumulation.
        y2 = jnp.dot(w_ref[...], xcol,
                     preferred_element_type=jnp.float32)  # (40, BN) f32
        y2 = y2 + be_ref[...]                            # (40,1) bias broadcast
        # square nonlinearity; bf16 so the pooling matmul is single-pass on MXU
        y2sq = (y2 * y2).astype(jnp.bfloat16)            # (40, BN) bf16

        pmat = pmat_ref[...]                             # (512, 128) bf16 0/1
        wlw = wlw_ref[...]                               # (40, 512) f32

        # Per-sample: pool (MXU, bf16) -> log (EUP) -> weight product (VPU).
        # Columns >= 465 of each sample bleed into the next sample's lanes;
        # pmat rows 465..511 are zero, so they never reach the pooled sums.
        prods = []
        for b in range(B):                               # B is small & static
            blk = y2sq[:, b * W_SAMP:(b + 1) * W_SAMP]   # (40, 512) aligned
            pooled = jnp.dot(blk, pmat,
                             preferred_element_type=jnp.float32)  # (40, 128)
            # window *sums*; 1/75 is folded into the linear bias. Clamp keeps
            # padded/degenerate samples finite so no NaN/inf can leak across
            # samples through the batched selector matmul below.
            feat = jnp.log(jnp.maximum(pooled, 1e-30))   # (40, 128)
            feat4 = jnp.concatenate([feat] * NCLS, axis=1)       # (40, 512)
            prods.append(feat4 * wlw)                            # (40, 512)
        prod_stack = jnp.concatenate(prods, axis=0)      # (B*40, 512) f32

        # Linear(1080, 4) on the MXU: channel (sublane) sum via a per-sample
        # block selector, then pooled-column (lane) sum via a class-column
        # selector -> logits land lane-dense with classes on lanes 0..3.
        r = jnp.dot(sel_ref[...], prod_stack,
                    preferred_element_type=jnp.float32)  # (B8, 512)
        logits = jnp.dot(r, q_ref[...],
                         preferred_element_type=jnp.float32)      # (B8, 128)
        logits = logits[:B] + brow_ref[...]              # (B, 128); pads -1e30

        # Batched softmax over lanes; single dense (B, 128) store.
        m = jnp.max(logits, axis=1, keepdims=True)
        e = jnp.exp(logits - m)
        s = jnp.sum(e, axis=1, keepdims=True)
        out_ref[...] = e * pl.reciprocal(s, approx=True)

    return kernel


@jax.jit
def simplenet_v2_forward(x, params):
    n = x.shape[0]
    B = n if n < B_MAX else B_MAX
    B8 = ((B + 7) // 8) * 8
    n_pad = ((n + B - 1) // B) * B
    n_blk = n_pad // B
    BN = B * W_SAMP
    blk_w = BN + LANE_PAD

    # ---- pack input: (N,1,22,489) -> (n_blk, 32, B*512 + 128) bf16 ----------
    xs = x[:, 0, :, :].astype(jnp.float32)                       # (N, 22, 489)
    xs = jnp.pad(xs, ((0, n_pad - n),
                      (0, H_PAD - H_IN),
                      (0, W_SAMP - W_IN)))                       # (n_pad,32,512)
    xp = xs.reshape(n_blk, B, H_PAD, W_SAMP).transpose(0, 2, 1, 3)
    xp = xp.reshape(n_blk, H_PAD, BN)
    xp = jnp.pad(xp, ((0, 0), (0, 0), (0, LANE_PAD))).astype(jnp.bfloat16)

    # ---- fold conv1 into conv2 (exact) --------------------------------------
    hp = lax.Precision.HIGHEST
    w1 = params["conv1_w"][:, 0, 0, :]                           # (40, 25) [d,k]
    w2 = params["conv2_w"][:, :, :, 0]                           # (40,40,22) [o,d,h]
    weff = jnp.einsum("odh,dk->okh", w2, w1, precision=hp)       # (40, 25, 22)
    weff = jnp.pad(weff, ((0, 0), (0, 0), (0, H_PAD - H_IN)))    # (40, 25, 32)
    w_flat = weff.reshape(C2, K_DIM).astype(jnp.bfloat16)        # (40, 800)
    b_eff = (params["conv2_b"]
             + jnp.einsum("odh,d->o", w2, params["conv1_b"], precision=hp))
    b_eff = b_eff[:, None].astype(jnp.float32)                   # (40, 1)

    # ---- pooling mask (0/1, bf16-exact): rows padded to 512, cols to 128 ----
    w_idx = jnp.arange(W1OUT)[:, None]
    j_idx = jnp.arange(W_POOL)[None, :]
    pmat = ((w_idx >= POOL_S * j_idx) &
            (w_idx < POOL_S * j_idx + POOL_K)).astype(jnp.float32)   # (465, 27)
    # padded columns replicate the last real window -> pooled stays > 0
    pmat = jnp.concatenate(
        [pmat, jnp.tile(pmat[:, -1:], (1, P_PAD - W_POOL))], axis=1)  # (465,128)
    pmat = jnp.pad(pmat, ((0, W_SAMP - W1OUT), (0, 0)))          # rows 465..511 = 0
    pmat = pmat.astype(jnp.bfloat16)                             # (512, 128)

    # ---- class-blocked linear weights: (ch, class*128 + pooled-col) ---------
    wl = params["lin_w"].reshape(NCLS, C2, W_POOL)               # (4, 40, 27)
    wl = jnp.pad(wl, ((0, 0), (0, 0), (0, P_PAD - W_POOL)))      # (4, 40, 128)
    wlw = wl.transpose(1, 0, 2).reshape(C2, NCLS * P_PAD)        # (40, 512) f32
    wlw = wlw.astype(jnp.float32)

    # ---- MXU selector matrices for the linear reduction ---------------------
    sel_rows = jnp.arange(B8)[:, None]                           # (B8, 1)
    sel_cols = jnp.arange(B * C2)[None, :] // C2                 # (1, B*40)
    selB = (sel_rows == sel_cols).astype(jnp.float32)            # (B8, B*40)
    q_rows = jnp.arange(NCLS * P_PAD)[:, None] // P_PAD          # (512, 1)
    q_cols = jnp.arange(P_PAD)[None, :]                          # (1, 128)
    qmat = (q_rows == q_cols).astype(jnp.float32)                # (512, 128)

    # ---- bias row: fold -log(75) (pooling mean) in; pad lanes at -1e30 ------
    bias_adj = (params["lin_b"]
                - float(np.log(POOL_K)) * params["lin_w"].sum(axis=1))   # (4,)
    brow = jnp.full((P_PAD,), -1e30, jnp.float32).at[:NCLS].set(
        bias_adj.astype(jnp.float32))[None, :]                   # (1, 128)

    out = pl.pallas_call(
        _make_kernel(B),
        out_shape=jax.ShapeDtypeStruct((n_pad, P_PAD), jnp.float32),
        grid_spec=pltpu.PrefetchScalarGridSpec(
            num_scalar_prefetch=0,
            grid=(n_blk,),
            in_specs=[
                pl.BlockSpec((None, H_PAD, blk_w), lambda i: (i, 0, 0)),   # x
                pl.BlockSpec((C2, K_DIM), lambda i: (0, 0)),               # W_eff
                pl.BlockSpec((C2, 1), lambda i: (0, 0)),                   # b_eff
                pl.BlockSpec((W_SAMP, P_PAD), lambda i: (0, 0)),           # pool mask
                pl.BlockSpec((C2, NCLS * P_PAD), lambda i: (0, 0)),        # linear W
                pl.BlockSpec((B8, B * C2), lambda i: (0, 0)),              # chan selector
                pl.BlockSpec((NCLS * P_PAD, P_PAD), lambda i: (0, 0)),     # class selector
                pl.BlockSpec((1, P_PAD), lambda i: (0, 0)),                # bias row
            ],
            out_specs=pl.BlockSpec((B, P_PAD), lambda i: (i, 0)),
        ),
        compiler_params=pltpu.CompilerParams(
            dimension_semantics=("parallel",),
            vmem_limit_bytes=(64 if B > 8 else 32) * 1024 * 1024),
    )(xp, w_flat, b_eff, pmat, wlw, selB, qmat, brow)
    return out[:n, :NCLS]                                        # (N, 4)


def reference_forward(x, params):
    """Pure-JAX reference reproducing the PyTorch forward (f32 precision)."""
    hp = lax.Precision.HIGHEST
    n = x.shape[0]
    xs = x[:, 0, :, :]
    w1 = params["conv1_w"][:, 0, 0, :]                            # (40, 25)
    patches = jnp.stack([xs[:, :, k:k + W1OUT] for k in range(K1)], axis=-1)
    y1 = jnp.einsum("nhwk,ck->nchw", patches, w1, precision=hp) \
        + params["conv1_b"][None, :, None, None]                  # (N,40,22,465)
    w2 = params["conv2_w"][:, :, :, 0]                            # (40,40,22)
    y2 = jnp.einsum("ndhw,cdh->ncw", y1, w2, precision=hp) \
        + params["conv2_b"][None, :, None]                        # (N,40,465)
    y2 = y2 * y2
    pooled = jnp.stack(
        [y2[:, :, POOL_S * j:POOL_S * j + POOL_K].mean(axis=-1)
         for j in range(W_POOL)], axis=-1)                        # (N,40,27)
    feat = jnp.log(pooled).reshape(n, FEAT)
    logits = jnp.matmul(feat, params["lin_w"].T, precision=hp) + params["lin_b"]
    return jax.nn.softmax(logits, axis=1)


def init_params(key):
    ks = jax.random.split(key, 6)
    return {
        "conv1_w": 0.2 * jax.random.normal(ks[0], (C1, 1, 1, K1), jnp.float32),
        "conv1_b": 0.1 * jax.random.normal(ks[1], (C1,), jnp.float32),
        "conv2_w": (1.0 / np.sqrt(C1 * K2H)) *
                   jax.random.normal(ks[2], (C2, C1, K2H, 1), jnp.float32),
        "conv2_b": 0.1 * jax.random.normal(ks[3], (C2,), jnp.float32),
        "lin_w": (1.0 / np.sqrt(FEAT)) *
                 jax.random.normal(ks[4], (NCLS, FEAT), jnp.float32),
        "lin_b": 0.1 * jax.random.normal(ks[5], (NCLS,), jnp.float32),
    }


if __name__ == "__main__":
    key = jax.random.PRNGKey(0)
    pkey, xkey = jax.random.split(key)
    params = init_params(pkey)
    # batch=2; spatial size (22, 489) is pinned by Linear(1080, 4) in the module
    x = jax.random.normal(xkey, (2, 1, H_IN, W_IN), jnp.float32)

    out = simplenet_v2_forward(x, params)
    out = jax.block_until_ready(out)

    ref = reference_forward(x, params)
    # bf16 MXU operands for the conv + pooling matmuls (per perf review) ->
    # looser tolerance than pure f32; accumulation stays f32 everywhere.
    np.testing.assert_allclose(np.asarray(out), np.asarray(ref),
                               rtol=5e-2, atol=1e-2)
    # approx EUP reciprocal in the softmax -> rows sum to 1 within ~1e-3
    assert np.allclose(np.asarray(out).sum(axis=1), 1.0, atol=5e-3)
    print("KERNEL_OK")
</pallas_src>

<mosaic_0001>
module attributes {stable_mosaic.version = 11 : i64} {
  func.func @kernel(%arg0: i32, %arg1: memref<1x32x1152xbf16, #tpu.memory_space<vmem>>, %arg2: memref<40x800xbf16, #tpu.memory_space<vmem>>, %arg3: memref<40x1xf32, #tpu.memory_space<vmem>>, %arg4: memref<512x128xbf16, #tpu.memory_space<vmem>>, %arg5: memref<40x512xf32, #tpu.memory_space<vmem>>, %arg6: memref<8x80xf32, #tpu.memory_space<vmem>>, %arg7: memref<512x128xf32, #tpu.memory_space<vmem>>, %arg8: memref<1x128xf32, #tpu.memory_space<vmem>>, %arg9: memref<2x128xf32, #tpu.memory_space<vmem>>) attributes {dimension_semantics = [#tpu.dimension_semantics<parallel>], iteration_bounds = array<i64: 1>, scalar_prefetch = 0 : i64, scratch_operands = 0 : i64, tpu.core_type = #tpu.core_type<tc>, window_params = [{transform_indices = @transform_0, window_bounds = array<i64: 1, 32, 1152>}, {pipeline_mode = #tpu.pipeline_mode<synchronous>, transform_indices = @transform_1, window_bounds = array<i64: 40, 800>}, {pipeline_mode = #tpu.pipeline_mode<synchronous>, transform_indices = @transform_2, window_bounds = array<i64: 40, 1>}, {pipeline_mode = #tpu.pipeline_mode<synchronous>, transform_indices = @transform_3, window_bounds = array<i64: 512, 128>}, {pipeline_mode = #tpu.pipeline_mode<synchronous>, transform_indices = @transform_4, window_bounds = array<i64: 40, 512>}, {pipeline_mode = #tpu.pipeline_mode<synchronous>, transform_indices = @transform_5, window_bounds = array<i64: 8, 80>}, {pipeline_mode = #tpu.pipeline_mode<synchronous>, transform_indices = @transform_6, window_bounds = array<i64: 512, 128>}, {pipeline_mode = #tpu.pipeline_mode<synchronous>, transform_indices = @transform_7, window_bounds = array<i64: 1, 128>}, {transform_indices = @transform_8, window_bounds = array<i64: 2, 128>}]} {
    %c0 = arith.constant 0 : index
    %c0_0 = arith.constant 0 : index
    %c0_1 = arith.constant 0 : index
    %0 = vector.load %arg1[%c0, %c0_0, %c0_1] : memref<1x32x1152xbf16, #tpu.memory_space<vmem>>, vector<1x32x1152xbf16>
    %1 = vector.shape_cast %0 : vector<1x32x1152xbf16> to vector<32x1152xbf16>
    %2 = vector.extract_strided_slice %1 {offsets = [0, 0], sizes = [32, 1024], strides = [1, 1]} : vector<32x1152xbf16> to vector<32x1024xbf16>
    %3 = vector.extract_strided_slice %1 {offsets = [0, 1], sizes = [32, 1024], strides = [1, 1]} : vector<32x1152xbf16> to vector<32x1024xbf16>
    %4 = vector.extract_strided_slice %1 {offsets = [0, 2], sizes = [32, 1024], strides = [1, 1]} : vector<32x1152xbf16> to vector<32x1024xbf16>
    %5 = vector.extract_strided_slice %1 {offsets = [0, 3], sizes = [32, 1024], strides = [1, 1]} : vector<32x1152xbf16> to vector<32x1024xbf16>
    %6 = vector.extract_strided_slice %1 {offsets = [0, 4], sizes = [32, 1024], strides = [1, 1]} : vector<32x1152xbf16> to vector<32x1024xbf16>
    %7 = vector.extract_strided_slice %1 {offsets = [0, 5], sizes = [32, 1024], strides = [1, 1]} : vector<32x1152xbf16> to vector<32x1024xbf16>
    %8 = vector.extract_strided_slice %1 {offsets = [0, 6], sizes = [32, 1024], strides = [1, 1]} : vector<32x1152xbf16> to vector<32x1024xbf16>
    %9 = vector.extract_strided_slice %1 {offsets = [0, 7], sizes = [32, 1024], strides = [1, 1]} : vector<32x1152xbf16> to vector<32x1024xbf16>
    %10 = vector.extract_strided_slice %1 {offsets = [0, 8], sizes = [32, 1024], strides = [1, 1]} : vector<32x1152xbf16> to vector<32x1024xbf16>
    %11 = vector.extract_strided_slice %1 {offsets = [0, 9], sizes = [32, 1024], strides = [1, 1]} : vector<32x1152xbf16> to vector<32x1024xbf16>
    %12 = vector.extract_strided_slice %1 {offsets = [0, 10], sizes = [32, 1024], strides = [1, 1]} : vector<32x1152xbf16> to vector<32x1024xbf16>
    %13 = vector.extract_strided_slice %1 {offsets = [0, 11], sizes = [32, 1024], strides = [1, 1]} : vector<32x1152xbf16> to vector<32x1024xbf16>
    %14 = vector.extract_strided_slice %1 {offsets = [0, 12], sizes = [32, 1024], strides = [1, 1]} : vector<32x1152xbf16> to vector<32x1024xbf16>
    %15 = vector.extract_strided_slice %1 {offsets = [0, 13], sizes = [32, 1024], strides = [1, 1]} : vector<32x1152xbf16> to vector<32x1024xbf16>
    %16 = vector.extract_strided_slice %1 {offsets = [0, 14], sizes = [32, 1024], strides = [1, 1]} : vector<32x1152xbf16> to vector<32x1024xbf16>
    %17 = vector.extract_strided_slice %1 {offsets = [0, 15], sizes = [32, 1024], strides = [1, 1]} : vector<32x1152xbf16> to vector<32x1024xbf16>
    %18 = vector.extract_strided_slice %1 {offsets = [0, 16], sizes = [32, 1024], strides = [1, 1]} : vector<32x1152xbf16> to vector<32x1024xbf16>
    %19 = vector.extract_strided_slice %1 {offsets = [0, 17], sizes = [32, 1024], strides = [1, 1]} : vector<32x1152xbf16> to vector<32x1024xbf16>
    %20 = vector.extract_strided_slice %1 {offsets = [0, 18], sizes = [32, 1024], strides = [1, 1]} : vector<32x1152xbf16> to vector<32x1024xbf16>
    %21 = vector.extract_strided_slice %1 {offsets = [0, 19], sizes = [32, 1024], strides = [1, 1]} : vector<32x1152xbf16> to vector<32x1024xbf16>
    %22 = vector.extract_strided_slice %1 {offsets = [0, 20], sizes = [32, 1024], strides = [1, 1]} : vector<32x1152xbf16> to vector<32x1024xbf16>
    %23 = vector.extract_strided_slice %1 {offsets = [0, 21], sizes = [32, 1024], strides = [1, 1]} : vector<32x1152xbf16> to vector<32x1024xbf16>
    %24 = vector.extract_strided_slice %1 {offsets = [0, 22], sizes = [32, 1024], strides = [1, 1]} : vector<32x1152xbf16> to vector<32x1024xbf16>
    %25 = vector.extract_strided_slice %1 {offsets = [0, 23], sizes = [32, 1024], strides = [1, 1]} : vector<32x1152xbf16> to vector<32x1024xbf16>
    %26 = vector.extract_strided_slice %1 {offsets = [0, 24], sizes = [32, 1024], strides = [1, 1]} : vector<32x1152xbf16> to vector<32x1024xbf16>
    %27 = tpu.concatenate %2, %3, %4, %5, %6, %7, %8, %9, %10, %11, %12, %13, %14, %15, %16, %17 in 0 : vector<32x1024xbf16>, vector<32x1024xbf16>, vector<32x1024xbf16>, vector<32x1024xbf16>, vector<32x1024xbf16>, vector<32x1024xbf16>, vector<32x1024xbf16>, vector<32x1024xbf16>, vector<32x1024xbf16>, vector<32x1024xbf16>, vector<32x1024xbf16>, vector<32x1024xbf16>, vector<32x1024xbf16>, vector<32x1024xbf16>, vector<32x1024xbf16>, vector<32x1024xbf16> -> vector<512x1024xbf16>
    %28 = tpu.concatenate %18, %19, %20, %21, %22, %23, %24, %25, %26 in 0 : vector<32x1024xbf16>, vector<32x1024xbf16>, vector<32x1024xbf16>, vector<32x1024xbf16>, vector<32x1024xbf16>, vector<32x1024xbf16>, vector<32x1024xbf16>, vector<32x1024xbf16>, vector<32x1024xbf16> -> vector<288x1024xbf16>
    %29 = tpu.concatenate %27, %28 in 0 : vector<512x1024xbf16>, vector<288x1024xbf16> -> vector<800x1024xbf16>
    %c0_2 = arith.constant 0 : index
    %c0_3 = arith.constant 0 : index
    %30 = vector.load %arg2[%c0_2, %c0_3] : memref<40x800xbf16, #tpu.memory_space<vmem>>, vector<40x800xbf16>
    %cst = arith.constant dense<0.000000e+00> : vector<40x1024xf32>
    %31 = tpu.matmul %30, %29, %cst {dimension_numbers = #tpu.dot_dimension_numbers<[1], [0], [0], [1], [0, 0, 1, 1], [], []>} : vector<40x800xbf16>, vector<800x1024xbf16>, vector<40x1024xf32> -> vector<40x1024xf32>
    %c0_4 = arith.constant 0 : index
    %c0_5 = arith.constant 0 : index
    %32 = vector.load %arg3[%c0_4, %c0_5] : memref<40x1xf32, #tpu.memory_space<vmem>>, vector<40x1xf32>
    %33 = vector.broadcast %32 : vector<40x1xf32> to vector<40x1024xf32>
    %34 = arith.addf %31, %33 : vector<40x1024xf32>
    %35 = arith.mulf %34, %34 : vector<40x1024xf32>
    %36 = arith.truncf %35 : vector<40x1024xf32> to vector<40x1024xbf16>
    %c0_6 = arith.constant 0 : index
    %c0_7 = arith.constant 0 : index
    %37 = vector.load %arg4[%c0_6, %c0_7] : memref<512x128xbf16, #tpu.memory_space<vmem>>, vector<512x128xbf16>
    %c0_8 = arith.constant 0 : index
    %c0_9 = arith.constant 0 : index
    %38 = vector.load %arg5[%c0_8, %c0_9] : memref<40x512xf32, #tpu.memory_space<vmem>>, vector<40x512xf32>
    %39 = vector.extract_strided_slice %36 {offsets = [0, 0], sizes = [40, 512], strides = [1, 1]} : vector<40x1024xbf16> to vector<40x512xbf16>
    %cst_10 = arith.constant dense<0.000000e+00> : vector<40x128xf32>
    %40 = tpu.matmul %39, %37, %cst_10 {dimension_numbers = #tpu.dot_dimension_numbers<[1], [0], [0], [1], [0, 0, 1, 1], [], []>} : vector<40x512xbf16>, vector<512x128xbf16>, vector<40x128xf32> -> vector<40x128xf32>
    %cst_11 = arith.constant 1.000000e-30 : f32
    %41 = vector.broadcast %cst_11 : f32 to vector<40x128xf32>
    %42 = arith.maximumf %40, %41 : vector<40x128xf32>
    %43 = math.log %42 : vector<40x128xf32>
    %44 = tpu.concatenate %43, %43, %43, %43 in 1 : vector<40x128xf32>, vector<40x128xf32>, vector<40x128xf32>, vector<40x128xf32> -> vector<40x512xf32>
    %45 = arith.mulf %44, %38 : vector<40x512xf32>
    %46 = vector.extract_strided_slice %36 {offsets = [0, 512], sizes = [40, 512], strides = [1, 1]} : vector<40x1024xbf16> to vector<40x512xbf16>
    %cst_12 = arith.constant dense<0.000000e+00> : vector<40x128xf32>
    %47 = tpu.matmul %46, %37, %cst_12 {dimension_numbers = #tpu.dot_dimension_numbers<[1], [0], [0], [1], [0, 0, 1, 1], [], []>} : vector<40x512xbf16>, vector<512x128xbf16>, vector<40x128xf32> -> vector<40x128xf32>
    %cst_13 = arith.constant 1.000000e-30 : f32
    %48 = vector.broadcast %cst_13 : f32 to vector<40x128xf32>
    %49 = arith.maximumf %47, %48 : vector<40x128xf32>
    %50 = math.log %49 : vector<40x128xf32>
    %51 = tpu.concatenate %50, %50, %50, %50 in 1 : vector<40x128xf32>, vector<40x128xf32>, vector<40x128xf32>, vector<40x128xf32> -> vector<40x512xf32>
    %52 = arith.mulf %51, %38 : vector<40x512xf32>
    %53 = tpu.concatenate %45, %52 in 0 : vector<40x512xf32>, vector<40x512xf32> -> vector<80x512xf32>
    %c0_14 = arith.constant 0 : index
    %c0_15 = arith.constant 0 : index
    %54 = vector.load %arg6[%c0_14, %c0_15] : memref<8x80xf32, #tpu.memory_space<vmem>>, vector<8x80xf32>
    %cst_16 = arith.constant dense<0.000000e+00> : vector<8x512xf32>
    %55 = tpu.matmul %54, %53, %cst_16 {dimension_numbers = #tpu.dot_dimension_numbers<[1], [0], [0], [1], [0, 0, 1, 1], [], []>} : vector<8x80xf32>, vector<80x512xf32>, vector<8x512xf32> -> vector<8x512xf32>
    %c0_17 = arith.constant 0 : index
    %c0_18 = arith.constant 0 : index
    %56 = vector.load %arg7[%c0_17, %c0_18] : memref<512x128xf32, #tpu.memory_space<vmem>>, vector<512x128xf32>
    %cst_19 = arith.constant dense<0.000000e+00> : vector<8x128xf32>
    %57 = tpu.matmul %55, %56, %cst_19 {dimension_numbers = #tpu.dot_dimension_numbers<[1], [0], [0], [1], [0, 0, 1, 1], [], []>} : vector<8x512xf32>, vector<512x128xf32>, vector<8x128xf32> -> vector<8x128xf32>
    %58 = vector.extract_strided_slice %57 {offsets = [0, 0], sizes = [2, 128], strides = [1, 1]} : vector<8x128xf32> to vector<2x128xf32>
    %c0_20 = arith.constant 0 : index
    %c0_21 = arith.constant 0 : index
    %59 = vector.load %arg8[%c0_20, %c0_21] : memref<1x128xf32, #tpu.memory_space<vmem>>, vector<1x128xf32>
    %60 = vector.broadcast %59 : vector<1x128xf32> to vector<2x128xf32>
    %61 = arith.addf %58, %60 : vector<2x128xf32>
    %cst_22 = arith.constant dense<0xFF800000> : vector<2xf32>
    %62 = vector.multi_reduction <maximumf>, %61, %cst_22 [1] : vector<2x128xf32> to vector<2xf32>
    %63 = vector.shape_cast %62 : vector<2xf32> to vector<2x1xf32>
    %64 = vector.broadcast %63 : vector<2x1xf32> to vector<2x128xf32>
    %65 = arith.subf %61, %64 : vector<2x128xf32>
    %66 = math.exp %65 : vector<2x128xf32>
    %cst_23 = arith.constant dense<0.000000e+00> : vector<2xf32>
    %67 = vector.multi_reduction <add>, %66, %cst_23 [1] : vector<2x128xf32> to vector<2xf32>
    %68 = vector.shape_cast %67 : vector<2xf32> to vector<2x1xf32>
    %69 = tpu.reciprocal %68 {approx = true} : vector<2x1xf32> -> vector<2x1xf32>
    %70 = vector.broadcast %69 : vector<2x1xf32> to vector<2x128xf32>
    %71 = arith.mulf %66, %70 : vector<2x128xf32>
    %c0_24 = arith.constant 0 : index
    %c0_25 = arith.constant 0 : index
    %72 = vector.load %arg9[%c0_24, %c0_25] : memref<2x128xf32, #tpu.memory_space<vmem>>, vector<2x128xf32>
    tpu.vector_store %arg9[%c0_24, %c0_25], %71 {strides = array<i32>} : memref<2x128xf32, #tpu.memory_space<vmem>>, vector<2x128xf32>,
    return
  }
  func.func @transform_0(%arg0: i32) -> (i32, i32, i32) {
    %c0_i32 = arith.constant 0 : i32
    %c0_i32_0 = arith.constant 0 : i32
    %c0_i32_1 = arith.constant 0 : i32
    return %arg0, %c0_i32, %c0_i32_0 : i32, i32, i32
  }
  func.func @transform_1(%arg0: i32) -> (i32, i32) {
    %c0_i32 = arith.constant 0 : i32
    %c0_i32_0 = arith.constant 0 : i32
    %c0_i32_1 = arith.constant 0 : i32
    return %c0_i32, %c0_i32_0 : i32, i32
  }
  func.func @transform_2(%arg0: i32) -> (i32, i32) {
    %c0_i32 = arith.constant 0 : i32
    %c0_i32_0 = arith.constant 0 : i32
    %c0_i32_1 = arith.constant 0 : i32
    return %c0_i32, %c0_i32_0 : i32, i32
  }
  func.func @transform_3(%arg0: i32) -> (i32, i32) {
    %c0_i32 = arith.constant 0 : i32
    %c0_i32_0 = arith.constant 0 : i32
    %c0_i32_1 = arith.constant 0 : i32
    return %c0_i32, %c0_i32_0 : i32, i32
  }
  func.func @transform_4(%arg0: i32) -> (i32, i32) {
    %c0_i32 = arith.constant 0 : i32
    %c0_i32_0 = arith.constant 0 : i32
    %c0_i32_1 = arith.constant 0 : i32
    return %c0_i32, %c0_i32_0 : i32, i32
  }
  func.func @transform_5(%arg0: i32) -> (i32, i32) {
    %c0_i32 = arith.constant 0 : i32
    %c0_i32_0 = arith.constant 0 : i32
    %c0_i32_1 = arith.constant 0 : i32
    return %c0_i32, %c0_i32_0 : i32, i32
  }
  func.func @transform_6(%arg0: i32) -> (i32, i32) {
    %c0_i32 = arith.constant 0 : i32
    %c0_i32_0 = arith.constant 0 : i32
    %c0_i32_1 = arith.constant 0 : i32
    return %c0_i32, %c0_i32_0 : i32, i32
  }
  func.func @transform_7(%arg0: i32) -> (i32, i32) {
    %c0_i32 = arith.constant 0 : i32
    %c0_i32_0 = arith.constant 0 : i32
    %c0_i32_1 = arith.constant 0 : i32
    return %c0_i32, %c0_i32_0 : i32, i32
  }
  func.func @transform_8(%arg0: i32) -> (i32, i32) {
    %c0_i32 = arith.constant 0 : i32
    %c0_i32_0 = arith.constant 0 : i32
    return %arg0, %c0_i32 : i32, i32
  }
}

</mosaic_0001>

<bundles_post_ra>
// kernel: simplenet_v2_forward.1
= control target key start
LH: loop header
LB: loop body
LE: loop exit
PB: predicated region body
PF: predicated region fallthrough
CT: control target
= control target key end

     0   :  { %s4702_s9 = smov 127   ;;  %s4703_s26 = smov 126   ;;  %s7695_s0 = inlined_call_operand.vmem [shape: bf16[1,32,1152], index: 0, kind: input, shape index: {}]   ;;  %s7696_s1 = inlined_call_operand.vmem [shape: bf16[40,800], index: 1, kind: input, shape index: {}]   ;;  %s7697_s2 = inlined_call_operand.vmem [shape: f32[40,1], index: 2, kind: input, shape index: {}]   ;;  %s7698_s3 = inlined_call_operand.vmem [shape: bf16[512,128], index: 3, kind: input, shape index: {}]   ;;  %s7699_s4 = inlined_call_operand.vmem [shape: f32[40,512], index: 4, kind: input, shape index: {}]   ;;  %s7700_s5 = inlined_call_operand.vmem [shape: f32[8,80], index: 5, kind: input, shape index: {}]   ;;  %s7701_s6 = inlined_call_operand.vmem [shape: f32[512,128], index: 6, kind: input, shape index: {}]   ;;  %s7702_s7 = inlined_call_operand.vmem [shape: f32[1,128], index: 7, kind: input, shape index: {}]   ;;  %s7703_s8 = inlined_call_operand.hbm [shape: f32[2,128], index: 8, kind: output, shape index: {}]  }
   0x1   :  { %v4769_v0 = vld [vmem:[%s7695_s0 + $0xc] ss:$36 sps:$4 sm:$0xff]   ;;  %v4774_v1 = vld [vmem:[%s7695_s0 + $0x4] ss:$36 sps:$4 sm:$0xff]   ;;  %v4805_v6 = vld [vmem:[%s7695_s0 + $0x54] ss:$36 sps:$4 sm:$0xff]  }
   0x2   :  { %147 = vrot.lane.b32.xlu1 %v4769_v0, %s4702_s9  ;;  %v4781_v2 = vld [vmem:[%s7695_s0 + $0x10] ss:$36 sps:$4 sm:$0xff]   ;;  %2187 = vmatprep.subr.bf16.mxu1 %v4769_v0  ;;  %v4789_v3 = vld [vmem:[%s7695_s0 + $0x8] ss:$36 sps:$4 sm:$0xff]   ;;  %v4795_v4 = vld [vmem:[%s7695_s0] ss:$36 sps:$4 sm:$0xff]  }
   0x3   :  { %143 = vrot.lane.b32.xlu0 %v4774_v1, %s4702_s9  ;;  %1943 = vmatprep.subr.bf16.mxu0 %v4774_v1  ;;  %v4800_v5 = vld [vmem:[%s7695_s0 + $0x4c] ss:$36 sps:$4 sm:$0xff]   ;;  %v4834_v9 = vld [vmem:[%s7695_s0 + $0x58] ss:$36 sps:$4 sm:$0xff]  }
   0x4   :  { %2188 = vmatpush1.bf16.msra.mxu1 %v4789_v3  ;;  %v4813_v7 = vld [vmem:[%s7695_s0 + $0x50] ss:$36 sps:$4 sm:$0xff]   ;;  %1944 = vmatpush1.bf16.msra.mxu0 %v4795_v4  ;;  %v4821_v8 = vld [vmem:[%s7695_s0 + $0x48] ss:$36 sps:$4 sm:$0xff]  }
   0x5   :  { %2189 = vmatprep.subr.bf16.mxu1 %v4805_v6  ;;  %1945 = vmatprep.subr.bf16.mxu0 %v4800_v5 }
   0x6   :  { %149 = vrot.lane.b32.xlu1 %v4781_v2, %s4702_s9 }
   0x7   :  { %145 = vrot.lane.b32.xlu0 %v4789_v3, %s4702_s9 }
   0x8   :  { %2190 = vmatpush1.bf16.msra.mxu1 %v4813_v7  ;;  %1946 = vmatpush1.bf16.msra.mxu0 %v4821_v8 }
   0xa   :  { %161 = vrot.lane.b32.xlu1 %v4800_v5, %s4702_s9 }
   0xb   :  { %141 = vrot.lane.b32.xlu0 %v4795_v4, %s4702_s9 }
   0xe   :  { %165 = vrot.lane.b32.xlu1 %v4805_v6, %s4702_s9 }
   0xf   :  { %163 = vrot.lane.b32.xlu0 %v4813_v7, %s4702_s9 }
  0x12   :  { %159 = vrot.lane.b32.xlu1 %v4821_v8, %s4702_s9 }
  0x13   :  { %167 = vrot.lane.b32.xlu0 %v4834_v9, %s4702_s9 }
  0x16   :  { %214 = vrot.lane.b32.xlu1 %v4789_v3, %s4703_s26 }
  0x17   :  { %212 = vrot.lane.b32.xlu0 %v4774_v1, %s4703_s26 }
  0x1a   :  { %218 = vrot.lane.b32.xlu1 %v4781_v2, %s4703_s26 }
  0x1b   :  { %216 = vrot.lane.b32.xlu0 %v4769_v0, %s4703_s26 }
  0x1e   :  { %230 = vrot.lane.b32.xlu1 %v4800_v5, %s4703_s26 }
  0x1f   :  { %210 = vrot.lane.b32.xlu0 %v4795_v4, %s4703_s26 }
  0x22   :  { %234 = vrot.lane.b32.xlu1 %v4805_v6, %s4703_s26 }
  0x23   :  { %232 = vrot.lane.b32.xlu0 %v4813_v7, %s4703_s26 }
  0x24   :  { %13 = vsyncpa [#allocation3], 0  ;;  %s4704_s27 = smov 125   ;;  %s4705_s28 = smov 124   ;;  %vm177_vm0 = vcmask 1039360   ;;  %vm246_vm1 = vcmask 1031168  }
  0x25   :  { %s4706_s29 = smov 123   ;;  %s4707_s30 = smov 122   ;;  %v4558_v26 = vld [vmem:[%s7696_s1 + $0x4] ss:$28 sps:$4 sm:$0xff]   ;;  %vm315_vm2 = vcmask 1022976   ;;  %vm384_vm3 = vcmask 1014784  }
  0x26   :  { %228 = vrot.lane.b32.xlu1 %v4821_v8, %s4703_s26  ;;  %s4708_s10 = smov 121   ;;  %2219 = vmatprep.mubr.bf16.mxu1 %v4558_v26  ;;  %s4709_s13 = smov 120   ;;  %vm453_vm4 = vcmask 1006592   ;;  %vm522_vm5 = vcmask 998400   ;;  %vm591_vm6 = vcmask 990208   ;;  %vm660_vm7 = vcmask 982016  }
  0x27   :  { %236 = vrot.lane.b32.xlu0 %v4834_v9, %s4703_s26  ;;  %1975 = vmatprep.mubr.bf16.mxu0 %v4558_v26  ;;  %s4710_s14 = smov 119   ;;  %s4711_s17 = smov 118   ;;  %vm729_vm8 = vcmask 973824   ;;  %vm798_vm9 = vcmask 965632   ;;  %vm867_vm10 = vcmask 957440   ;;  %vm936_vm11 = vcmask 949248  }
  0x28   :  { %s4712_s20 = smov 117   ;;  %s4713_s21 = smov 116   ;;  %vm1005_vm12 = vcmask 941056   ;;  %vm1074_vm13 = vcmask 932864   ;;  %vm7774_vm14 = vcmask 924672   ;;  %vm1500_vm15 = vcmask 916480  }
  0x29   :  { %s4714_s22 = smov 115   ;;  %s7740_s25 = smov 114  }
  0x2a   :  { %283 = vrot.lane.b32.xlu1 %v4789_v3, %s4704_s27  ;;  %s4716_s15 = smov 113  }
  0x2b   :  { %281 = vrot.lane.b32.xlu0 %v4774_v1, %s4704_s27 }
  0x2e   :  { %287 = vrot.lane.b32.xlu1 %v4781_v2, %s4704_s27 }
  0x2f   :  { %285 = vrot.lane.b32.xlu0 %v4769_v0, %s4704_s27 }
  0x32   :  { %299 = vrot.lane.b32.xlu1 %v4800_v5, %s4704_s27 }
  0x33   :  { %279 = vrot.lane.b32.xlu0 %v4795_v4, %s4704_s27 }
  0x36   :  { %303 = vrot.lane.b32.xlu1 %v4805_v6, %s4704_s27 }
  0x37   :  { %301 = vrot.lane.b32.xlu0 %v4813_v7, %s4704_s27 }
  0x3a   :  { %297 = vrot.lane.b32.xlu1 %v4821_v8, %s4704_s27 }
  0x3b   :  { %305 = vrot.lane.b32.xlu0 %v4834_v9, %s4704_s27 }
  0x3e   :  { %352 = vrot.lane.b32.xlu1 %v4789_v3, %s4705_s28 }
  0x3f   :  { %350 = vrot.lane.b32.xlu0 %v4774_v1, %s4705_s28 }
  0x42   :  { %356 = vrot.lane.b32.xlu1 %v4781_v2, %s4705_s28 }
  0x43   :  { %354 = vrot.lane.b32.xlu0 %v4769_v0, %s4705_s28 }
  0x46   :  { %368 = vrot.lane.b32.xlu1 %v4800_v5, %s4705_s28 }
  0x47   :  { %348 = vrot.lane.b32.xlu0 %v4795_v4, %s4705_s28 }
  0x4a   :  { %372 = vrot.lane.b32.xlu1 %v4805_v6, %s4705_s28 }
  0x4b   :  { %370 = vrot.lane.b32.xlu0 %v4813_v7, %s4705_s28 }
  0x4e   :  { %366 = vrot.lane.b32.xlu1 %v4821_v8, %s4705_s28 }
  0x4f   :  { %374 = vrot.lane.b32.xlu0 %v4834_v9, %s4705_s28 }
  0x52   :  { %421 = vrot.lane.b32.xlu1 %v4789_v3, %s4706_s29 }
  0x53   :  { %419 = vrot.lane.b32.xlu0 %v4774_v1, %s4706_s29 }
  0x56   :  { %425 = vrot.lane.b32.xlu1 %v4781_v2, %s4706_s29 }
  0x57   :  { %423 = vrot.lane.b32.xlu0 %v4769_v0, %s4706_s29 }
  0x5a   :  { %437 = vrot.lane.b32.xlu1 %v4800_v5, %s4706_s29 }
  0x5b   :  { %417 = vrot.lane.b32.xlu0 %v4795_v4, %s4706_s29 }
  0x5e   :  { %441 = vrot.lane.b32.xlu1 %v4805_v6, %s4706_s29 }
  0x5f   :  { %439 = vrot.lane.b32.xlu0 %v4813_v7, %s4706_s29 }
  0x62   :  { %435 = vrot.lane.b32.xlu1 %v4821_v8, %s4706_s29 }
  0x63   :  { %443 = vrot.lane.b32.xlu0 %v4834_v9, %s4706_s29 }
  0x66   :  { %490 = vrot.lane.b32.xlu1 %v4789_v3, %s4707_s30 }
  0x67   :  { %488 = vrot.lane.b32.xlu0 %v4774_v1, %s4707_s30 }
  0x6a   :  { %494 = vrot.lane.b32.xlu1 %v4781_v2, %s4707_s30 }
  0x6b   :  { %492 = vrot.lane.b32.xlu0 %v4769_v0, %s4707_s30 }
  0x6e   :  { %506 = vrot.lane.b32.xlu1 %v4800_v5, %s4707_s30 }
  0x6f   :  { %486 = vrot.lane.b32.xlu0 %v4795_v4, %s4707_s30 }
  0x72   :  { %510 = vrot.lane.b32.xlu1 %v4805_v6, %s4707_s30 }
  0x73   :  { %508 = vrot.lane.b32.xlu0 %v4813_v7, %s4707_s30 }
  0x74   :  { %v148_v10 = vpop.permute.xlu1 %147 }
  0x75   :  { %v144_v11 = vpop.permute.xlu0 %143 }
  0x76   :  { %504 = vrot.lane.b32.xlu1 %v4821_v8, %s4707_s30 }
  0x77   :  { %512 = vrot.lane.b32.xlu0 %v4834_v9, %s4707_s30 }
  0x78   :  { %v4944_v12 = vpop.permute.xlu1 %149 }
  0x79   :  { %v146_v13 = vpop.permute.xlu0 %145  ;;  %v4948_v14 = vsel %vm177_vm0, %v148_v10, %v4944_v12 }
  0x7a   :  { %559 = vrot.lane.b32.xlu1 %v4789_v3, %s4708_s10  ;;  %2191 = vmatprep.subr.bf16.mxu1 %v4948_v14  ;;  %v4954_v15 = vsel %vm177_vm0, %v144_v11, %v146_v13  ;;  %v4957_v16 = vsel %vm177_vm0, %v146_v13, %v148_v10  ;;  %v5113_v10 = vld [vmem:[%s7695_s0 + $0x14] ss:$36 sps:$4 sm:$0xff]  }
  0x7b   :  { %557 = vrot.lane.b32.xlu0 %v4774_v1, %s4708_s10  ;;  %1947 = vmatprep.subr.bf16.mxu0 %v4954_v15 }
  0x7c   :  { %2192 = vmatpush1.bf16.msra.mxu1 %v4957_v16  ;;  %v162_v17 = vpop.permute.xlu1 %161 }
  0x7d   :  { %v142_v18 = vpop.permute.xlu0 %141 }
  0x7e   :  { %563 = vrot.lane.b32.xlu1 %v4781_v2, %s4708_s10  ;;  %v4966_v19 = vsel %vm177_vm0, %v142_v18, %v144_v11 }
  0x7f   :  { %561 = vrot.lane.b32.xlu0 %v4769_v0, %s4708_s10  ;;  %1948 = vmatpush1.bf16.msra.mxu0 %v4966_v19 }
  0x80   :  { %v166_v20 = vpop.permute.xlu1 %165 }
  0x81   :  { %v164_v21 = vpop.permute.xlu0 %163 }
  0x82   :  { %575 = vrot.lane.b32.xlu1 %v4800_v5, %s4708_s10  ;;  %v4974_v22 = vsel %vm177_vm0, %v162_v17, %v164_v21  ;;  %v4998_v28 = vsel %vm177_vm0, %v164_v21, %v166_v20 }
  0x83   :  { %555 = vrot.lane.b32.xlu0 %v4795_v4, %s4708_s10  ;;  %1949 = vmatprep.subr.bf16.mxu0 %v4974_v22 }
  0x84   :  { %v160_v23 = vpop.permute.xlu1 %159 }
  0x85   :  { %v4979_v24 = vpop.permute.xlu0 %167  ;;  %v4982_v25 = vsel %vm177_vm0, %v160_v23, %v162_v17 }
  0x86   :  { %579 = vrot.lane.b32.xlu1 %v4805_v6, %s4708_s10  ;;  %1950 = vmatpush1.bf16.msra.mxu0 %v4982_v25  ;;  %v4992_v27 = vsel %vm177_vm0, %v166_v20, %v4979_v24 }
  0x87   :  { %577 = vrot.lane.b32.xlu0 %v4813_v7, %s4708_s10  ;;  %2193 = vmatprep.subr.bf16.mxu1 %v4992_v27 }
  0x88   :  { %2194 = vmatpush1.bf16.msra.mxu1 %v4998_v28  ;;  %v215_v29 = vpop.permute.xlu1 %214 }
  0x89   :  { %v213_v30 = vpop.permute.xlu0 %212 }
  0x8a   :  { %573 = vrot.lane.b32.xlu1 %v4821_v8, %s4708_s10  ;;  %v5004_v31 = vsel %vm246_vm1, %v213_v30, %v215_v29 }
  0x8b   :  { %581 = vrot.lane.b32.xlu0 %v4834_v9, %s4708_s10  ;;  %1951 = vmatprep.subr.bf16.mxu0 %v5004_v31 }
  0x8c   :  { %v5009_v32 = vpop.permute.xlu1 %218 }
  0x8d   :  { %v217_v33 = vpop.permute.xlu0 %216 }
  0x8e   :  { %628 = vrot.lane.b32.xlu1 %v4789_v3, %s4709_s13  ;;  %v5015_v34 = vsel %vm246_vm1, %v217_v33, %v5009_v32  ;;  %v5018_v35 = vsel %vm246_vm1, %v215_v29, %v217_v33 }
  0x8f   :  { %626 = vrot.lane.b32.xlu0 %v4774_v1, %s4709_s13  ;;  %2195 = vmatprep.subr.bf16.mxu1 %v5015_v34 }
  0x90   :  { %2196 = vmatpush1.bf16.msra.mxu1 %v5018_v35  ;;  %v231_v36 = vpop.permute.xlu1 %230 }
  0x91   :  { %v211_v37 = vpop.permute.xlu0 %210 }
  0x92   :  { %632 = vrot.lane.b32.xlu1 %v4781_v2, %s4709_s13  ;;  %v5027_v38 = vsel %vm246_vm1, %v211_v37, %v213_v30 }
  0x93   :  { %630 = vrot.lane.b32.xlu0 %v4769_v0, %s4709_s13  ;;  %1952 = vmatpush1.bf16.msra.mxu0 %v5027_v38 }
  0x94   :  { %v235_v39 = vpop.permute.xlu1 %234 }
  0x95   :  { %v233_v40 = vpop.permute.xlu0 %232 }
  0x96   :  { %644 = vrot.lane.b32.xlu1 %v4800_v5, %s4709_s13  ;;  %v5035_v41 = vsel %vm246_vm1, %v231_v36, %v233_v40  ;;  %v5056_v46 = vsel %vm246_vm1, %v233_v40, %v235_v39 }
  0x97   :  { %624 = vrot.lane.b32.xlu0 %v4795_v4, %s4709_s13  ;;  %1953 = vmatprep.subr.bf16.mxu0 %v5035_v41 }
  0x98   :  { %v229_v42 = vpop.permute.xlu1 %228 }
  0x99   :  { %v5040_v43 = vpop.permute.xlu0 %236  ;;  %v5043_v44 = vsel %vm246_vm1, %v229_v42, %v231_v36  ;;  %v5153_v36 = vld [vmem:[%s7695_s0 + $0x5c] ss:$36 sps:$4 sm:$0xff]  }
  0x9a   :  { %648 = vrot.lane.b32.xlu1 %v4805_v6, %s4709_s13  ;;  %1954 = vmatpush1.bf16.msra.mxu0 %v5043_v44  ;;  %v5050_v45 = vsel %vm246_vm1, %v235_v39, %v5040_v43 }
  0x9b   :  { %646 = vrot.lane.b32.xlu0 %v4813_v7, %s4709_s13  ;;  %2197 = vmatprep.subr.bf16.mxu1 %v5050_v45 }
  0x9c   :  { %2198 = vmatpush1.bf16.msra.mxu1 %v5056_v46  ;;  %v284_v47 = vpop.permute.xlu1 %283 }
  0x9d   :  { %v282_v48 = vpop.permute.xlu0 %281 }
  0x9e   :  { %642 = vrot.lane.b32.xlu1 %v4821_v8, %s4709_s13  ;;  %v5062_v49 = vsel %vm315_vm2, %v282_v48, %v284_v47 }
  0x9f   :  { %650 = vrot.lane.b32.xlu0 %v4834_v9, %s4709_s13  ;;  %1955 = vmatprep.subr.bf16.mxu0 %v5062_v49 }
  0xa0   :  { %v5067_v50 = vpop.permute.xlu1 %287 }
  0xa1   :  { %v286_v51 = vpop.permute.xlu0 %285 }
  0xa2   :  { %697 = vrot.lane.b32.xlu1 %v4789_v3, %s4710_s14  ;;  %v5073_v52 = vsel %vm315_vm2, %v286_v51, %v5067_v50  ;;  %v5076_v53 = vsel %vm315_vm2, %v284_v47, %v286_v51 }
  0xa3   :  { %695 = vrot.lane.b32.xlu0 %v4774_v1, %s4710_s14  ;;  %2199 = vmatprep.subr.bf16.mxu1 %v5073_v52 }
  0xa4   :  { %2200 = vmatpush1.bf16.msra.mxu1 %v5076_v53  ;;  %v300_v54 = vpop.permute.xlu1 %299 }
  0xa5   :  { %v280_v55 = vpop.permute.xlu0 %279 }
  0xa6   :  { %701 = vrot.lane.b32.xlu1 %v4781_v2, %s4710_s14  ;;  %v5085_v56 = vsel %vm315_vm2, %v280_v55, %v282_v48 }
  0xa7   :  { %699 = vrot.lane.b32.xlu0 %v4769_v0, %s4710_s14  ;;  %1956 = vmatpush1.bf16.msra.mxu0 %v5085_v56 }
  0xa8   :  { %v304_v57 = vpop.permute.xlu1 %303 }
  0xa9   :  { %v302_v58 = vpop.permute.xlu0 %301 }
  0xaa   :  { %713 = vrot.lane.b32.xlu1 %v4800_v5, %s4710_s14  ;;  %v5093_v59 = vsel %vm315_vm2, %v300_v54, %v302_v58  ;;  %v5119_v11 = vsel %vm315_vm2, %v302_v58, %v304_v57 }
  0xab   :  { %693 = vrot.lane.b32.xlu0 %v4795_v4, %s4710_s14  ;;  %1957 = vmatprep.subr.bf16.mxu0 %v5093_v59 }
  0xac   :  { %v298_v60 = vpop.permute.xlu1 %297 }
  0xad   :  { %v5098_v61 = vpop.permute.xlu0 %305  ;;  %v5101_v62 = vsel %vm315_vm2, %v298_v60, %v300_v54 }
  0xae   :  { %717 = vrot.lane.b32.xlu1 %v4805_v6, %s4710_s14  ;;  %1958 = vmatpush1.bf16.msra.mxu0 %v5101_v62  ;;  %v5108_v63 = vsel %vm315_vm2, %v304_v57, %v5098_v61 }
  0xaf   :  { %715 = vrot.lane.b32.xlu0 %v4813_v7, %s4710_s14  ;;  %2201 = vmatprep.subr.bf16.mxu1 %v5108_v63 }
  0xb0   :  { %2202 = vmatpush1.bf16.msra.mxu1 %v5119_v11  ;;  %v353_v13 = vpop.permute.xlu1 %352 }
  0xb1   :  { %v351_v17 = vpop.permute.xlu0 %350 }
  0xb2   :  { %151 = vrot.lane.b32.xlu1 %v5113_v10, %s4702_s9  ;;  %v5125_v18 = vsel %vm384_vm3, %v351_v17, %v353_v13 }
  0xb3   :  { %719 = vrot.lane.b32.xlu0 %v4834_v9, %s4710_s14  ;;  %1959 = vmatprep.subr.bf16.mxu0 %v5125_v18 }
  0xb4   :  { %v5130_v20 = vpop.permute.xlu1 %356 }
  0xb5   :  { %v355_v21 = vpop.permute.xlu0 %354 }
  0xb6   :  { %764 = vrot.lane.b32.xlu1 %v4774_v1, %s4711_s17  ;;  %v5136_v23 = vsel %vm384_vm3, %v355_v21, %v5130_v20  ;;  %v5139_v26 = vsel %vm384_vm3, %v353_v13, %v355_v21 }
  0xb7   :  { %711 = vrot.lane.b32.xlu0 %v4821_v8, %s4710_s14  ;;  %2203 = vmatprep.subr.bf16.mxu1 %v5136_v23 }
  0xb8   :  { %2204 = vmatpush1.bf16.msra.mxu1 %v5139_v26  ;;  %v369_v29 = vpop.permute.xlu1 %368 }
  0xb9   :  { %v349_v30 = vpop.permute.xlu0 %348 }
  0xba   :  { %768 = vrot.lane.b32.xlu1 %v4769_v0, %s4711_s17  ;;  %v5148_v33 = vsel %vm384_vm3, %v349_v30, %v351_v17 }
  0xbb   :  { %766 = vrot.lane.b32.xlu0 %v4789_v3, %s4711_s17  ;;  %1960 = vmatpush1.bf16.msra.mxu0 %v5148_v33 }
  0xbc   :  { %v373_v37 = vpop.permute.xlu1 %372 }
  0xbd   :  { %v371_v39 = vpop.permute.xlu0 %370 }
  0xbe   :  { %169 = vrot.lane.b32.xlu1 %v5153_v36, %s4702_s9  ;;  %v5161_v40 = vsel %vm384_vm3, %v369_v29, %v371_v39  ;;  %v5182_v54 = vsel %vm384_vm3, %v371_v39, %v373_v37 }
  0xbf   :  { %770 = vrot.lane.b32.xlu0 %v4781_v2, %s4711_s17  ;;  %1961 = vmatprep.subr.bf16.mxu0 %v5161_v40 }
  0xc0   :  { %v367_v42 = vpop.permute.xlu1 %366 }
  0xc1   :  { %v5166_v47 = vpop.permute.xlu0 %374  ;;  %v5169_v48 = vsel %vm384_vm3, %v367_v42, %v369_v29 }
  0xc2   :  { %7811 = vst [vmem:[#allocation5_spill] sm:$0xff] %v5166_v47  ;;  %782 = vrot.lane.b32.xlu1 %v4800_v5, %s4711_s17  ;;  %1962 = vmatpush1.bf16.msra.mxu0 %v5169_v48  ;;  %v5176_v51 = vsel %vm384_vm3, %v373_v37, %v5166_v47 }
  0xc3   :  { %762 = vrot.lane.b32.xlu0 %v4795_v4, %s4711_s17  ;;  %2205 = vmatprep.subr.bf16.mxu1 %v5176_v51 }
  0xc4   :  { %2206 = vmatpush1.bf16.msra.mxu1 %v5182_v54  ;;  %v422_v55 = vpop.permute.xlu1 %421 }
  0xc5   :  { %v420_v57 = vpop.permute.xlu0 %419 }
  0xc6   :  { %786 = vrot.lane.b32.xlu1 %v4805_v6, %s4711_s17  ;;  %v5188_v58 = vsel %vm453_vm4, %v420_v57, %v422_v55 }
  0xc7   :  { %7812 = vst [vmem:[#allocation6_spill] sm:$0xff] %v5188_v58  ;;  %784 = vrot.lane.b32.xlu0 %v4813_v7, %s4711_s17  ;;  %1963 = vmatprep.subr.bf16.mxu0 %v5188_v58 }
  0xc8   :  { %v5193_v60 = vpop.permute.xlu1 %425 }
  0xc9   :  { %7813 = vst [vmem:[#allocation7_spill] sm:$0xff] %v5193_v60  ;;  %v424_v13 = vpop.permute.xlu0 %423 }
  0xca   :  { %220 = vrot.lane.b32.xlu1 %v5113_v10, %s4703_s26  ;;  %v5199_v17 = vsel %vm453_vm4, %v424_v13, %v5193_v60  ;;  %v5202_v21 = vsel %vm453_vm4, %v422_v55, %v424_v13 }
  0xcb   :  { %7814 = vst [vmem:[#allocation8_spill] sm:$0xff] %v5199_v17  ;;  %7815 = vst [vmem:[#allocation9_spill] sm:$0xff] %v5202_v21  ;;  %788 = vrot.lane.b32.xlu0 %v4834_v9, %s4711_s17  ;;  %2207 = vmatprep.subr.bf16.mxu1 %v5199_v17 }
  0xcc   :  { %2208 = vmatpush1.bf16.msra.mxu1 %v5202_v21  ;;  %v438_v29 = vpop.permute.xlu1 %437  ;;  %v4568_v21 = vld [vmem:[%s7696_s1 + $0xc] ss:$28 sps:$4 sm:$0xff]  }
  0xcd   :  { %v418_v30 = vpop.permute.xlu0 %417 }
  0xce   :  { %833 = vrot.lane.b32.xlu1 %v4774_v1, %s4712_s20  ;;  %v5211_v37 = vsel %vm453_vm4, %v418_v30, %v420_v57 }
  0xcf   :  { %7816 = vst [vmem:[#allocation10_spill] sm:$0xff] %v5211_v37  ;;  %780 = vrot.lane.b32.xlu0 %v4821_v8, %s4711_s17  ;;  %1964 = vmatpush1.bf16.msra.mxu0 %v5211_v37 }
  0xd0   :  { %v442_v39 = vpop.permute.xlu1 %441 }
  0xd1   :  { %v440_v42 = vpop.permute.xlu0 %439 }
  0xd2   :  { %837 = vrot.lane.b32.xlu1 %v4769_v0, %s4712_s20  ;;  %v5219_v55 = vsel %vm453_vm4, %v438_v29, %v440_v42 }
  0xd3   :  { %7817 = vst [vmem:[#allocation11_spill] sm:$0xff] %v5219_v55  ;;  %835 = vrot.lane.b32.xlu0 %v4789_v3, %s4712_s20  ;;  %1965 = vmatprep.subr.bf16.mxu0 %v5219_v55  ;;  %v5240_v55 = vsel %vm453_vm4, %v440_v42, %v442_v39 }
  0xd4   :  { %v436_v57 = vpop.permute.xlu1 %435  ;;  %7821 = vst [vmem:[#allocation15_spill] sm:$0xff] %v5240_v55 }
  0xd5   :  { %v5224_v13 = vpop.permute.xlu0 %443  ;;  %v5227_v30 = vsel %vm453_vm4, %v436_v57, %v438_v29 }
  0xd6   :  { %7818 = vst [vmem:[#allocation12_spill] sm:$0xff] %v5224_v13  ;;  %7819 = vst [vmem:[#allocation13_spill] sm:$0xff] %v5227_v30  ;;  %238 = vrot.lane.b32.xlu1 %v5153_v36, %s4703_s26  ;;  %1966 = vmatpush1.bf16.msra.mxu0 %v5227_v30  ;;  %v5234_v37 = vsel %vm453_vm4, %v442_v39, %v5224_v13 }
  0xd7   :  { %7820 = vst [vmem:[#allocation14_spill] sm:$0xff] %v5234_v37  ;;  %839 = vrot.lane.b32.xlu0 %v4781_v2, %s4712_s20  ;;  %2209 = vmatprep.subr.bf16.mxu1 %v5234_v37 }
  0xd8   :  { %2210 = vmatpush1.bf16.msra.mxu1 %v5240_v55  ;;  %v491_v29 = vpop.permute.xlu1 %490 }
  0xd9   :  { %v489_v57 = vpop.permute.xlu0 %488 }
  0xda   :  { %851 = vrot.lane.b32.xlu1 %v4800_v5, %s4712_s20  ;;  %v5246_v30 = vsel %vm522_vm5, %v489_v57, %v491_v29 }
  0xdb   :  { %7822 = vst [vmem:[#allocation16_spill] sm:$0xff] %v5246_v30  ;;  %831 = vrot.lane.b32.xlu0 %v4795_v4, %s4712_s20  ;;  %1967 = vmatprep.subr.bf16.mxu0 %v5246_v30 }
  0xdc   :  { %v5251_v13 = vpop.permute.xlu1 %494 }
  0xdd   :  { %7823 = vst [vmem:[#allocation17_spill] sm:$0xff] %v5251_v13  ;;  %v493_v39 = vpop.permute.xlu0 %492 }
  0xde   :  { %855 = vrot.lane.b32.xlu1 %v4805_v6, %s4712_s20  ;;  %v5257_v42 = vsel %vm522_vm5, %v493_v39, %v5251_v13  ;;  %v5260_v55 = vsel %vm522_vm5, %v491_v29, %v493_v39 }
  0xdf   :  { %7824 = vst [vmem:[#allocation18_spill] sm:$0xff] %v5257_v42  ;;  %7825 = vst [vmem:[#allocation19_spill] sm:$0xff] %v5260_v55  ;;  %853 = vrot.lane.b32.xlu0 %v4813_v7, %s4712_s20  ;;  %2211 = vmatprep.subr.bf16.mxu1 %v5257_v42 }
  0xe0   :  { %2212 = vmatpush1.bf16.msra.mxu1 %v5260_v55  ;;  %v507_v30 = vpop.permute.xlu1 %506 }
  0xe1   :  { %v487_v37 = vpop.permute.xlu0 %486 }
  0xe2   :  { %289 = vrot.lane.b32.xlu1 %v5113_v10, %s4704_s27  ;;  %v5269_v17 = vsel %vm522_vm5, %v487_v37, %v489_v57 }
  0xe3   :  { %7826 = vst [vmem:[#allocation20_spill] sm:$0xff] %v5269_v17  ;;  %857 = vrot.lane.b32.xlu0 %v4834_v9, %s4712_s20  ;;  %1968 = vmatpush1.bf16.msra.mxu0 %v5269_v17 }
  0xe4   :  { %v511_v29 = vpop.permute.xlu1 %510 }
  0xe5   :  { %v509_v39 = vpop.permute.xlu0 %508 }
  0xe6   :  { %902 = vrot.lane.b32.xlu1 %v4774_v1, %s4713_s21  ;;  %v5277_v42 = vsel %vm522_vm5, %v507_v30, %v509_v39 }
  0xe7   :  { %7827 = vst [vmem:[#allocation21_spill] sm:$0xff] %v5277_v42  ;;  %849 = vrot.lane.b32.xlu0 %v4821_v8, %s4712_s20  ;;  %1969 = vmatprep.subr.bf16.mxu0 %v5277_v42  ;;  %v5298_v42 = vsel %vm522_vm5, %v509_v39, %v511_v29 }
  0xe8   :  { %v505_v37 = vpop.permute.xlu1 %504  ;;  %7831 = vst [vmem:[#allocation25_spill] sm:$0xff] %v5298_v42 }
  0xe9   :  { %v5282_v57 = vpop.permute.xlu0 %512  ;;  %v5285_v13 = vsel %vm522_vm5, %v505_v37, %v507_v30 }
  0xea   :  { %7828 = vst [vmem:[#allocation22_spill] sm:$0xff] %v5282_v57  ;;  %7829 = vst [vmem:[#allocation23_spill] sm:$0xff] %v5285_v13  ;;  %906 = vrot.lane.b32.xlu1 %v4769_v0, %s4713_s21  ;;  %1970 = vmatpush1.bf16.msra.mxu0 %v5285_v13  ;;  %v5292_v17 = vsel %vm522_vm5, %v511_v29, %v5282_v57 }
  0xeb   :  { %7830 = vst [vmem:[#allocation24_spill] sm:$0xff] %v5292_v17  ;;  %904 = vrot.lane.b32.xlu0 %v4789_v3, %s4713_s21  ;;  %2213 = vmatprep.subr.bf16.mxu1 %v5292_v17 }
  0xec   :  { %2214 = vmatpush1.bf16.msra.mxu1 %v5298_v42  ;;  %v560_v30 = vpop.permute.xlu1 %559 }
  0xed   :  { %v558_v37 = vpop.permute.xlu0 %557 }
  0xee   :  { %307 = vrot.lane.b32.xlu1 %v5153_v36, %s4704_s27  ;;  %v5304_v13 = vsel %vm591_vm6, %v558_v37, %v560_v30 }
  0xef   :  { %7832 = vst [vmem:[#allocation26_spill] sm:$0xff] %v5304_v13  ;;  %908 = vrot.lane.b32.xlu0 %v4781_v2, %s4713_s21  ;;  %1971 = vmatprep.subr.bf16.mxu0 %v5304_v13 }
  0xf0   :  { %v5309_v57 = vpop.permute.xlu1 %563 }
  0xf1   :  { %7833 = vst [vmem:[#allocation27_spill] sm:$0xff] %v5309_v57  ;;  %v562_v29 = vpop.permute.xlu0 %561 }
  0xf2   :  { %920 = vrot.lane.b32.xlu1 %v4800_v5, %s4713_s21  ;;  %v5315_v39 = vsel %vm591_vm6, %v562_v29, %v5309_v57  ;;  %v5318_v42 = vsel %vm591_vm6, %v560_v30, %v562_v29 }
  0xf3   :  { %7834 = vst [vmem:[#allocation28_spill] sm:$0xff] %v5315_v39  ;;  %7835 = vst [vmem:[#allocation29_spill] sm:$0xff] %v5318_v42  ;;  %900 = vrot.lane.b32.xlu0 %v4795_v4, %s4713_s21  ;;  %2215 = vmatprep.subr.bf16.mxu1 %v5315_v39 }
  0xf4   :  { %2216 = vmatpush1.bf16.msra.mxu1 %v5318_v42  ;;  %v576_v13 = vpop.permute.xlu1 %575 }
  0xf5   :  { %v556_v17 = vpop.permute.xlu0 %555 }
  0xf6   :  { %924 = vrot.lane.b32.xlu1 %v4805_v6, %s4713_s21  ;;  %v5327_v55 = vsel %vm591_vm6, %v556_v17, %v558_v37 }
  0xf7   :  { %7836 = vst [vmem:[#allocation30_spill] sm:$0xff] %v5327_v55  ;;  %922 = vrot.lane.b32.xlu0 %v4813_v7, %s4713_s21  ;;  %1972 = vmatpush1.bf16.msra.mxu0 %v5327_v55 }
  0xf8   :  { %v580_v30 = vpop.permute.xlu1 %579 }
  0xf9   :  { %v578_v29 = vpop.permute.xlu0 %577 }
  0xfa   :  { %358 = vrot.lane.b32.xlu1 %v5113_v10, %s4705_s28  ;;  %v5335_v39 = vsel %vm591_vm6, %v576_v13, %v578_v29 }
  0xfb   :  { %7837 = vst [vmem:[#allocation31_spill] sm:$0xff] %v5335_v39  ;;  %926 = vrot.lane.b32.xlu0 %v4834_v9, %s4713_s21  ;;  %1973 = vmatprep.subr.bf16.mxu0 %v5335_v39  ;;  %v5356_v39 = vsel %vm591_vm6, %v578_v29, %v580_v30 }
  0xfc   :  { %v574_v17 = vpop.permute.xlu1 %573  ;;  %7841 = vst [vmem:[#allocation35_spill] sm:$0xff] %v5356_v39 }
  0xfd   :  { %v5340_v37 = vpop.permute.xlu0 %581  ;;  %v5343_v57 = vsel %vm591_vm6, %v574_v17, %v576_v13  ;;  %v4560_v13 = vld [vmem:[%s7696_s1] ss:$28 sps:$4 sm:$0xff]  }
  0xfe   :  { %7838 = vst [vmem:[#allocation32_spill] sm:$0xff] %v5340_v37  ;;  %7839 = vst [vmem:[#allocation33_spill] sm:$0xff] %v5343_v57  ;;  %971 = vrot.lane.b32.xlu1 %v4774_v1, %s4714_s22  ;;  %1974 = vmatpush1.bf16.msra.mxu0 %v5343_v57  ;;  %v5350_v55 = vsel %vm591_vm6, %v580_v30, %v5340_v37 }
  0xff   :  { %7840 = vst [vmem:[#allocation34_spill] sm:$0xff] %v5350_v55  ;;  %918 = vrot.lane.b32.xlu0 %v4821_v8, %s4713_s21  ;;  %2217 = vmatprep.subr.bf16.mxu1 %v5350_v55 }
 0x100   :  { %2218 = vmatpush1.bf16.msra.mxu1 %v5356_v39  ;;  %v629_v17 = vpop.permute.xlu1 %628 }
 0x101   :  { %v627_v57 = vpop.permute.xlu0 %626  ;;  %1976 = vmatmul.mubr.bf16.vlgmr.msra.gmra.mrb[0].mxu0 %v4560_v13 }
 0x102   :  { %975 = vrot.lane.b32.xlu1 %v4769_v0, %s4714_s22  ;;  %v5365_v37 = vsel %vm660_vm7, %v627_v57, %v629_v17 }
 0x103   :  { %7842 = vst [vmem:[#allocation36_spill] sm:$0xff] %v5365_v37  ;;  %973 = vrot.lane.b32.xlu0 %v4789_v3, %s4714_s22  ;;  %2004 = vmatprep.subr.bf16.mxu0 %v5365_v37 }
 0x104   :  { %v5370_v30 = vpop.permute.xlu1 %632  ;;  %2220 = vmatmul.mubr.bf16.vlgmr.msra.gmra.mrb[0].mxu1 %v4560_v13 }
 0x105   :  { %7843 = vst [vmem:[#allocation37_spill] sm:$0xff] %v5370_v30  ;;  %v631_v29 = vpop.permute.xlu0 %630 }
 0x106   :  { %376 = vrot.lane.b32.xlu1 %v5153_v36, %s4705_s28  ;;  %v5376_v39 = vsel %vm660_vm7, %v631_v29, %v5370_v30  ;;  %v5379_v55 = vsel %vm660_vm7, %v629_v17, %v631_v29 }
 0x107   :  { %7844 = vst [vmem:[#allocation38_spill] sm:$0xff] %v5376_v39  ;;  %7845 = vst [vmem:[#allocation39_spill] sm:$0xff] %v5379_v55  ;;  %977 = vrot.lane.b32.xlu0 %v4781_v2, %s4714_s22  ;;  %2248 = vmatprep.subr.bf16.mxu1 %v5376_v39 }
 0x108   :  { %2249 = vmatpush1.bf16.msra.mxu1 %v5379_v55  ;;  %v645_v37 = vpop.permute.xlu1 %644 }
 0x109   :  { %v625_v13 = vpop.permute.xlu0 %624 }
 0x10a   :  { %v5386_v42 = vsel %vm660_vm7, %v625_v13, %v627_v57  ;;  %989 = vrot.lane.b32.xlu1 %v4800_v5, %s4714_s22 }
 0x10b   :  { %7846 = vst [vmem:[#allocation40_spill] sm:$0xff] %v5386_v42  ;;  %969 = vrot.lane.b32.xlu0 %v4795_v4, %s4714_s22  ;;  %2005 = vmatpush1.bf16.msra.mxu0 %v5386_v42 }
 0x10c   :  { %v649_v17 = vpop.permute.xlu1 %648 }
 0x10d   :  { %v647_v29 = vpop.permute.xlu0 %646 }
 0x10e   :  { %993 = vrot.lane.b32.xlu1 %v4805_v6, %s4714_s22  ;;  %v5396_v39 = vsel %vm660_vm7, %v645_v37, %v647_v29 }
 0x10f   :  { %7847 = vst [vmem:[#allocation41_spill] sm:$0xff] %v5396_v39  ;;  %991 = vrot.lane.b32.xlu0 %v4813_v7, %s4714_s22  ;;  %2006 = vmatprep.subr.bf16.mxu0 %v5396_v39  ;;  %v5417_v39 = vsel %vm660_vm7, %v647_v29, %v649_v17 }
 0x110   :  { %v643_v57 = vpop.permute.xlu1 %642  ;;  %7851 = vst [vmem:[#allocation45_spill] sm:$0xff] %v5417_v39 }
 0x111   :  { %v5402_v13 = vsel %vm660_vm7, %v643_v57, %v645_v37  ;;  %v5404_v30 = vpop.permute.xlu0 %650 }
 0x112   :  { %7848 = vst [vmem:[#allocation42_spill] sm:$0xff] %v5402_v13  ;;  %7849 = vst [vmem:[#allocation43_spill] sm:$0xff] %v5404_v30  ;;  %427 = vrot.lane.b32.xlu1 %v5113_v10, %s4706_s29  ;;  %2007 = vmatpush1.bf16.msra.mxu0 %v5402_v13  ;;  %v5411_v42 = vsel %vm660_vm7, %v649_v17, %v5404_v30 }
 0x113   :  { %7850 = vst [vmem:[#allocation44_spill] sm:$0xff] %v5411_v42  ;;  %995 = vrot.lane.b32.xlu0 %v4834_v9, %s4714_s22  ;;  %2250 = vmatprep.subr.bf16.mxu1 %v5411_v42 }
 0x114   :  { %2251 = vmatpush1.bf16.msra.mxu1 %v5417_v39  ;;  %v698_v37 = vpop.permute.xlu1 %697 }
 0x115   :  { %v696_v57 = vpop.permute.xlu0 %695 }
 0x116   :  { %1040 = vrot.lane.b32.xlu1 %v4774_v1, %s7740_s25  ;;  %v731_v30 = vsel %vm729_vm8, %v696_v57, %v698_v37 }
 0x117   :  { %987 = vrot.lane.b32.xlu0 %v4821_v8, %s4714_s22  ;;  %2008 = vmatprep.subr.bf16.mxu0 %v731_v30 }
 0x118   :  { %v5425_v13 = vpop.permute.xlu1 %701 }
 0x119   :  { %7852 = vst [vmem:[#allocation46_spill] sm:$0xff] %v5425_v13  ;;  %v700_v42 = vpop.permute.xlu0 %699 }
 0x11a   :  { %1044 = vrot.lane.b32.xlu1 %v4769_v0, %s7740_s25  ;;  %v733_v17 = vsel %vm729_vm8, %v700_v42, %v5425_v13  ;;  %v732_v29 = vsel %vm729_vm8, %v698_v37, %v700_v42 }
 0x11b   :  { %1042 = vrot.lane.b32.xlu0 %v4789_v3, %s7740_s25  ;;  %2252 = vmatprep.subr.bf16.mxu1 %v733_v17 }
 0x11c   :  { %2253 = vmatpush1.bf16.msra.mxu1 %v732_v29  ;;  %v714_v1 = vpop.permute.xlu1 %713 }
 0x11d   :  { %v694_v39 = vpop.permute.xlu0 %693 }
 0x11e   :  { %v730_v8 = vsel %vm729_vm8, %v694_v39, %v696_v57  ;;  %445 = vrot.lane.b32.xlu1 %v5153_v36, %s4706_s29 }
 0x11f   :  { %1046 = vrot.lane.b32.xlu0 %v4781_v2, %s7740_s25  ;;  %2009 = vmatpush1.bf16.msra.mxu0 %v730_v8 }
 0x120   :  { %v718_v0 = vpop.permute.xlu1 %717 }
 0x121   :  { %v716_v30 = vpop.permute.xlu0 %715 }
 0x122   :  { %1058 = vrot.lane.b32.xlu1 %v4800_v5, %s7740_s25  ;;  %v739_v3 = vsel %vm729_vm8, %v714_v1, %v716_v30  ;;  %v740_v5 = vsel %vm729_vm8, %v716_v30, %v718_v0  ;;  %v5485_v30 = vld [vmem:[%s7695_s0 + $0xc] ss:$36 sps:$4 sm:$0xff]  }
 0x123   :  { %1038 = vrot.lane.b32.xlu0 %v4795_v4, %s7740_s25  ;;  %2010 = vmatprep.subr.bf16.mxu0 %v739_v3 }
 0x124   :  { %v5444_v42 = vpop.permute.xlu1 %151 }
 0x125   :  { %v5446_v39 = vpop.permute.xlu0 %719 }
 0x126   :  { %7853 = vst [vmem:[#allocation47_spill] sm:$0xff] %v5446_v39  ;;  %1062 = vrot.lane.b32.xlu1 %v4805_v6, %s7740_s25  ;;  %v741_v2 = vsel %vm729_vm8, %v718_v0, %v5446_v39  ;;  %v4561_v0 = vld [vmem:[%s7696_s1 + $0x3c] ss:$28 sps:$4 sm:$0xff]   ;;  %v4653_v39 = vld [vmem:[%s7695_s0 + $0x10] ss:$36 sps:$4 sm:$0xff]  }
 0x127   :  { %1060 = vrot.lane.b32.xlu0 %v4813_v7, %s7740_s25  ;;  %2254 = vmatprep.subr.bf16.mxu1 %v741_v2  ;;  %v5463_v7 = vld [vmem:[%s7695_s0 + $0x4] ss:$36 sps:$4 sm:$0xff]   ;;  %v4563_v2 = vld [vmem:[%s7696_s1 + $0x38] ss:$28 sps:$4 sm:$0xff]  }
 0x128   :  { %2255 = vmatpush1.bf16.msra.mxu1 %v740_v5  ;;  %v765_v37 = vpop.permute.xlu1 %764  ;;  %v5497_v5 = vld [vmem:[%s7695_s0 + $0x8] ss:$36 sps:$4 sm:$0xff]   ;;  %2229 = vmatprep.mubr.bf16.mxu1 %v4561_v0 }
 0x129   :  { %v712_v4 = vpop.permute.xlu0 %711  ;;  %2230 = vmatmul.mubr.bf16.gmra.mrb[4].mxu1 %v4563_v2  ;;  %1985 = vmatprep.mubr.bf16.mxu0 %v4561_v0 }
 0x12a   :  { %v738_v57 = vsel %vm729_vm8, %v712_v4, %v714_v1  ;;  %496 = vrot.lane.b32.xlu1 %v5113_v10, %s4707_s30  ;;  %v5471_v1 = vld [vmem:[%s7695_s0 + $0x48] ss:$36 sps:$4 sm:$0xff]   ;;  %1986 = vmatmul.mubr.bf16.gmra.mrb[4].mxu0 %v4563_v2 }
 0x12b   :  { %1064 = vrot.lane.b32.xlu0 %v4834_v9, %s7740_s25  ;;  %2011 = vmatpush1.bf16.msra.mxu0 %v738_v57 }
 0x12c   :  { %v769_v6 = vpop.permute.xlu1 %768 }
 0x12d   :  { %v767_v17 = vpop.permute.xlu0 %766 }
 0x12e   :  { %1109 = vrot.lane.b32.xlu1 %v5463_v7, %s4716_s15  ;;  %v800_v29 = vsel %vm798_vm9, %v765_v37, %v767_v17  ;;  %v801_v4 = vsel %vm798_vm9, %v767_v17, %v769_v6  ;;  %v1805_v17 = vld [vmem:[%s7696_s1 + $0x70] sm:$0xff] }
 0x12f   :  { %1056 = vrot.lane.b32.xlu0 %v5471_v1, %s7740_s25  ;;  %2012 = vmatprep.subr.bf16.mxu0 %v800_v29  ;;  %v5512_v0 = vcombine.high %v1805_v17, %v1805_v17  ;;  %s4717_s25 = smov 112  }
 0x130   :  { %v5475_v9 = vpop.permute.xlu1 %169 }
 0x131   :  { %v5477_v8 = vpop.permute.xlu0 %770  ;;  %7855 = vst [vmem:[#allocation49_spill] sm:$0xff] %v5512_v0  ;;  %2239 = vmatprep.mubr.bf16.mxu1 %v5512_v0  ;;  %1995 = vmatprep.mubr.bf16.mxu0 %v5512_v0 }
 0x132   :  { %7854 = vst [vmem:[#allocation48_spill] sm:$0xff] %v5477_v8  ;;  %1113 = vrot.lane.b32.xlu1 %v5485_v30, %s4716_s15  ;;  %v802_v3 = vsel %vm798_vm9, %v769_v6, %v5477_v8 }
 0x133   :  { %1111 = vrot.lane.b32.xlu0 %v5497_v5, %s4716_s15  ;;  %2256 = vmatprep.subr.bf16.mxu1 %v802_v3 }
 0x134   :  { %2257 = vmatpush1.bf16.msra.mxu1 %v801_v4  ;;  %v783_v57 = vpop.permute.xlu1 %782  ;;  %v5519_v4 = vcombine.low %v1805_v17, %v1805_v17  ;;  %v4656_v17 = vld [vmem:[%s7695_s0 + $0x54] ss:$36 sps:$4 sm:$0xff]  }
 0x135   :  { %v763_v29 = vpop.permute.xlu0 %762 }
 0x136   :  { %v799_v8 = vsel %vm798_vm9, %v763_v29, %v765_v37  ;;  %514 = vrot.lane.b32.xlu1 %v5153_v36, %s4707_s30  ;;  %v4654_v37 = vld [vmem:[%s7695_s0 + $0x4c] ss:$36 sps:$4 sm:$0xff]   ;;  %7856 = vst [vmem:[#allocation50_spill] sm:$0xff] %v5519_v4  ;;  %2240 = vmatmul.mubr.bf16.gmra.mrb[8].mxu1 %v5519_v4 }
 0x137   :  { %1115 = vrot.lane.b32.xlu0 %v4653_v39, %s4716_s15  ;;  %2013 = vmatpush1.bf16.msra.mxu0 %v799_v8  ;;  %v4655_v8 = vld [vmem:[%s7695_s0] ss:$36 sps:$4 sm:$0xff]  }
 0x138   :  { %v787_v6 = vpop.permute.xlu1 %786  ;;  %1996 = vmatmul.mubr.bf16.gmra.mrb[8].mxu0 %v5519_v4  ;;  %v4658_v4 = vld [vmem:[%s7695_s0 + $0x58] ss:$36 sps:$4 sm:$0xff]   ;;  %2280 = vmatprep.mubr.bf16.mxu1 %v4568_v21 }
 0x139   :  { %v785_v3 = vpop.permute.xlu0 %784  ;;  %2036 = vmatprep.mubr.bf16.mxu0 %v4568_v21 }
 0x13a   :  { %1127 = vrot.lane.b32.xlu1 %v4654_v37, %s4716_s15  ;;  %v808_v2 = vsel %vm798_vm9, %v783_v57, %v785_v3  ;;  %v809_v0 = vsel %vm798_vm9, %v785_v3, %v787_v6 }
 0x13b   :  { %1107 = vrot.lane.b32.xlu0 %v4655_v8, %s4716_s15  ;;  %2014 = vmatprep.subr.bf16.mxu0 %v808_v2  ;;  %v4657_v2 = vld [vmem:[%s7695_s0 + $0x50] ss:$36 sps:$4 sm:$0xff]  }
 0x13c   :  { %v5525_v29 = vpop.permute.xlu1 %220 }
 0x13d   :  { %v5529_v13 = vpop.permute.xlu0 %788 }
 0x13e   :  { %7857 = vst [vmem:[#allocation51_spill] sm:$0xff] %v5529_v13  ;;  %1131 = vrot.lane.b32.xlu1 %v4656_v17, %s4716_s15  ;;  %v810_v55 = vsel %vm798_vm9, %v787_v6, %v5529_v13 }
 0x13f   :  { %1129 = vrot.lane.b32.xlu0 %v4657_v2, %s4716_s15  ;;  %2258 = vmatprep.subr.bf16.mxu1 %v810_v55 }
 0x140   :  { %2259 = vmatpush1.bf16.msra.mxu1 %v809_v0  ;;  %v834_v60 = vpop.permute.xlu1 %833 }
 0x141   :  { %v781_v58 = vpop.permute.xlu0 %780 }
 0x142   :  { %v807_v13 = vsel %vm798_vm9, %v781_v58, %v783_v57  ;;  %565 = vrot.lane.b32.xlu1 %v5113_v10, %s4708_s10 }
 0x143   :  { %1133 = vrot.lane.b32.xlu0 %v4658_v4, %s4716_s15  ;;  %2015 = vmatpush1.bf16.msra.mxu0 %v807_v13 }
 0x144   :  { %v838_v55 = vpop.permute.xlu1 %837 }
 0x145   :  { %v836_v6 = vpop.permute.xlu0 %835 }
 0x146   :  { %1178 = vrot.lane.b32.xlu1 %v5463_v7, %s4717_s25  ;;  %v869_v58 = vsel %vm867_vm10, %v834_v60, %v836_v6  ;;  %v870_v13 = vsel %vm867_vm10, %v836_v6, %v838_v55 }
 0x147   :  { %1125 = vrot.lane.b32.xlu0 %v5471_v1, %s4716_s15  ;;  %2016 = vmatprep.subr.bf16.mxu0 %v869_v58 }
 0x148   :  { %v5559_v57 = vpop.permute.xlu1 %238 }
 0x149   :  { %v5561_v3 = vpop.permute.xlu0 %839 }
 0x14a   :  { %1182 = vrot.lane.b32.xlu1 %v5485_v30, %s4717_s25  ;;  %v871_v21 = vsel %vm867_vm10, %v838_v55, %v5561_v3 }
 0x14b   :  { %1180 = vrot.lane.b32.xlu0 %v5497_v5, %s4717_s25  ;;  %2260 = vmatprep.subr.bf16.mxu1 %v871_v21 }
 0x14c   :  { %2261 = vmatpush1.bf16.msra.mxu1 %v870_v13  ;;  %v852_v7 = vpop.permute.xlu1 %851 }
 0x14d   :  { %v832_v0 = vpop.permute.xlu0 %831 }
 0x14e   :  { %v868_v58 = vsel %vm867_vm10, %v832_v0, %v834_v60  ;;  %583 = vrot.lane.b32.xlu1 %v5153_v36, %s4708_s10 }
 0x14f   :  { %1184 = vrot.lane.b32.xlu0 %v4653_v39, %s4717_s25  ;;  %2017 = vmatpush1.bf16.msra.mxu0 %v868_v58 }
 0x150   :  { %v856_v30 = vpop.permute.xlu1 %855 }
 0x151   :  { %v854_v47 = vpop.permute.xlu0 %853 }
 0x152   :  { %1196 = vrot.lane.b32.xlu1 %v4654_v37, %s4717_s25  ;;  %v877_v5 = vsel %vm867_vm10, %v852_v7, %v854_v47  ;;  %v878_v39 = vsel %vm867_vm10, %v854_v47, %v856_v30 }
 0x153   :  { %1176 = vrot.lane.b32.xlu0 %v4655_v8, %s4717_s25  ;;  %2018 = vmatprep.subr.bf16.mxu0 %v877_v5 }
 0x154   :  { %v5577_v55 = vpop.permute.xlu1 %289 }
 0x155   :  { %v5579_v6 = vpop.permute.xlu0 %857 }
 0x156   :  { %1200 = vrot.lane.b32.xlu1 %v4656_v17, %s4717_s25  ;;  %v879_v60 = vsel %vm867_vm10, %v856_v30, %v5579_v6 }
 0x157   :  { %1198 = vrot.lane.b32.xlu0 %v4657_v2, %s4717_s25  ;;  %2262 = vmatprep.subr.bf16.mxu1 %v879_v60 }
 0x158   :  { %2263 = vmatpush1.bf16.msra.mxu1 %v878_v39  ;;  %v903_v37 = vpop.permute.xlu1 %902 }
 0x159   :  { %v850_v21 = vpop.permute.xlu0 %849 }
 0x15a   :  { %v876_v8 = vsel %vm867_vm10, %v850_v21, %v852_v7  ;;  %1194 = vrot.lane.b32.xlu1 %v5471_v1, %s4717_s25  ;;  %v5602_v1 = vsel %vm177_vm0, %v4944_v12, %v5444_v42  ;;  %v5645_v21 = vsel %vm246_vm1, %v5009_v32, %v5525_v29 }
 0x15b   :  { %1202 = vrot.lane.b32.xlu0 %v4658_v4, %s4717_s25  ;;  %2019 = vmatpush1.bf16.msra.mxu0 %v876_v8 }
 0x15c   :  { %v907_v17 = vpop.permute.xlu1 %906 }
 0x15d   :  { %v905_v13 = vpop.permute.xlu0 %904 }
 0x15e   :  { %1216 = vrot.lane.b32.xlu1 %v4957_v16, %s4717_s25  ;;  %v938_v2 = vsel %vm936_vm11, %v903_v37, %v905_v13 }
 0x15f   :  { %1214 = vrot.lane.b32.xlu0 %v4954_v15, %s4717_s25  ;;  %2020 = vmatprep.subr.bf16.mxu0 %v938_v2  ;;  %v939_v15 = vsel %vm936_vm11, %v905_v13, %v907_v17 }
 0x160   :  { %v5595_v47 = vpop.permute.xlu1 %307 }
 0x161   :  { %v5597_v7 = vpop.permute.xlu0 %908 }
 0x162   :  { %1220 = vrot.lane.b32.xlu1 %v5602_v1, %s4717_s25  ;;  %v940_v16 = vsel %vm936_vm11, %v907_v17, %v5597_v7 }
 0x163   :  { %1218 = vrot.lane.b32.xlu0 %v4948_v14, %s4717_s25  ;;  %2264 = vmatprep.subr.bf16.mxu1 %v940_v16 }
 0x164   :  { %2265 = vmatpush1.bf16.msra.mxu1 %v939_v15  ;;  %v921_v4 = vpop.permute.xlu1 %920 }
 0x165   :  { %v901_v0 = vpop.permute.xlu0 %900 }
 0x166   :  { %v937_v58 = vsel %vm936_vm11, %v901_v0, %v903_v37  ;;  %1232 = vrot.lane.b32.xlu1 %v4974_v22, %s4717_s25 }
 0x167   :  { %1212 = vrot.lane.b32.xlu0 %v4966_v19, %s4717_s25  ;;  %2021 = vmatpush1.bf16.msra.mxu0 %v937_v58  ;;  %v5630_v19 = vsel %vm177_vm0, %v4979_v24, %v5475_v9 }
 0x168   :  { %v925_v12 = vpop.permute.xlu1 %924 }
 0x169   :  { %v923_v30 = vpop.permute.xlu0 %922 }
 0x16a   :  { %1236 = vrot.lane.b32.xlu1 %v4992_v27, %s4717_s25  ;;  %v946_v14 = vsel %vm936_vm11, %v921_v4, %v923_v30  ;;  %v947_v27 = vsel %vm936_vm11, %v923_v30, %v925_v12 }
 0x16b   :  { %1234 = vrot.lane.b32.xlu0 %v4998_v28, %s4717_s25  ;;  %2022 = vmatprep.subr.bf16.mxu0 %v946_v14 }
 0x16c   :  { %v5621_v5 = vpop.permute.xlu1 %358 }
 0x16d   :  { %v5623_v60 = vpop.permute.xlu0 %926 }
 0x16e   :  { %1230 = vrot.lane.b32.xlu1 %v4982_v25, %s4717_s25  ;;  %v948_v22 = vsel %vm936_vm11, %v925_v12, %v5623_v60 }
 0x16f   :  { %1238 = vrot.lane.b32.xlu0 %v5630_v19, %s4717_s25  ;;  %2266 = vmatprep.subr.bf16.mxu1 %v948_v22 }
 0x170   :  { %2267 = vmatpush1.bf16.msra.mxu1 %v947_v27  ;;  %v972_v28 = vpop.permute.xlu1 %971 }
 0x171   :  { %v919_v39 = vpop.permute.xlu0 %918 }
 0x172   :  { %v945_v37 = vsel %vm936_vm11, %v919_v39, %v921_v4  ;;  %1252 = vrot.lane.b32.xlu1 %v5018_v35, %s4717_s25 }
 0x173   :  { %1250 = vrot.lane.b32.xlu0 %v5004_v31, %s4717_s25  ;;  %2023 = vmatpush1.bf16.msra.mxu0 %v945_v37 }
 0x174   :  { %v976_v24 = vpop.permute.xlu1 %975 }
 0x175   :  { %v974_v25 = vpop.permute.xlu0 %973 }
 0x176   :  { %1256 = vrot.lane.b32.xlu1 %v5645_v21, %s4717_s25  ;;  %v1007_v8 = vsel %vm1005_vm12, %v972_v28, %v974_v25  ;;  %v1008_v17 = vsel %vm1005_vm12, %v974_v25, %v976_v24  ;;  %v5744_v25 = vsel %vm384_vm3, %v5130_v20, %v5621_v5 }
 0x177   :  { %1254 = vrot.lane.b32.xlu0 %v5015_v34, %s4717_s25  ;;  %2024 = vmatprep.subr.bf16.mxu0 %v1007_v8 }
 0x178   :  { %v5652_v35 = vpop.permute.xlu1 %376 }
 0x179   :  { %v5654_v31 = vpop.permute.xlu0 %977 }
 0x17a   :  { %634 = vrot.lane.b32.xlu1 %v5113_v10, %s4709_s13  ;;  %v1009_v32 = vsel %vm1005_vm12, %v976_v24, %v5654_v31 }
 0x17b   :  { %1248 = vrot.lane.b32.xlu0 %v5027_v38, %s4717_s25  ;;  %2268 = vmatprep.subr.bf16.mxu1 %v1009_v32  ;;  %v5671_v38 = vsel %vm246_vm1, %v5040_v43, %v5559_v57 }
 0x17c   :  { %2269 = vmatpush1.bf16.msra.mxu1 %v1008_v17  ;;  %v990_v13 = vpop.permute.xlu1 %989 }
 0x17d   :  { %v970_v34 = vpop.permute.xlu0 %969 }
 0x17e   :  { %v1006_v2 = vsel %vm1005_vm12, %v970_v34, %v972_v28  ;;  %1270 = vrot.lane.b32.xlu1 %v5056_v46, %s4717_s25 }
 0x17f   :  { %1268 = vrot.lane.b32.xlu0 %v5035_v41, %s4717_s25  ;;  %2025 = vmatpush1.bf16.msra.mxu0 %v1006_v2  ;;  %v7862_v2 = vld [vmem:[#allocation5_spill] sm:$0xff] }
 0x180   :  { %v994_v10 = vpop.permute.xlu1 %993 }
 0x181   :  { %v992_v16 = vpop.permute.xlu0 %991 }
 0x182   :  { %1274 = vrot.lane.b32.xlu1 %v5671_v38, %s4717_s25  ;;  %v1015_v15 = vsel %vm1005_vm12, %v990_v13, %v992_v16  ;;  %v1016_v4 = vsel %vm1005_vm12, %v992_v16, %v994_v10  ;;  %v7863_v16 = vld [vmem:[#allocation9_spill] sm:$0xff] }
 0x183   :  { %1272 = vrot.lane.b32.xlu0 %v5050_v45, %s4717_s25  ;;  %2026 = vmatprep.subr.bf16.mxu0 %v1015_v15 }
 0x184   :  { %v5678_v46 = vpop.permute.xlu1 %427 }
 0x185   :  { %v5680_v41 = vpop.permute.xlu0 %995 }
 0x186   :  { %7858 = vst [vmem:[#allocation52_spill] sm:$0xff] %v5680_v41  ;;  %652 = vrot.lane.b32.xlu1 %v5153_v36, %s4709_s13  ;;  %v1017_v43 = vsel %vm1005_vm12, %v994_v10, %v5680_v41 }
 0x187   :  { %1266 = vrot.lane.b32.xlu0 %v5043_v44, %s4717_s25  ;;  %2270 = vmatprep.subr.bf16.mxu1 %v1017_v43  ;;  %v5697_v44 = vsel %vm315_vm2, %v5067_v50, %v5577_v55  ;;  %v7864_v43 = vld [vmem:[#allocation6_spill] sm:$0xff] }
 0x188   :  { %2271 = vmatpush1.bf16.msra.mxu1 %v1016_v4  ;;  %v1041_v0 = vpop.permute.xlu1 %1040 }
 0x189   :  { %v988_v45 = vpop.permute.xlu0 %987 }
 0x18a   :  { %v1014_v58 = vsel %vm1005_vm12, %v988_v45, %v990_v13  ;;  %1288 = vrot.lane.b32.xlu1 %v5076_v53, %s4717_s25 }
 0x18b   :  { %1286 = vrot.lane.b32.xlu0 %v5062_v49, %s4717_s25  ;;  %2027 = vmatpush1.bf16.msra.mxu0 %v1014_v58 }
 0x18c   :  { %v1045_v36 = vpop.permute.xlu1 %1044 }
 0x18d   :  { %v1043_v12 = vpop.permute.xlu0 %1042 }
 0x18e   :  { %1292 = vrot.lane.b32.xlu1 %v5697_v44, %s4717_s25  ;;  %v1076_v30 = vsel %vm1074_vm13, %v1041_v0, %v1043_v12  ;;  %v1077_v14 = vsel %vm1074_vm13, %v1043_v12, %v1045_v36 }
 0x18f   :  { %1290 = vrot.lane.b32.xlu0 %v5073_v52, %s4717_s25  ;;  %2028 = vmatprep.subr.bf16.mxu0 %v1076_v30 }
 0x190   :  { %v5704_v53 = vpop.permute.xlu1 %445 }
 0x191   :  { %v5706_v49 = vpop.permute.xlu0 %1046 }
 0x192   :  { %7859 = vst [vmem:[#allocation53_spill] sm:$0xff] %v5706_v49  ;;  %1304 = vrot.lane.b32.xlu1 %v5093_v59, %s4717_s25  ;;  %v1078_v50 = vsel %vm1074_vm13, %v1045_v36, %v5706_v49  ;;  %v7867_v36 = vld [vmem:[#allocation8_spill] sm:$0xff] }
 0x193   :  { %1284 = vrot.lane.b32.xlu0 %v5085_v56, %s4717_s25  ;;  %2272 = vmatprep.subr.bf16.mxu1 %v1078_v50  ;;  %v5725_v56 = vsel %vm315_vm2, %v5098_v61, %v5595_v47  ;;  %v4566_v50 = vld [vmem:[%s7696_s1 + $0x8] ss:$28 sps:$4 sm:$0xff]  }
 0x194   :  { %2273 = vmatpush1.bf16.msra.mxu1 %v1077_v14  ;;  %v1059_v22 = vpop.permute.xlu1 %1058 }
 0x195   :  { %v1039_v52 = vpop.permute.xlu0 %1038 }
 0x196   :  { %v1075_v27 = vsel %vm1074_vm13, %v1039_v52, %v1041_v0  ;;  %1308 = vrot.lane.b32.xlu1 %v5108_v63, %s4717_s25  ;;  %v7866_v0 = vld [vmem:[#allocation7_spill] sm:$0xff] }
 0x197   :  { %1306 = vrot.lane.b32.xlu0 %v5119_v11, %s4717_s25  ;;  %2029 = vmatpush1.bf16.msra.mxu0 %v1075_v27  ;;  %v5789_v45 = vsel %vm453_vm4, %v7866_v0, %v5678_v46  ;;  %v7868_v52 = vld [vmem:[#allocation11_spill] sm:$0xff]  ;;  %v7869_v27 = vld [vmem:[#allocation10_spill] sm:$0xff] }
 0x198   :  { %v1063_v59 = vpop.permute.xlu1 %1062  ;;  %v7878_v0 = vld [vmem:[#allocation18_spill] sm:$0xff] }
 0x199   :  { %v1061_v28 = vpop.permute.xlu0 %1060 }
 0x19a   :  { %1302 = vrot.lane.b32.xlu1 %v5101_v62, %s4717_s25  ;;  %v1084_v39 = vsel %vm1074_vm13, %v1059_v22, %v1061_v28  ;;  %v1085_v61 = vsel %vm1074_vm13, %v1061_v28, %v1063_v59 }
 0x19b   :  { %1310 = vrot.lane.b32.xlu0 %v5725_v56, %s4717_s25  ;;  %2030 = vmatprep.subr.bf16.mxu0 %v1084_v39  ;;  %v7870_v39 = vld [vmem:[#allocation14_spill] sm:$0xff] }
 0x19c   :  { %v5730_v63 = vpop.permute.xlu1 %496 }
 0x19d   :  { %v5732_v11 = vpop.permute.xlu0 %1064 }
 0x19e   :  { %7860 = vst [vmem:[#allocation54_spill] sm:$0xff] %v5732_v11  ;;  %1324 = vrot.lane.b32.xlu1 %v5139_v26, %s4717_s25  ;;  %v1086_v62 = vsel %vm1074_vm13, %v1063_v59, %v5732_v11 }
 0x19f   :  { %1322 = vrot.lane.b32.xlu0 %v5125_v18, %s4717_s25  ;;  %2274 = vmatprep.subr.bf16.mxu1 %v1086_v62 }
 0x1a0   :  { %2275 = vmatpush1.bf16.msra.mxu1 %v1085_v61  ;;  %v1110_v37 = vpop.permute.xlu1 %1109  ;;  %v7871_v61 = vld [vmem:[#allocation15_spill] sm:$0xff] }
 0x1a1   :  { %v1057_v24 = vpop.permute.xlu0 %1056 }
 0x1a2   :  { %v1083_v8 = vsel %vm1074_vm13, %v1057_v24, %v1059_v22  ;;  %1328 = vrot.lane.b32.xlu1 %v5744_v25, %s4717_s25 }
 0x1a3   :  { %1326 = vrot.lane.b32.xlu0 %v5136_v23, %s4717_s25  ;;  %2031 = vmatpush1.bf16.msra.mxu0 %v1083_v8  ;;  %v7873_v8 = vld [vmem:[#allocation13_spill] sm:$0xff] }
 0x1a4   :  { %v1114_v18 = vpop.permute.xlu1 %1113 }
 0x1a5   :  { %v1112_v26 = vpop.permute.xlu0 %1111 }
 0x1a6   :  { %1340 = vrot.lane.b32.xlu1 %v5161_v40, %s4717_s25  ;;  %v1145_v32 = vsel %vm7774_vm14, %v1110_v37, %v1112_v26  ;;  %v1146_v40 = vsel %vm7774_vm14, %v1112_v26, %v1114_v18 }
 0x1a7   :  { %1320 = vrot.lane.b32.xlu0 %v5148_v33, %s4717_s25  ;;  %2032 = vmatprep.subr.bf16.mxu0 %v1145_v32 }
 0x1a8   :  { %v5756_v20 = vpop.permute.xlu1 %514 }
 0x1a9   :  { %v5758_v17 = vpop.permute.xlu0 %1115 }
 0x1aa   :  { %7861 = vst [vmem:[#allocation55_spill] sm:$0xff] %v5758_v17  ;;  %1344 = vrot.lane.b32.xlu1 %v5176_v51, %s4717_s25  ;;  %v1147_v23 = vsel %vm7774_vm14, %v1114_v18, %v5758_v17  ;;  %v5773_v51 = vsel %vm384_vm3, %v7862_v2, %v5652_v35  ;;  %v7874_v18 = vld [vmem:[#allocation12_spill] sm:$0xff] }
 0x1ab   :  { %1342 = vrot.lane.b32.xlu0 %v5182_v54, %s4717_s25  ;;  %2276 = vmatprep.subr.bf16.mxu1 %v1147_v23  ;;  %v5820_v26 = vsel %vm453_vm4, %v7874_v18, %v5704_v53  ;;  %v7876_v2 = vld [vmem:[#allocation16_spill] sm:$0xff] }
 0x1ac   :  { %2277 = vmatpush1.bf16.msra.mxu1 %v1146_v40  ;;  %v1128_v13 = vpop.permute.xlu1 %1127 }
 0x1ad   :  { %v1108_v33 = vpop.permute.xlu0 %1107 }
 0x1ae   :  { %v1144_v34 = vsel %vm7774_vm14, %v1108_v33, %v1110_v37  ;;  %1338 = vrot.lane.b32.xlu1 %v5169_v48, %s4717_s25 }
 0x1af   :  { %1346 = vrot.lane.b32.xlu0 %v5773_v51, %s4717_s25  ;;  %2033 = vmatpush1.bf16.msra.mxu0 %v1144_v34  ;;  %v7875_v34 = vld [vmem:[#allocation19_spill] sm:$0xff] }
 0x1b0   :  { %v1132_v54 = vpop.permute.xlu1 %1131 }
 0x1b1   :  { %v1130_v10 = vpop.permute.xlu0 %1129 }
 0x1b2   :  { %1360 = vrot.lane.b32.xlu1 %v7863_v16, %s4717_s25  ;;  %v1153_v15 = vsel %vm7774_vm14, %v1128_v13, %v1130_v10  ;;  %v1154_v12 = vsel %vm7774_vm14, %v1130_v10, %v1132_v54  ;;  %v7877_v16 = vld [vmem:[#allocation17_spill] sm:$0xff] }
 0x1b3   :  { %1358 = vrot.lane.b32.xlu0 %v7864_v43, %s4717_s25  ;;  %2034 = vmatprep.subr.bf16.mxu0 %v1153_v15  ;;  %v5835_v15 = vsel %vm522_vm5, %v7877_v16, %v5730_v63 }
 0x1b4   :  { %v5782_v48 = vpop.permute.xlu1 %565 }
 0x1b5   :  { %v5784_v4 = vpop.permute.xlu0 %1133 }
 0x1b6   :  { %7865 = vst [vmem:[#allocation5_spill] sm:$0xff] %v5784_v4  ;;  %1364 = vrot.lane.b32.xlu1 %v5789_v45, %s4717_s25  ;;  %v1155_v58 = vsel %vm7774_vm14, %v1132_v54, %v5784_v4 }
 0x1b7   :  { %1362 = vrot.lane.b32.xlu0 %v7867_v36, %s4717_s25  ;;  %2278 = vmatprep.subr.bf16.mxu1 %v1155_v58 }
 0x1b8   :  { %2279 = vmatpush1.bf16.msra.mxu1 %v1154_v12  ;;  %v1179_v30 = vpop.permute.xlu1 %1178 }
 0x1b9   :  { %v1126_v14 = vpop.permute.xlu0 %1125 }
 0x1ba   :  { %v1152_v22 = vsel %vm7774_vm14, %v1126_v14, %v1128_v13  ;;  %1376 = vrot.lane.b32.xlu1 %v7868_v52, %s4717_s25  ;;  %v7881_v14 = vld [vmem:[#allocation20_spill] sm:$0xff]  ;;  %vm1933_vm14 = vcmask 261120  }
 0x1bb   :  { %1356 = vrot.lane.b32.xlu0 %v7869_v27, %s4717_s25  ;;  %2035 = vmatpush1.bf16.msra.mxu0 %v1152_v22  ;;  %v4577_v52 = vld [vmem:[%s7696_s1 + $0x44] ss:$28 sps:$4 sm:$0xff]  }
 0x1bc   :  { %v1183_v59 = vpop.permute.xlu1 %1182  ;;  %2281 = vmatmul.mubr.bf16.vlgmr.msra.gmra.mrb[0].mxu1 %v4566_v50 }
 0x1bd   :  { %v1181_v28 = vpop.permute.xlu0 %1180  ;;  %2290 = vmatprep.mubr.bf16.mxu1 %v4577_v52 }
 0x1be   :  { %1380 = vrot.lane.b32.xlu1 %v7870_v39, %s4717_s25  ;;  %v1502_v62 = vsel %vm1500_vm15, %v1179_v30, %v1181_v28  ;;  %2037 = vmatmul.mubr.bf16.vlgmr.msra.gmra.mrb[0].mxu0 %v4566_v50  ;;  %v1503_v23 = vsel %vm1500_vm15, %v1181_v28, %v1183_v59  ;;  %v7882_v39 = vld [vmem:[#allocation24_spill] sm:$0xff] }
 0x1bf   :  { %1378 = vrot.lane.b32.xlu0 %v7871_v61, %s4717_s25  ;;  %2065 = vmatprep.subr.bf16.mxu0 %v1502_v62  ;;  %v7883_v61 = vld [vmem:[#allocation25_spill] sm:$0xff] }
 0x1c0   :  { %v5811_v37 = vpop.permute.xlu1 %583  ;;  %2046 = vmatprep.mubr.bf16.mxu0 %v4577_v52  ;;  %v7892_v52 = vld [vmem:[#allocation28_spill] sm:$0xff] }
 0x1c1   :  { %v5813_v24 = vpop.permute.xlu0 %1184 }
 0x1c2   :  { %7872 = vst [vmem:[#allocation9_spill] sm:$0xff] %v5813_v24  ;;  %1374 = vrot.lane.b32.xlu1 %v7873_v8, %s4717_s25  ;;  %v1504_v32 = vsel %vm1500_vm15, %v1183_v59, %v5813_v24  ;;  %v4579_v59 = vld [vmem:[%s7696_s1 + $0x40] ss:$28 sps:$4 sm:$0xff]  }
 0x1c3   :  { %1382 = vrot.lane.b32.xlu0 %v5820_v26, %s4717_s25  ;;  %2309 = vmatprep.subr.bf16.mxu1 %v1504_v32  ;;  %v7885_v32 = vld [vmem:[#allocation23_spill] sm:$0xff] }
 0x1c4   :  { %2310 = vmatpush1.bf16.msra.mxu1 %v1503_v23  ;;  %v1197_v40 = vpop.permute.xlu1 %1196  ;;  %v7886_v23 = vld [vmem:[#allocation22_spill] sm:$0xff] }
 0x1c5   :  { %v1177_v13 = vpop.permute.xlu0 %1176  ;;  %2291 = vmatmul.mubr.bf16.gmra.mrb[4].mxu1 %v4579_v59 }
 0x1c6   :  { %v1501_v33 = vsel %vm1500_vm15, %v1177_v13, %v1179_v30  ;;  %1396 = vrot.lane.b32.xlu1 %v7875_v34, %s4717_s25  ;;  %v7880_v30 = vld [vmem:[#allocation21_spill] sm:$0xff]  ;;  %2047 = vmatmul.mubr.bf16.gmra.mrb[4].mxu0 %v4579_v59  ;;  %v1806_v34 = vld [vmem:[%s7696_s1 + $0x78] sm:$0xff] }
 0x1c7   :  { %1394 = vrot.lane.b32.xlu0 %v7876_v2, %s4717_s25  ;;  %2066 = vmatpush1.bf16.msra.mxu0 %v1501_v33  ;;  %v5880_v2 = vcombine.high %v1806_v34, %v1806_v34 }
 0x1c8   :  { %v1201_v54 = vpop.permute.xlu1 %1200 }
 0x1c9   :  { %v1199_v10 = vpop.permute.xlu0 %1198  ;;  %7887 = vst [vmem:[#allocation8_spill] sm:$0xff] %v5880_v2  ;;  %2056 = vmatprep.mubr.bf16.mxu0 %v5880_v2  ;;  %2300 = vmatprep.mubr.bf16.mxu1 %v5880_v2 }
 0x1ca   :  { %1400 = vrot.lane.b32.xlu1 %v5835_v15, %s4717_s25  ;;  %v1510_v43 = vsel %vm1500_vm15, %v1197_v40, %v1199_v10  ;;  %v1511_v22 = vsel %vm1500_vm15, %v1199_v10, %v1201_v54  ;;  %v5882_v10 = vcombine.low %v1806_v34, %v1806_v34 }
 0x1cb   :  { %1398 = vrot.lane.b32.xlu0 %v7878_v0, %s4717_s25  ;;  %2067 = vmatprep.subr.bf16.mxu0 %v1510_v43  ;;  %v7889_v0 = vld [vmem:[#allocation29_spill] sm:$0xff] }
 0x1cc   :  { %v1195_v58 = vpop.permute.xlu1 %1194  ;;  %7888 = vst [vmem:[#allocation11_spill] sm:$0xff] %v5882_v10 }
 0x1cd   :  { %v1509_v36 = vsel %vm1500_vm15, %v1195_v58, %v1197_v40  ;;  %v5843_v12 = vpop.permute.xlu0 %1202  ;;  %v5870_v40 = vsel %vm522_vm5, %v7886_v23, %v5756_v20  ;;  %v7890_v58 = vld [vmem:[#allocation26_spill] sm:$0xff]  ;;  %2301 = vmatmul.mubr.bf16.gmra.mrb[8].mxu1 %v5882_v10 }
 0x1ce   :  { %7879 = vst [vmem:[#allocation6_spill] sm:$0xff] %v5843_v12  ;;  %1412 = vrot.lane.b32.xlu1 %v7880_v30, %s4717_s25  ;;  %2068 = vmatpush1.bf16.msra.mxu0 %v1509_v36  ;;  %v1512_v50 = vsel %vm1500_vm15, %v1201_v54, %v5843_v12 }
 0x1cf   :  { %1392 = vrot.lane.b32.xlu0 %v7881_v14, %s4717_s25  ;;  %2311 = vmatprep.subr.bf16.mxu1 %v1512_v50  ;;  %v7891_v50 = vld [vmem:[#allocation27_spill] sm:$0xff] }
 0x1d0   :  { %2312 = vmatpush1.bf16.msra.mxu1 %v1511_v22  ;;  %v1217_v27 = vpop.permute.xlu1 %1216  ;;  %2057 = vmatmul.mubr.bf16.gmra.mrb[8].mxu0 %v5882_v10  ;;  %v5896_v14 = vsel %vm591_vm6, %v7891_v50, %v5782_v48 }
 0x1d1   :  { %v1215_v28 = vpop.permute.xlu0 %1214 }
 0x1d2   :  { %1416 = vrot.lane.b32.xlu1 %v7882_v39, %s4717_s25  ;;  %v1518_v62 = vsel %vm1500_vm15, %v1215_v28, %v1217_v27 }
 0x1d3   :  { %1414 = vrot.lane.b32.xlu0 %v7883_v61, %s4717_s25  ;;  %2069 = vmatprep.subr.bf16.mxu0 %v1518_v62  ;;  %v7894_v62 = vld [vmem:[#allocation31_spill] sm:$0xff] }
 0x1d4   :  { %v5863_v8 = vpop.permute.xlu1 %1220 }
 0x1d5   :  { %7884 = vst [vmem:[#allocation7_spill] sm:$0xff] %v5863_v8  ;;  %v1219_v18 = vpop.permute.xlu0 %1218 }
 0x1d6   :  { %1410 = vrot.lane.b32.xlu1 %v7885_v32, %s4717_s25  ;;  %v1520_v13 = vsel %vm1500_vm15, %v1219_v18, %v5863_v8  ;;  %v1519_v33 = vsel %vm1500_vm15, %v1217_v27, %v1219_v18  ;;  %v4584_v27 = vld [vmem:[%s7696_s1 + $0x14] ss:$28 sps:$4 sm:$0xff]  }
 0x1d7   :  { %1418 = vrot.lane.b32.xlu0 %v5870_v40, %s4717_s25  ;;  %2313 = vmatprep.subr.bf16.mxu1 %v1520_v13  ;;  %v7895_v18 = vld [vmem:[#allocation30_spill] sm:$0xff] }
 0x1d8   :  { %2314 = vmatpush1.bf16.msra.mxu1 %v1519_v33  ;;  %v1233_v54 = vpop.permute.xlu1 %1232  ;;  %2097 = vmatprep.mubr.bf16.mxu0 %v4584_v27  ;;  %v7896_v33 = vld [vmem:[#allocation34_spill] sm:$0xff] }
 0x1d9   :  { %v1213_v16 = vpop.permute.xlu0 %1212  ;;  %2341 = vmatprep.mubr.bf16.mxu1 %v4584_v27 }
 0x1da   :  { %v1517_v43 = vsel %vm1500_vm15, %v1213_v16, %v1215_v28  ;;  %1432 = vrot.lane.b32.xlu1 %v7889_v0, %s4717_s25  ;;  %v7899_v0 = vld [vmem:[#allocation33_spill] sm:$0xff] }
 0x1db   :  { %1430 = vrot.lane.b32.xlu0 %v7890_v58, %s4717_s25  ;;  %2070 = vmatpush1.bf16.msra.mxu0 %v1517_v43  ;;  %v7900_v58 = vld [vmem:[#allocation32_spill] sm:$0xff] }
 0x1dc   :  { %v1237_v36 = vpop.permute.xlu1 %1236 }
 0x1dd   :  { %v1235_v30 = vpop.permute.xlu0 %1234 }
 0x1de   :  { %1436 = vrot.lane.b32.xlu1 %v5896_v14, %s4717_s25  ;;  %v1526_v22 = vsel %vm1500_vm15, %v1233_v54, %v1235_v30  ;;  %v1527_v32 = vsel %vm1500_vm15, %v1235_v30, %v1237_v36 }
 0x1df   :  { %1434 = vrot.lane.b32.xlu0 %v7892_v52, %s4717_s25  ;;  %2071 = vmatprep.subr.bf16.mxu0 %v1526_v22 }
 0x1e0   :  { %v1231_v59 = vpop.permute.xlu1 %1230 }
 0x1e1   :  { %v1525_v28 = vsel %vm1500_vm15, %v1231_v59, %v1233_v54  ;;  %v5907_v39 = vpop.permute.xlu0 %1238  ;;  %v7897_v54 = vld [vmem:[#allocation35_spill] sm:$0xff] }
 0x1e2   :  { %7893 = vst [vmem:[#allocation10_spill] sm:$0xff] %v5907_v39  ;;  %1448 = vrot.lane.b32.xlu1 %v7894_v62, %s4717_s25  ;;  %2072 = vmatpush1.bf16.msra.mxu0 %v1525_v28  ;;  %v1528_v61 = vsel %vm1500_vm15, %v1237_v36, %v5907_v39  ;;  %v5928_v36 = vsel %vm591_vm6, %v7900_v58, %v5811_v37  ;;  %v7901_v59 = vld [vmem:[#allocation39_spill] sm:$0xff]  ;;  %v7902_v28 = vld [vmem:[#allocation36_spill] sm:$0xff] }
 0x1e3   :  { %1428 = vrot.lane.b32.xlu0 %v7895_v18, %s4717_s25  ;;  %2315 = vmatprep.subr.bf16.mxu1 %v1528_v61  ;;  %v7903_v18 = vld [vmem:[#allocation37_spill] sm:$0xff]  ;;  %v7907_v58 = vld [vmem:[#allocation40_spill] sm:$0xff] }
 0x1e4   :  { %2316 = vmatpush1.bf16.msra.mxu1 %v1527_v32  ;;  %v1253_v23 = vpop.permute.xlu1 %1252 }
 0x1e5   :  { %v1251_v13 = vpop.permute.xlu0 %1250 }
 0x1e6   :  { %1452 = vrot.lane.b32.xlu1 %v7896_v33, %s4717_s25  ;;  %v1534_v34 = vsel %vm1500_vm15, %v1251_v13, %v1253_v23 }
 0x1e7   :  { %1450 = vrot.lane.b32.xlu0 %v7897_v54, %s4717_s25  ;;  %2073 = vmatprep.subr.bf16.mxu0 %v1534_v34  ;;  %v7906_v54 = vld [vmem:[#allocation41_spill] sm:$0xff] }
 0x1e8   :  { %v5921_v16 = vpop.permute.xlu1 %1256 }
 0x1e9   :  { %7898 = vst [vmem:[#allocation14_spill] sm:$0xff] %v5921_v16  ;;  %v1255_v43 = vpop.permute.xlu0 %1254 }
 0x1ea   :  { %1446 = vrot.lane.b32.xlu1 %v7899_v0, %s4717_s25  ;;  %v1536_v30 = vsel %vm1500_vm15, %v1255_v43, %v5921_v16  ;;  %v1535_v50 = vsel %vm1500_vm15, %v1253_v23, %v1255_v43 }
 0x1eb   :  { %1454 = vrot.lane.b32.xlu0 %v5928_v36, %s4717_s25  ;;  %2317 = vmatprep.subr.bf16.mxu1 %v1536_v30 }
 0x1ec   :  { %2318 = vmatpush1.bf16.msra.mxu1 %v1535_v50  ;;  %v5935_v22 = vpop.permute.xlu1 %634 }
 0x1ed   :  { %v1249_v52 = vpop.permute.xlu0 %1248  ;;  %v5945_v32 = vsel %vm660_vm7, %v7903_v18, %v5935_v22 }
 0x1ee   :  { %v1533_v27 = vsel %vm1500_vm15, %v1249_v52, %v1251_v13  ;;  %1468 = vrot.lane.b32.xlu1 %v7901_v59, %s4717_s25  ;;  %v7904_v13 = vld [vmem:[#allocation38_spill] sm:$0xff]  ;;  %v7755_v59 = vmov 0  }
 0x1ef   :  { %1466 = vrot.lane.b32.xlu0 %v7902_v28, %s4717_s25  ;;  %2074 = vmatpush1.bf16.msra.mxu0 %v1533_v27  ;;  %v7908_v27 = vld [vmem:[#allocation44_spill] sm:$0xff]  ;;  %v7909_v28 = vld [vmem:[#allocation45_spill] sm:$0xff] }
 0x1f0   :  { %v1271_v62 = vpop.permute.xlu1 %1270  ;;  %4538 = vset.pattern.permute.xlu0 %v7755_v59  ;;  %4539 = vset.pattern.permute.xlu1 %v7755_v59 }
 0x1f1   :  { %v1269_v61 = vpop.permute.xlu0 %1268 }
 0x1f2   :  { %1472 = vrot.lane.b32.xlu1 %v5945_v32, %s4717_s25  ;;  %v1542_v23 = vsel %vm1500_vm15, %v1269_v61, %v1271_v62 }
 0x1f3   :  { %1470 = vrot.lane.b32.xlu0 %v7904_v13, %s4717_s25  ;;  %2075 = vmatprep.subr.bf16.mxu0 %v1542_v23  ;;  %v7910_v23 = vld [vmem:[#allocation42_spill] sm:$0xff]  ;;  %v7911_v13 = vld [vmem:[#allocation43_spill] sm:$0xff] }
 0x1f4   :  { %v5952_v33 = vpop.permute.xlu1 %1274 }
 0x1f5   :  { %7905 = vst [vmem:[#allocation15_spill] sm:$0xff] %v5952_v33  ;;  %v1273_v34 = vpop.permute.xlu0 %1272 }
 0x1f6   :  { %1484 = vrot.lane.b32.xlu1 %v7906_v54, %s4717_s25  ;;  %v1544_v43 = vsel %vm1500_vm15, %v1273_v34, %v5952_v33  ;;  %v1543_v0 = vsel %vm1500_vm15, %v1271_v62, %v1273_v34  ;;  %v5981_v54 = vld [vmem:[%s7695_s0 + $0x1c] ss:$36 sps:$4 sm:$0xff]  }
 0x1f7   :  { %1464 = vrot.lane.b32.xlu0 %v7907_v58, %s4717_s25  ;;  %2319 = vmatprep.subr.bf16.mxu1 %v1544_v43  ;;  %v5988_v43 = vld [vmem:[%s7695_s0 + $0x18] ss:$36 sps:$4 sm:$0xff]  }
 0x1f8   :  { %2320 = vmatpush1.bf16.msra.mxu1 %v1543_v0  ;;  %v5961_v30 = vpop.permute.xlu1 %652 }
 0x1f9   :  { %v1267_v50 = vpop.permute.xlu0 %1266 }
 0x1fa   :  { %v1541_v52 = vsel %vm1500_vm15, %v1267_v50, %v1269_v61  ;;  %1488 = vrot.lane.b32.xlu1 %v7908_v27, %s4717_s25  ;;  %v5975_v61 = vsel %vm660_vm7, %v7911_v13, %v5961_v30  ;;  %v6000_v27 = vld [vmem:[%s7695_s0 + $0x60] ss:$36 sps:$4 sm:$0xff]  }
 0x1fb   :  { %1486 = vrot.lane.b32.xlu0 %v7909_v28, %s4717_s25  ;;  %2076 = vmatpush1.bf16.msra.mxu0 %v1541_v52  ;;  %v6007_v28 = vld [vmem:[%s7695_s0 + $0x20] ss:$36 sps:$4 sm:$0xff]  }
 0x1fc   :  { %v1289_v62 = vpop.permute.xlu1 %1288 }
 0x1fd   :  { %v1287_v18 = vpop.permute.xlu0 %1286 }
 0x1fe   :  { %1482 = vrot.lane.b32.xlu1 %v7910_v23, %s4717_s25  ;;  %v1550_v34 = vsel %vm1500_vm15, %v1287_v18, %v1289_v62 }
 0x1ff   :  { %1490 = vrot.lane.b32.xlu0 %v5975_v61, %s4717_s25  ;;  %2077 = vmatprep.subr.bf16.mxu0 %v1550_v34 }
 0x200   :  { %v5990_v0 = vpop.permute.xlu1 %1292 }
 0x201   :  { %7912 = vst [vmem:[#allocation13_spill] sm:$0xff] %v5990_v0  ;;  %v1291_v58 = vpop.permute.xlu0 %1290 }
 0x202   :  { %155 = vrot.lane.b32.xlu1 %v5981_v54, %s4702_s9  ;;  %v1552_v50 = vsel %vm1500_vm15, %v1291_v58, %v5990_v0  ;;  %v1551_v52 = vsel %vm1500_vm15, %v1289_v62, %v1291_v58  ;;  %v6015_v62 = vld [vmem:[%s7695_s0 + $0x68] ss:$36 sps:$4 sm:$0xff]  }
 0x203   :  { %153 = vrot.lane.b32.xlu0 %v5988_v43, %s4702_s9  ;;  %2321 = vmatprep.subr.bf16.mxu1 %v1552_v50  ;;  %v6022_v58 = vld [vmem:[%s7695_s0 + $0x64] ss:$36 sps:$4 sm:$0xff]  }
 0x204   :  { %2322 = vmatpush1.bf16.msra.mxu1 %v1551_v52  ;;  %v1305_v23 = vpop.permute.xlu1 %1304 }
 0x205   :  { %v1285_v13 = vpop.permute.xlu0 %1284 }
 0x206   :  { %v1549_v34 = vsel %vm1500_vm15, %v1285_v13, %v1287_v18  ;;  %171 = vrot.lane.b32.xlu1 %v6000_v27, %s4702_s9 }
 0x207   :  { %157 = vrot.lane.b32.xlu0 %v6007_v28, %s4702_s9  ;;  %2078 = vmatpush1.bf16.msra.mxu0 %v1549_v34 }
 0x208   :  { %v1309_v50 = vpop.permute.xlu1 %1308 }
 0x209   :  { %v1307_v52 = vpop.permute.xlu0 %1306 }
 0x20a   :  { %175 = vrot.lane.b32.xlu1 %v6015_v62, %s4702_s9  ;;  %v1558_v18 = vsel %vm1500_vm15, %v1305_v23, %v1307_v52  ;;  %v1559_v33 = vsel %vm1500_vm15, %v1307_v52, %v1309_v50 }
 0x20b   :  { %173 = vrot.lane.b32.xlu0 %v6022_v58, %s4702_s9  ;;  %2079 = vmatprep.subr.bf16.mxu0 %v1558_v18 }
 0x20c   :  { %v1303_v13 = vpop.permute.xlu1 %1302 }
 0x20d   :  { %v1557_v59 = vsel %vm1500_vm15, %v1303_v13, %v1305_v23  ;;  %v6030_v34 = vpop.permute.xlu0 %1310 }
 0x20e   :  { %7913 = vst [vmem:[#allocation12_spill] sm:$0xff] %v6030_v34  ;;  %224 = vrot.lane.b32.xlu1 %v5981_v54, %s4703_s26  ;;  %2080 = vmatpush1.bf16.msra.mxu0 %v1557_v59  ;;  %v1560_v0 = vsel %vm1500_vm15, %v1309_v50, %v6030_v34 }
 0x20f   :  { %222 = vrot.lane.b32.xlu0 %v5988_v43, %s4703_s26  ;;  %2323 = vmatprep.subr.bf16.mxu1 %v1560_v0 }
 0x210   :  { %2324 = vmatpush1.bf16.msra.mxu1 %v1559_v33  ;;  %v1325_v18 = vpop.permute.xlu1 %1324 }
 0x211   :  { %v1323_v16 = vpop.permute.xlu0 %1322 }
 0x212   :  { %240 = vrot.lane.b32.xlu1 %v6000_v27, %s4703_s26  ;;  %v1566_v23 = vsel %vm1500_vm15, %v1323_v16, %v1325_v18 }
 0x213   :  { %226 = vrot.lane.b32.xlu0 %v6007_v28, %s4703_s26  ;;  %2081 = vmatprep.subr.bf16.mxu0 %v1566_v23 }
 0x214   :  { %v6044_v59 = vpop.permute.xlu1 %1328 }
 0x215   :  { %7914 = vst [vmem:[#allocation19_spill] sm:$0xff] %v6044_v59  ;;  %v1327_v13 = vpop.permute.xlu0 %1326 }
 0x216   :  { %244 = vrot.lane.b32.xlu1 %v6015_v62, %s4703_s26  ;;  %v1568_v33 = vsel %vm1500_vm15, %v1327_v13, %v6044_v59  ;;  %v1567_v0 = vsel %vm1500_vm15, %v1325_v18, %v1327_v13 }
 0x217   :  { %242 = vrot.lane.b32.xlu0 %v6022_v58, %s4703_s26  ;;  %2325 = vmatprep.subr.bf16.mxu1 %v1568_v33 }
 0x218   :  { %2326 = vmatpush1.bf16.msra.mxu1 %v1567_v0  ;;  %v1341_v50 = vpop.permute.xlu1 %1340 }
 0x219   :  { %v1321_v52 = vpop.permute.xlu0 %1320 }
 0x21a   :  { %v1565_v23 = vsel %vm1500_vm15, %v1321_v52, %v1323_v16  ;;  %293 = vrot.lane.b32.xlu1 %v5981_v54, %s4704_s27 }
 0x21b   :  { %291 = vrot.lane.b32.xlu0 %v5988_v43, %s4704_s27  ;;  %2082 = vmatpush1.bf16.msra.mxu0 %v1565_v23 }
 0x21c   :  { %v1345_v34 = vpop.permute.xlu1 %1344 }
 0x21d   :  { %v1343_v59 = vpop.permute.xlu0 %1342 }
 0x21e   :  { %309 = vrot.lane.b32.xlu1 %v6000_v27, %s4704_s27  ;;  %v1574_v18 = vsel %vm1500_vm15, %v1341_v50, %v1343_v59  ;;  %v1575_v52 = vsel %vm1500_vm15, %v1343_v59, %v1345_v34 }
 0x21f   :  { %295 = vrot.lane.b32.xlu0 %v6007_v28, %s4704_s27  ;;  %2083 = vmatprep.subr.bf16.mxu0 %v1574_v18 }
 0x220   :  { %v1339_v13 = vpop.permute.xlu1 %1338 }
 0x221   :  { %v1573_v16 = vsel %vm1500_vm15, %v1339_v13, %v1341_v50  ;;  %v6064_v33 = vpop.permute.xlu0 %1346 }
 0x222   :  { %7915 = vst [vmem:[#allocation16_spill] sm:$0xff] %v6064_v33  ;;  %313 = vrot.lane.b32.xlu1 %v6015_v62, %s4704_s27  ;;  %2084 = vmatpush1.bf16.msra.mxu0 %v1573_v16  ;;  %v1576_v0 = vsel %vm1500_vm15, %v1345_v34, %v6064_v33 }
 0x223   :  { %311 = vrot.lane.b32.xlu0 %v6022_v58, %s4704_s27  ;;  %2327 = vmatprep.subr.bf16.mxu1 %v1576_v0 }
 0x224   :  { %2328 = vmatpush1.bf16.msra.mxu1 %v1575_v52  ;;  %v1361_v23 = vpop.permute.xlu1 %1360 }
 0x225   :  { %v1359_v18 = vpop.permute.xlu0 %1358 }
 0x226   :  { %362 = vrot.lane.b32.xlu1 %v5981_v54, %s4705_s28  ;;  %v1582_v50 = vsel %vm1500_vm15, %v1359_v18, %v1361_v23 }
 0x227   :  { %360 = vrot.lane.b32.xlu0 %v5988_v43, %s4705_s28  ;;  %2085 = vmatprep.subr.bf16.mxu0 %v1582_v50 }
 0x228   :  { %v6078_v13 = vpop.permute.xlu1 %1364 }
 0x229   :  { %7916 = vst [vmem:[#allocation17_spill] sm:$0xff] %v6078_v13  ;;  %v1363_v16 = vpop.permute.xlu0 %1362 }
 0x22a   :  { %378 = vrot.lane.b32.xlu1 %v6000_v27, %s4705_s28  ;;  %v1584_v34 = vsel %vm1500_vm15, %v1363_v16, %v6078_v13  ;;  %v1583_v59 = vsel %vm1500_vm15, %v1361_v23, %v1363_v16 }
 0x22b   :  { %364 = vrot.lane.b32.xlu0 %v6007_v28, %s4705_s28  ;;  %2329 = vmatprep.subr.bf16.mxu1 %v1584_v34 }
 0x22c   :  { %2330 = vmatpush1.bf16.msra.mxu1 %v1583_v59  ;;  %v1377_v0 = vpop.permute.xlu1 %1376 }
 0x22d   :  { %v1357_v52 = vpop.permute.xlu0 %1356 }
 0x22e   :  { %v1581_v50 = vsel %vm1500_vm15, %v1357_v52, %v1359_v18  ;;  %382 = vrot.lane.b32.xlu1 %v6015_v62, %s4705_s28 }
 0x22f   :  { %380 = vrot.lane.b32.xlu0 %v6022_v58, %s4705_s28  ;;  %2086 = vmatpush1.bf16.msra.mxu0 %v1581_v50 }
 0x230   :  { %v1381_v33 = vpop.permute.xlu1 %1380 }
 0x231   :  { %v1379_v13 = vpop.permute.xlu0 %1378 }
 0x232   :  { %431 = vrot.lane.b32.xlu1 %v5981_v54, %s4706_s29  ;;  %v1590_v23 = vsel %vm1500_vm15, %v1377_v0, %v1379_v13  ;;  %v1591_v52 = vsel %vm1500_vm15, %v1379_v13, %v1381_v33 }
 0x233   :  { %429 = vrot.lane.b32.xlu0 %v5988_v43, %s4706_s29  ;;  %2087 = vmatprep.subr.bf16.mxu0 %v1590_v23 }
 0x234   :  { %v1375_v16 = vpop.permute.xlu1 %1374 }
 0x235   :  { %v1589_v18 = vsel %vm1500_vm15, %v1375_v16, %v1377_v0  ;;  %v6098_v34 = vpop.permute.xlu0 %1382 }
 0x236   :  { %7917 = vst [vmem:[#allocation18_spill] sm:$0xff] %v6098_v34  ;;  %447 = vrot.lane.b32.xlu1 %v6000_v27, %s4706_s29  ;;  %2088 = vmatpush1.bf16.msra.mxu0 %v1589_v18  ;;  %v1592_v59 = vsel %vm1500_vm15, %v1381_v33, %v6098_v34 }
 0x237   :  { %433 = vrot.lane.b32.xlu0 %v6007_v28, %s4706_s29  ;;  %2331 = vmatprep.subr.bf16.mxu1 %v1592_v59 }
 0x238   :  { %2332 = vmatpush1.bf16.msra.mxu1 %v1591_v52  ;;  %v1397_v50 = vpop.permute.xlu1 %1396 }
 0x239   :  { %v1395_v23 = vpop.permute.xlu0 %1394 }
 0x23a   :  { %451 = vrot.lane.b32.xlu1 %v6015_v62, %s4706_s29  ;;  %v1598_v0 = vsel %vm1500_vm15, %v1395_v23, %v1397_v50 }
 0x23b   :  { %449 = vrot.lane.b32.xlu0 %v6022_v58, %s4706_s29  ;;  %2089 = vmatprep.subr.bf16.mxu0 %v1598_v0 }
 0x23c   :  { %v6112_v16 = vpop.permute.xlu1 %1400 }
 0x23d   :  { %7918 = vst [vmem:[#allocation21_spill] sm:$0xff] %v6112_v16  ;;  %v1399_v18 = vpop.permute.xlu0 %1398 }
 0x23e   :  { %500 = vrot.lane.b32.xlu1 %v5981_v54, %s4707_s30  ;;  %v1600_v33 = vsel %vm1500_vm15, %v1399_v18, %v6112_v16  ;;  %v1599_v13 = vsel %vm1500_vm15, %v1397_v50, %v1399_v18 }
 0x23f   :  { %498 = vrot.lane.b32.xlu0 %v5988_v43, %s4707_s30  ;;  %2333 = vmatprep.subr.bf16.mxu1 %v1600_v33 }
 0x240   :  { %2334 = vmatpush1.bf16.msra.mxu1 %v1599_v13  ;;  %v1413_v59 = vpop.permute.xlu1 %1412 }
 0x241   :  { %v1393_v52 = vpop.permute.xlu0 %1392 }
 0x242   :  { %v1597_v0 = vsel %vm1500_vm15, %v1393_v52, %v1395_v23  ;;  %516 = vrot.lane.b32.xlu1 %v6000_v27, %s4707_s30 }
 0x243   :  { %502 = vrot.lane.b32.xlu0 %v6007_v28, %s4707_s30  ;;  %2090 = vmatpush1.bf16.msra.mxu0 %v1597_v0 }
 0x244   :  { %v1417_v34 = vpop.permute.xlu1 %1416 }
 0x245   :  { %v1415_v16 = vpop.permute.xlu0 %1414 }
 0x246   :  { %520 = vrot.lane.b32.xlu1 %v6015_v62, %s4707_s30  ;;  %v1606_v50 = vsel %vm1500_vm15, %v1413_v59, %v1415_v16  ;;  %v1607_v52 = vsel %vm1500_vm15, %v1415_v16, %v1417_v34 }
 0x247   :  { %518 = vrot.lane.b32.xlu0 %v6022_v58, %s4707_s30  ;;  %2091 = vmatprep.subr.bf16.mxu0 %v1606_v50 }
 0x248   :  { %v1411_v18 = vpop.permute.xlu1 %1410 }
 0x249   :  { %v1605_v23 = vsel %vm1500_vm15, %v1411_v18, %v1413_v59  ;;  %v6132_v33 = vpop.permute.xlu0 %1418 }
 0x24a   :  { %7919 = vst [vmem:[#allocation20_spill] sm:$0xff] %v6132_v33  ;;  %569 = vrot.lane.b32.xlu1 %v5981_v54, %s4708_s10  ;;  %2092 = vmatpush1.bf16.msra.mxu0 %v1605_v23  ;;  %v1608_v13 = vsel %vm1500_vm15, %v1417_v34, %v6132_v33 }
 0x24b   :  { %567 = vrot.lane.b32.xlu0 %v5988_v43, %s4708_s10  ;;  %2335 = vmatprep.subr.bf16.mxu1 %v1608_v13 }
 0x24c   :  { %2336 = vmatpush1.bf16.msra.mxu1 %v1607_v52  ;;  %v1433_v0 = vpop.permute.xlu1 %1432 }
 0x24d   :  { %v1431_v50 = vpop.permute.xlu0 %1430 }
 0x24e   :  { %585 = vrot.lane.b32.xlu1 %v6000_v27, %s4708_s10  ;;  %v1614_v59 = vsel %vm1500_vm15, %v1431_v50, %v1433_v0 }
 0x24f   :  { %571 = vrot.lane.b32.xlu0 %v6007_v28, %s4708_s10  ;;  %2093 = vmatprep.subr.bf16.mxu0 %v1614_v59 }
 0x250   :  { %v6146_v18 = vpop.permute.xlu1 %1436 }
 0x251   :  { %7920 = vst [vmem:[#allocation24_spill] sm:$0xff] %v6146_v18  ;;  %v1435_v23 = vpop.permute.xlu0 %1434 }
 0x252   :  { %589 = vrot.lane.b32.xlu1 %v6015_v62, %s4708_s10  ;;  %v1616_v34 = vsel %vm1500_vm15, %v1435_v23, %v6146_v18  ;;  %v1615_v16 = vsel %vm1500_vm15, %v1433_v0, %v1435_v23 }
 0x253   :  { %587 = vrot.lane.b32.xlu0 %v6022_v58, %s4708_s10  ;;  %2337 = vmatprep.subr.bf16.mxu1 %v1616_v34 }
 0x254   :  { %2338 = vmatpush1.bf16.msra.mxu1 %v1615_v16  ;;  %v1449_v13 = vpop.permute.xlu1 %1448  ;;  %v4582_v16 = vld [vmem:[%s7696_s1 + $0x10] ss:$28 sps:$4 sm:$0xff]  }
 0x255   :  { %v1429_v52 = vpop.permute.xlu0 %1428 }
 0x256   :  { %v1613_v59 = vsel %vm1500_vm15, %v1429_v52, %v1431_v50  ;;  %638 = vrot.lane.b32.xlu1 %v5981_v54, %s4709_s13 }
 0x257   :  { %636 = vrot.lane.b32.xlu0 %v5988_v43, %s4709_s13  ;;  %2094 = vmatpush1.bf16.msra.mxu0 %v1613_v59  ;;  %v4585_v59 = vld [vmem:[%s7696_s1 + $0x4c] ss:$28 sps:$4 sm:$0xff]  }
 0x258   :  { %v1453_v33 = vpop.permute.xlu1 %1452 }
 0x259   :  { %v1451_v18 = vpop.permute.xlu0 %1450 }
 0x25a   :  { %654 = vrot.lane.b32.xlu1 %v6000_v27, %s4709_s13  ;;  %v1622_v0 = vsel %vm1500_vm15, %v1449_v13, %v1451_v18 }
 0x25b   :  { %640 = vrot.lane.b32.xlu0 %v6007_v28, %s4709_s13  ;;  %2095 = vmatprep.subr.bf16.mxu0 %v1622_v0 }
 0x25c   :  { %v1447_v23 = vpop.permute.xlu1 %1446 }
 0x25d   :  { %v1621_v50 = vsel %vm1500_vm15, %v1447_v23, %v1449_v13  ;;  %v6166_v34 = vpop.permute.xlu0 %1454  ;;  %v1623_v13 = vsel %vm1500_vm15, %v1451_v18, %v1453_v33 }
 0x25e   :  { %7921 = vst [vmem:[#allocation25_spill] sm:$0xff] %v6166_v34  ;;  %658 = vrot.lane.b32.xlu1 %v6015_v62, %s4709_s13  ;;  %2096 = vmatpush1.bf16.msra.mxu0 %v1621_v50  ;;  %v1624_v52 = vsel %vm1500_vm15, %v1453_v33, %v6166_v34  ;;  %v6187_v34 = vld [vmem:[%s7695_s0 + $0x14] ss:$36 sps:$4 sm:$0xff]   ;;  %v1807_v33 = vld [vmem:[%s7696_s1 + $0x80] sm:$0xff] }
 0x25f   :  { %656 = vrot.lane.b32.xlu0 %v6022_v58, %s4709_s13  ;;  %2339 = vmatprep.subr.bf16.mxu1 %v1624_v52  ;;  %v6204_v8 = vcombine.high %v1807_v33, %v1807_v33 }
 0x260   :  { %2340 = vmatpush1.bf16.msra.mxu1 %v1623_v13  ;;  %v1469_v0 = vpop.permute.xlu1 %1468  ;;  %v4587_v13 = vld [vmem:[%s7696_s1 + $0x48] ss:$28 sps:$4 sm:$0xff]  }
 0x261   :  { %v1467_v23 = vpop.permute.xlu0 %1466  ;;  %2098 = vmatmul.mubr.bf16.vlgmr.msra.gmra.mrb[0].mxu0 %v4582_v16  ;;  %7923 = vst [vmem:[#allocation22_spill] sm:$0xff] %v6204_v8 }
 0x262   :  { %705 = vrot.lane.b32.xlu1 %v5988_v43, %s4710_s14  ;;  %v1630_v50 = vsel %vm1500_vm15, %v1467_v23, %v1469_v0  ;;  %2107 = vmatprep.mubr.bf16.mxu0 %v4585_v59 }
 0x263   :  { %703 = vrot.lane.b32.xlu0 %v6187_v34, %s4710_s14  ;;  %2126 = vmatprep.subr.bf16.mxu0 %v1630_v50 }
 0x264   :  { %2342 = vmatmul.mubr.bf16.vlgmr.msra.gmra.mrb[0].mxu1 %v4582_v16  ;;  %v6194_v18 = vpop.permute.xlu1 %1472 }
 0x265   :  { %7922 = vst [vmem:[#allocation23_spill] sm:$0xff] %v6194_v18  ;;  %v1471_v52 = vpop.permute.xlu0 %1470  ;;  %2351 = vmatprep.mubr.bf16.mxu1 %v4585_v59 }
 0x266   :  { %709 = vrot.lane.b32.xlu1 %v6007_v28, %s4710_s14  ;;  %v1632_v39 = vsel %vm1500_vm15, %v1471_v52, %v6194_v18  ;;  %v1631_v50 = vsel %vm1500_vm15, %v1469_v0, %v1471_v52  ;;  %v6215_v0 = vld [vmem:[%s7695_s0 + $0x5c] ss:$36 sps:$4 sm:$0xff]  }
 0x267   :  { %707 = vrot.lane.b32.xlu0 %v5981_v54, %s4710_s14  ;;  %2370 = vmatprep.subr.bf16.mxu1 %v1632_v39 }
 0x268   :  { %2371 = vmatpush1.bf16.msra.mxu1 %v1631_v50  ;;  %v1485_v16 = vpop.permute.xlu1 %1484  ;;  %v6219_v50 = vcombine.low %v1807_v33, %v1807_v33 }
 0x269   :  { %v1465_v10 = vpop.permute.xlu0 %1464  ;;  %2108 = vmatmul.mubr.bf16.gmra.mrb[4].mxu0 %v4587_v13 }
 0x26a   :  { %v1629_v59 = vsel %vm1500_vm15, %v1465_v10, %v1467_v23  ;;  %723 = vrot.lane.b32.xlu1 %v6000_v27, %s4710_s14  ;;  %2117 = vmatprep.mubr.bf16.mxu0 %v6204_v8  ;;  %7924 = vst [vmem:[#allocation29_spill] sm:$0xff] %v6219_v50 }
 0x26b   :  { %721 = vrot.lane.b32.xlu0 %v6215_v0, %s4710_s14  ;;  %2127 = vmatpush1.bf16.msra.mxu0 %v1629_v59 }
 0x26c   :  { %2352 = vmatmul.mubr.bf16.gmra.mrb[4].mxu1 %v4587_v13  ;;  %v1489_v39 = vpop.permute.xlu1 %1488 }
 0x26d   :  { %v1487_v52 = vpop.permute.xlu0 %1486  ;;  %2361 = vmatprep.mubr.bf16.mxu1 %v6204_v8 }
 0x26e   :  { %727 = vrot.lane.b32.xlu1 %v6015_v62, %s4710_s14  ;;  %v1638_v10 = vsel %vm1500_vm15, %v1485_v16, %v1487_v52  ;;  %v1639_v13 = vsel %vm1500_vm15, %v1487_v52, %v1489_v39 }
 0x26f   :  { %725 = vrot.lane.b32.xlu0 %v6022_v58, %s4710_s14  ;;  %2128 = vmatprep.subr.bf16.mxu0 %v1638_v10  ;;  %v7926_v10 = vmov 0  }
 0x270   :  { %v1483_v23 = vpop.permute.xlu1 %1482 }
 0x271   :  { %v1637_v18 = vsel %vm1500_vm15, %v1483_v23, %v1485_v16  ;;  %v6228_v59 = vpop.permute.xlu0 %1490  ;;  %2118 = vmatmul.mubr.bf16.gmra.mrb[8].mxu0 %v6219_v50 }
 0x272   :  { %7925 = vst [vmem:[#allocation26_spill] sm:$0xff] %v6228_v59  ;;  %774 = vrot.lane.b32.xlu1 %v5988_v43, %s4711_s17  ;;  %2129 = vmatpush1.bf16.msra.mxu0 %v1637_v18  ;;  %v1640_v33 = vsel %vm1500_vm15, %v1489_v39, %v6228_v59  ;;  %v4590_v18 = vld [vmem:[%s7696_s1 + $0x18] ss:$28 sps:$4 sm:$0xff]  }
 0x273   :  { %772 = vrot.lane.b32.xlu0 %v6187_v34, %s4711_s17  ;;  %2372 = vmatprep.subr.bf16.mxu1 %v1640_v33  ;;  %v4661_v33 = vld [vmem:[%s7695_s0 + $0x10] ss:$36 sps:$4 sm:$0xff]   ;;  %v4662_v59 = vld [vmem:[%s7695_s0 + $0x58] ss:$36 sps:$4 sm:$0xff]  }
 0x274   :  { %2362 = vmatmul.mubr.bf16.gmra.mrb[8].mxu1 %v6219_v50  ;;  %v156_v16 = vpop.permute.xlu1 %155  ;;  %2158 = vmatprep.mubr.bf16.mxu0 %v7926_v10 }
 0x275   :  { %2373 = vmatpush1.bf16.msra.mxu1 %v1639_v13  ;;  %v154_v23 = vpop.permute.xlu0 %153  ;;  %2431 = vmatprep.subr.bf16.mxu0 %v6187_v34 }
 0x276   :  { %778 = vrot.lane.b32.xlu1 %v6007_v28, %s4711_s17  ;;  %2402 = vmatprep.mubr.bf16.mxu1 %v7926_v10  ;;  %v6301_v2 = vsel %vm177_vm0, %v154_v23, %v156_v16 }
 0x277   :  { %776 = vrot.lane.b32.xlu0 %v5981_v54, %s4711_s17  ;;  %2675 = vmatprep.subr.bf16.mxu1 %v5981_v54 }
 0x278   :  { %v172_v39 = vpop.permute.xlu1 %171 }
 0x279   :  { %v6250_v52 = vpop.permute.xlu0 %157  ;;  %3978 = vmatmul.mubr.msk.bf16.vlgmr.msra.gmra.mrb[0].mxu0 %vm1933_vm14, %v4590_v18 }
 0x27a   :  { %2432 = vmatpush1.bf16.msra.mxu0 %v4661_v33  ;;  %792 = vrot.lane.b32.xlu1 %v6000_v27, %s4711_s17  ;;  %v4591_v33 = vld [vmem:[%s7696_s1 + $0x50] ss:$28 sps:$4 sm:$0xff]  }
 0x27b   :  { %790 = vrot.lane.b32.xlu0 %v6215_v0, %s4711_s17  ;;  %2433 = vmatprep.subr.bf16.mxu0 %v6215_v0 }
 0x27c   :  { %3981 = vmatmul.mubr.msk.bf16.vlgmr.msra.gmra.mrb[0].mxu1 %vm1933_vm14, %v4590_v18  ;;  %v6262_v13 = vpop.permute.xlu1 %175  ;;  %2168 = vmatprep.mubr.bf16.mxu0 %v7926_v10  ;;  %v6280_v18 = vsel %vm177_vm0, %v5444_v42, %v154_v23  ;;  %v6297_v42 = vsel %vm177_vm0, %v5475_v9, %v172_v39  ;;  %v4592_v9 = vld [vmem:[%s7696_s1 + $0x88] ss:$0 sps:$4 sm:$0xff]  }
 0x27d   :  { %2676 = vmatpush1.bf16.msra.mxu1 %v5988_v43  ;;  %v174_v50 = vpop.permute.xlu0 %173  ;;  %2412 = vmatprep.mubr.bf16.mxu1 %v7926_v10 }
 0x27e   :  { %2434 = vmatpush1.bf16.msra.mxu0 %v4662_v59  ;;  %2677 = vmatprep.subr.bf16.mxu1 %v6022_v58  ;;  %v6286_v59 = vsel %vm177_vm0, %v156_v16, %v6250_v52 }
 0x27f   :  { %796 = vrot.lane.b32.xlu1 %v6015_v62, %s4711_s17  ;;  %794 = vrot.lane.b32.xlu0 %v6022_v58, %s4711_s17 }
 0x280   :  { %2435 = vmatprep.subr.bf16.mxu0 %v6280_v18  ;;  %v225_v8 = vpop.permute.xlu1 %224 }
 0x281   :  { %2678 = vmatpush1.bf16.msra.mxu1 %v6000_v27  ;;  %v223_v12 = vpop.permute.xlu0 %222  ;;  %3979 = vmatmul.mubr.msk.bf16.gmra.mrb[4].mxu0 %vm1933_vm14, %v4591_v33 }
 0x282   :  { %2679 = vmatprep.subr.bf16.mxu1 %v6286_v59  ;;  %2436 = vmatpush1.bf16.msra.mxu0 %v5602_v1  ;;  %v6307_v1 = vsel %vm177_vm0, %v174_v50, %v6262_v13  ;;  %v6323_v16 = vsel %vm246_vm1, %v5525_v29, %v223_v12 }
 0x283   :  { %843 = vrot.lane.b32.xlu1 %v5988_v43, %s4712_s20  ;;  %841 = vrot.lane.b32.xlu0 %v6187_v34, %s4712_s20 }
 0x284   :  { %2437 = vmatprep.subr.bf16.mxu0 %v6297_v42  ;;  %v241_v24 = vpop.permute.xlu1 %240  ;;  %3982 = vmatmul.mubr.msk.bf16.gmra.mrb[4].mxu1 %vm1933_vm14, %v4591_v33  ;;  %v6331_v33 = vsel %vm177_vm0, %v172_v39, %v174_v50  ;;  %v6354_v39 = vsel %vm246_vm1, %v223_v12, %v225_v8  ;;  %vm7967_vm0 = vcmask 924672  }
 0x285   :  { %2680 = vmatpush1.bf16.msra.mxu1 %v6301_v2  ;;  %v6309_v4 = vpop.permute.xlu0 %226  ;;  %2422 = vmatprep.mubr.bf16.mxu1 %v7926_v10  ;;  %v6346_v29 = vsel %vm246_vm1, %v5559_v57, %v241_v24  ;;  %v4663_v57 = vld [vmem:[%s7696_s1 + $0x4] ss:$28 sps:$4 sm:$0xff]  }
 0x286   :  { %2681 = vmatprep.subr.bf16.mxu1 %v6307_v1  ;;  %2438 = vmatpush1.bf16.msra.mxu0 %v5630_v19  ;;  %v6327_v23 = vsel %vm246_vm1, %v225_v8, %v6309_v4 }
 0x287   :  { %847 = vrot.lane.b32.xlu1 %v6007_v28, %s4712_s20  ;;  %845 = vrot.lane.b32.xlu0 %v5981_v54, %s4712_s20 }
 0x288   :  { %2439 = vmatprep.subr.bf16.mxu0 %v6323_v16  ;;  %v6333_v19 = vpop.permute.xlu1 %244  ;;  %2178 = vmatprep.mubr.bf16.mxu0 %v7926_v10 }
 0x289   :  { %2682 = vmatpush1.bf16.msra.mxu1 %v6331_v33  ;;  %v243_v17 = vpop.permute.xlu0 %242  ;;  %3980 = vmatmul.mubr.msk.bf16.gmra.mrb[8].mxu0 %vm1933_vm14, %v4592_v9 }
 0x28a   :  { %2683 = vmatprep.subr.bf16.mxu1 %v6327_v23  ;;  %2440 = vmatpush1.bf16.msra.mxu0 %v5645_v21  ;;  %v6350_v50 = vsel %vm246_vm1, %v243_v17, %v6333_v19  ;;  %v6373_v12 = vsel %vm246_vm1, %v241_v24, %v243_v17  ;;  %vm7968_vm1 = vmmov %vm7967_vm0 }
 0x28b   :  { %861 = vrot.lane.b32.xlu1 %v6000_v27, %s4712_s20  ;;  %859 = vrot.lane.b32.xlu0 %v6215_v0, %s4712_s20 }
 0x28c   :  { %2441 = vmatprep.subr.bf16.mxu0 %v6346_v29  ;;  %v294_v21 = vpop.permute.xlu1 %293  ;;  %3983 = vmatmul.mubr.msk.bf16.gmra.mrb[8].mxu1 %vm1933_vm14, %v4592_v9 }
 0x28d   :  { %2684 = vmatpush1.bf16.msra.mxu1 %v6354_v39  ;;  %v292_v10 = vpop.permute.xlu0 %291  ;;  %2463 = vmatprep.mubr.bf16.mxu0 %v4663_v57 }
 0x28e   :  { %2685 = vmatprep.subr.bf16.mxu1 %v6350_v50  ;;  %2442 = vmatpush1.bf16.msra.mxu0 %v5671_v38  ;;  %v6365_v11 = vsel %vm315_vm2, %v5577_v55, %v292_v10  ;;  %v6394_v17 = vsel %vm315_vm2, %v292_v10, %v294_v21 }
 0x28f   :  { %865 = vrot.lane.b32.xlu1 %v6015_v62, %s4712_s20  ;;  %863 = vrot.lane.b32.xlu0 %v6022_v58, %s4712_s20  ;;  %s7935_s20 = smov 114  }
 0x290   :  { %2443 = vmatprep.subr.bf16.mxu0 %v6365_v11  ;;  %v310_v8 = vpop.permute.xlu1 %309  ;;  %2707 = vmatprep.mubr.bf16.mxu1 %v4663_v57 }
 0x291   :  { %2686 = vmatpush1.bf16.msra.mxu1 %v6373_v12  ;;  %v6376_v38 = vpop.permute.xlu0 %295  ;;  %v6380_v55 = vsel %vm315_vm2, %v5595_v47, %v310_v8 }
 0x292   :  { %2444 = vmatpush1.bf16.msra.mxu0 %v5697_v44  ;;  %v6385_v9 = vsel %vm315_vm2, %v294_v21, %v6376_v38 }
 0x293   :  { %912 = vrot.lane.b32.xlu1 %v5988_v43, %s4713_s21  ;;  %910 = vrot.lane.b32.xlu0 %v6187_v34, %s4713_s21 }
 0x294   :  { %2445 = vmatprep.subr.bf16.mxu0 %v6380_v55  ;;  %2687 = vmatprep.subr.bf16.mxu1 %v6385_v9  ;;  %v6396_v47 = vpop.permute.xlu1 %313 }
 0x295   :  { %2688 = vmatpush1.bf16.msra.mxu1 %v6394_v17  ;;  %v312_v44 = vpop.permute.xlu0 %311 }
 0x296   :  { %2446 = vmatpush1.bf16.msra.mxu0 %v5725_v56  ;;  %v6402_v24 = vsel %vm315_vm2, %v312_v44, %v6396_v47  ;;  %v6405_v57 = vsel %vm315_vm2, %v310_v8, %v312_v44  ;;  %vm7970_vm2 = vmmov %vm7967_vm0 }
 0x297   :  { %916 = vrot.lane.b32.xlu1 %v6007_v28, %s4713_s21  ;;  %914 = vrot.lane.b32.xlu0 %v5981_v54, %s4713_s21 }
 0x298   :  { %2689 = vmatprep.subr.bf16.mxu1 %v6402_v24  ;;  %v363_v10 = vpop.permute.xlu1 %362 }
 0x299   :  { %2690 = vmatpush1.bf16.msra.mxu1 %v6405_v57  ;;  %v361_v21 = vpop.permute.xlu0 %360 }
 0x29a   :  { %v6415_v56 = vsel %vm384_vm3, %v5621_v5, %v361_v21 }
 0x29b   :  { %930 = vrot.lane.b32.xlu1 %v6000_v27, %s4713_s21  ;;  %928 = vrot.lane.b32.xlu0 %v6215_v0, %s4713_s21 }
 0x29c   :  { %2447 = vmatprep.subr.bf16.mxu0 %v6415_v56  ;;  %v379_v8 = vpop.permute.xlu1 %378 }
 0x29d   :  { %2448 = vmatpush1.bf16.msra.mxu0 %v5744_v25  ;;  %v6423_v44 = vpop.permute.xlu0 %364  ;;  %v6427_v49 = vsel %vm384_vm3, %v5652_v35, %v379_v8  ;;  %v6440_v25 = vsel %vm384_vm3, %v361_v21, %v363_v10 }
 0x29e   :  { %7927 = vst [vmem:[#allocation27_spill] sm:$0xff] %v6423_v44  ;;  %7928 = vst [vmem:[#allocation28_spill] sm:$0xff] %v6427_v49  ;;  %2449 = vmatprep.subr.bf16.mxu0 %v6427_v49  ;;  %v6432_v5 = vsel %vm384_vm3, %v363_v10, %v6423_v44 }
 0x29f   :  { %934 = vrot.lane.b32.xlu1 %v6015_v62, %s4713_s21  ;;  %932 = vrot.lane.b32.xlu0 %v6022_v58, %s4713_s21 }
 0x2a0   :  { %2691 = vmatprep.subr.bf16.mxu1 %v6432_v5  ;;  %v6442_v41 = vpop.permute.xlu1 %382 }
 0x2a1   :  { %2450 = vmatpush1.bf16.msra.mxu0 %v5773_v51  ;;  %2692 = vmatpush1.bf16.msra.mxu1 %v6440_v25  ;;  %v381_v35 = vpop.permute.xlu0 %380 }
 0x2a2   :  { %v6448_v49 = vsel %vm384_vm3, %v381_v35, %v6442_v41  ;;  %v6451_v44 = vsel %vm384_vm3, %v379_v8, %v381_v35  ;;  %vm7971_vm3 = vmmov %vm7967_vm0 }
 0x2a3   :  { %7929 = vst [vmem:[#allocation31_spill] sm:$0xff] %v6448_v49  ;;  %981 = vrot.lane.b32.xlu1 %v5988_v43, %s4714_s22  ;;  %979 = vrot.lane.b32.xlu0 %v6187_v34, %s4714_s22 }
 0x2a4   :  { %2693 = vmatprep.subr.bf16.mxu1 %v6448_v49  ;;  %v432_v10 = vpop.permute.xlu1 %431 }
 0x2a5   :  { %2694 = vmatpush1.bf16.msra.mxu1 %v6451_v44  ;;  %v430_v51 = vpop.permute.xlu0 %429 }
 0x2a6   :  { %v6461_v21 = vsel %vm453_vm4, %v5678_v46, %v430_v51 }
 0x2a7   :  { %7930 = vst [vmem:[#allocation30_spill] sm:$0xff] %v6461_v21  ;;  %985 = vrot.lane.b32.xlu1 %v6007_v28, %s4714_s22  ;;  %983 = vrot.lane.b32.xlu0 %v5981_v54, %s4714_s22 }
 0x2a8   :  { %2451 = vmatprep.subr.bf16.mxu0 %v6461_v21  ;;  %v448_v8 = vpop.permute.xlu1 %447 }
 0x2a9   :  { %2452 = vmatpush1.bf16.msra.mxu0 %v5789_v45  ;;  %v6469_v35 = vpop.permute.xlu0 %433  ;;  %v6473_v49 = vsel %vm453_vm4, %v5704_v53, %v448_v8  ;;  %v6486_v45 = vsel %vm453_vm4, %v430_v51, %v432_v10 }
 0x2aa   :  { %7931 = vst [vmem:[#allocation34_spill] sm:$0xff] %v6469_v35  ;;  %7932 = vst [vmem:[#allocation35_spill] sm:$0xff] %v6473_v49  ;;  %2453 = vmatprep.subr.bf16.mxu0 %v6473_v49  ;;  %v6478_v46 = vsel %vm453_vm4, %v432_v10, %v6469_v35 }
 0x2ab   :  { %999 = vrot.lane.b32.xlu1 %v6000_v27, %s4714_s22  ;;  %997 = vrot.lane.b32.xlu0 %v6215_v0, %s4714_s22 }
 0x2ac   :  { %2695 = vmatprep.subr.bf16.mxu1 %v6478_v46  ;;  %v6488_v21 = vpop.permute.xlu1 %451 }
 0x2ad   :  { %2454 = vmatpush1.bf16.msra.mxu0 %v5820_v26  ;;  %2696 = vmatpush1.bf16.msra.mxu1 %v6486_v45  ;;  %v450_v53 = vpop.permute.xlu0 %449 }
 0x2ae   :  { %v6494_v49 = vsel %vm453_vm4, %v450_v53, %v6488_v21  ;;  %v6497_v35 = vsel %vm453_vm4, %v448_v8, %v450_v53  ;;  %vm7974_vm4 = vmmov %vm7967_vm0 }
 0x2af   :  { %7933 = vst [vmem:[#allocation33_spill] sm:$0xff] %v6494_v49  ;;  %1003 = vrot.lane.b32.xlu1 %v6015_v62, %s4714_s22  ;;  %1001 = vrot.lane.b32.xlu0 %v6022_v58, %s4714_s22 }
 0x2b0   :  { %2697 = vmatprep.subr.bf16.mxu1 %v6494_v49  ;;  %v501_v10 = vpop.permute.xlu1 %500 }
 0x2b1   :  { %2698 = vmatpush1.bf16.msra.mxu1 %v6497_v35  ;;  %v499_v26 = vpop.permute.xlu0 %498 }
 0x2b2   :  { %v6507_v51 = vsel %vm522_vm5, %v5730_v63, %v499_v26 }
 0x2b3   :  { %7934 = vst [vmem:[#allocation32_spill] sm:$0xff] %v6507_v51  ;;  %1050 = vrot.lane.b32.xlu1 %v5988_v43, %s7935_s20  ;;  %1048 = vrot.lane.b32.xlu0 %v6187_v34, %s7935_s20 }
 0x2b4   :  { %2455 = vmatprep.subr.bf16.mxu0 %v6507_v51  ;;  %v517_v8 = vpop.permute.xlu1 %516 }
 0x2b5   :  { %2456 = vmatpush1.bf16.msra.mxu0 %v5835_v15  ;;  %v6515_v53 = vpop.permute.xlu0 %502  ;;  %v6519_v49 = vsel %vm522_vm5, %v5756_v20, %v517_v8  ;;  %v6532_v15 = vsel %vm522_vm5, %v499_v26, %v501_v10 }
 0x2b6   :  { %7936 = vst [vmem:[#allocation39_spill] sm:$0xff] %v6515_v53  ;;  %7937 = vst [vmem:[#allocation36_spill] sm:$0xff] %v6519_v49  ;;  %2457 = vmatprep.subr.bf16.mxu0 %v6519_v49  ;;  %v6524_v63 = vsel %vm522_vm5, %v501_v10, %v6515_v53 }
 0x2b7   :  { %1054 = vrot.lane.b32.xlu1 %v6007_v28, %s7935_s20  ;;  %1052 = vrot.lane.b32.xlu0 %v5981_v54, %s7935_s20 }
 0x2b8   :  { %2699 = vmatprep.subr.bf16.mxu1 %v6524_v63  ;;  %v6534_v51 = vpop.permute.xlu1 %520 }
 0x2b9   :  { %2458 = vmatpush1.bf16.msra.mxu0 %v5870_v40  ;;  %2700 = vmatpush1.bf16.msra.mxu1 %v6532_v15  ;;  %v519_v20 = vpop.permute.xlu0 %518 }
 0x2ba   :  { %v6540_v49 = vsel %vm522_vm5, %v519_v20, %v6534_v51  ;;  %v6543_v53 = vsel %vm522_vm5, %v517_v8, %v519_v20  ;;  %vm7975_vm5 = vmmov %vm7967_vm0 }
 0x2bb   :  { %7938 = vst [vmem:[#allocation37_spill] sm:$0xff] %v6540_v49  ;;  %1068 = vrot.lane.b32.xlu1 %v6000_v27, %s7935_s20  ;;  %1066 = vrot.lane.b32.xlu0 %v6215_v0, %s7935_s20 }
 0x2bc   :  { %2701 = vmatprep.subr.bf16.mxu1 %v6540_v49  ;;  %v570_v10 = vpop.permute.xlu1 %569 }
 0x2bd   :  { %2702 = vmatpush1.bf16.msra.mxu1 %v6543_v53  ;;  %v568_v40 = vpop.permute.xlu0 %567 }
 0x2be   :  { %v6553_v26 = vsel %vm591_vm6, %v5782_v48, %v568_v40 }
 0x2bf   :  { %7939 = vst [vmem:[#allocation38_spill] sm:$0xff] %v6553_v26  ;;  %1072 = vrot.lane.b32.xlu1 %v6015_v62, %s7935_s20  ;;  %1070 = vrot.lane.b32.xlu0 %v6022_v58, %s7935_s20 }
 0x2c0   :  { %2459 = vmatprep.subr.bf16.mxu0 %v6553_v26  ;;  %v586_v8 = vpop.permute.xlu1 %585 }
 0x2c1   :  { %2460 = vmatpush1.bf16.msra.mxu0 %v5896_v14  ;;  %v6561_v20 = vpop.permute.xlu0 %571  ;;  %v6565_v49 = vsel %vm591_vm6, %v5811_v37, %v586_v8  ;;  %v6578_v14 = vsel %vm591_vm6, %v568_v40, %v570_v10 }
 0x2c2   :  { %7940 = vst [vmem:[#allocation41_spill] sm:$0xff] %v6561_v20  ;;  %7941 = vst [vmem:[#allocation40_spill] sm:$0xff] %v6565_v49  ;;  %2461 = vmatprep.subr.bf16.mxu0 %v6565_v49  ;;  %v6570_v48 = vsel %vm591_vm6, %v570_v10, %v6561_v20 }
 0x2c3   :  { %1119 = vrot.lane.b32.xlu1 %v5988_v43, %s4716_s15  ;;  %1117 = vrot.lane.b32.xlu0 %v6187_v34, %s4716_s15 }
 0x2c4   :  { %2703 = vmatprep.subr.bf16.mxu1 %v6570_v48  ;;  %v6580_v26 = vpop.permute.xlu1 %589 }
 0x2c5   :  { %7942 = vst [vmem:[#allocation44_spill] sm:$0xff] %v6580_v26  ;;  %2462 = vmatpush1.bf16.msra.mxu0 %v5928_v36  ;;  %2704 = vmatpush1.bf16.msra.mxu1 %v6578_v14  ;;  %v588_v37 = vpop.permute.xlu0 %587  ;;  %v4664_v36 = vld [vmem:[%s7696_s1] ss:$28 sps:$4 sm:$0xff]  }
 0x2c6   :  { %v6586_v49 = vsel %vm591_vm6, %v588_v37, %v6580_v26  ;;  %v6589_v20 = vsel %vm591_vm6, %v586_v8, %v588_v37  ;;  %v4665_v8 = vld [vmem:[%s7696_s1 + $0x3c] ss:$28 sps:$4 sm:$0xff]   ;;  %vm7977_vm6 = vmmov %vm7967_vm0 }
 0x2c7   :  { %7943 = vst [vmem:[#allocation45_spill] sm:$0xff] %v6586_v49  ;;  %7944 = vst [vmem:[#allocation42_spill] sm:$0xff] %v6589_v20  ;;  %1123 = vrot.lane.b32.xlu1 %v6007_v28, %s4716_s15  ;;  %1121 = vrot.lane.b32.xlu0 %v5981_v54, %s4716_s15 }
 0x2c8   :  { %2705 = vmatprep.subr.bf16.mxu1 %v6586_v49  ;;  %v639_v10 = vpop.permute.xlu1 %638  ;;  %2464 = vmatmul.mubr.bf16.vlgmr.msra.gmra.mrb[12].mxu0 %v4664_v36 }
 0x2c9   :  { %2706 = vmatpush1.bf16.msra.mxu1 %v6589_v20  ;;  %v637_v40 = vpop.permute.xlu0 %636  ;;  %2473 = vmatprep.mubr.bf16.mxu0 %v4665_v8 }
 0x2ca   :  { %v6605_v37 = vsel %vm660_vm7, %v5935_v22, %v637_v40 }
 0x2cb   :  { %1137 = vrot.lane.b32.xlu1 %v6000_v27, %s4716_s15  ;;  %1135 = vrot.lane.b32.xlu0 %v6215_v0, %s4716_s15 }
 0x2cc   :  { %2492 = vmatprep.subr.bf16.mxu0 %v6605_v37  ;;  %v655_v49 = vpop.permute.xlu1 %654  ;;  %2708 = vmatmul.mubr.bf16.vlgmr.msra.gmra.mrb[12].mxu1 %v4664_v36  ;;  %v4666_v36 = vld [vmem:[%s7696_s1 + $0x38] ss:$28 sps:$4 sm:$0xff]  }
 0x2cd   :  { %2493 = vmatpush1.bf16.msra.mxu0 %v5945_v32  ;;  %v6613_v26 = vpop.permute.xlu0 %640  ;;  %v6617_v20 = vsel %vm660_vm7, %v5961_v30, %v655_v49  ;;  %2717 = vmatprep.mubr.bf16.mxu1 %v4665_v8  ;;  %v6630_v32 = vsel %vm660_vm7, %v637_v40, %v639_v10 }
 0x2ce   :  { %7945 = vst [vmem:[#allocation43_spill] sm:$0xff] %v6617_v20  ;;  %2494 = vmatprep.subr.bf16.mxu0 %v6617_v20  ;;  %v6622_v22 = vsel %vm660_vm7, %v639_v10, %v6613_v26  ;;  %v7949_v10 = vld [vmem:[#allocation49_spill] sm:$0xff] }
 0x2cf   :  { %7946 = vst [vmem:[#allocation56_spill] sm:$0xff] %v6622_v22  ;;  %1141 = vrot.lane.b32.xlu1 %v6015_v62, %s4716_s15  ;;  %1139 = vrot.lane.b32.xlu0 %v6022_v58, %s4716_s15 }
 0x2d0   :  { %2736 = vmatprep.subr.bf16.mxu1 %v6622_v22  ;;  %v6632_v30 = vpop.permute.xlu1 %658  ;;  %2474 = vmatmul.mubr.bf16.gmra.mrb[16].mxu0 %v4666_v36 }
 0x2d1   :  { %7947 = vst [vmem:[#allocation57_spill] sm:$0xff] %v6632_v30  ;;  %2495 = vmatpush1.bf16.msra.mxu0 %v5975_v61  ;;  %2737 = vmatpush1.bf16.msra.mxu1 %v6630_v32  ;;  %v657_v8 = vpop.permute.xlu0 %656 }
 0x2d2   :  { %v6641_v20 = vsel %vm660_vm7, %v657_v8, %v6632_v30  ;;  %v6644_v22 = vsel %vm660_vm7, %v655_v49, %v657_v8  ;;  %2483 = vmatprep.mubr.bf16.mxu0 %v7949_v10  ;;  %v7950_v8 = vld [vmem:[#allocation46_spill] sm:$0xff]  ;;  %vm7978_vm7 = vmmov %vm7967_vm0 }
 0x2d3   :  { %7948 = vst [vmem:[#allocation58_spill] sm:$0xff] %v6641_v20  ;;  %1188 = vrot.lane.b32.xlu1 %v5988_v43, %s4717_s25  ;;  %1186 = vrot.lane.b32.xlu0 %v6187_v34, %s4717_s25  ;;  %v7951_v34 = vld [vmem:[#allocation50_spill] sm:$0xff] }
 0x2d4   :  { %2738 = vmatprep.subr.bf16.mxu1 %v6641_v20  ;;  %v706_v61 = vpop.permute.xlu1 %705  ;;  %2718 = vmatmul.mubr.bf16.gmra.mrb[16].mxu1 %v4666_v36 }
 0x2d5   :  { %2739 = vmatpush1.bf16.msra.mxu1 %v6644_v22  ;;  %v704_v40 = vpop.permute.xlu0 %703  ;;  %2727 = vmatprep.mubr.bf16.mxu1 %v7949_v10  ;;  %v4667_v10 = vld [vmem:[%s7696_s1 + $0xc] ss:$28 sps:$4 sm:$0xff]  }
 0x2d6   :  { %v735_v49 = vsel %vm729_vm8, %v704_v40, %v706_v61  ;;  %v734_v30 = vsel %vm729_vm8, %v7950_v8, %v704_v40 }
 0x2d7   :  { %1192 = vrot.lane.b32.xlu1 %v6007_v28, %s4717_s25  ;;  %1190 = vrot.lane.b32.xlu0 %v5981_v54, %s4717_s25 }
 0x2d8   :  { %2496 = vmatprep.subr.bf16.mxu0 %v735_v49  ;;  %v710_v43 = vpop.permute.xlu1 %709  ;;  %2484 = vmatmul.mubr.bf16.gmra.mrb[20].mxu0 %v7951_v34  ;;  %v7952_v49 = vld [vmem:[#allocation47_spill] sm:$0xff] }
 0x2d9   :  { %2497 = vmatpush1.bf16.msra.mxu0 %v734_v30  ;;  %v708_v36 = vpop.permute.xlu0 %707  ;;  %2524 = vmatprep.mubr.bf16.mxu0 %v4667_v10 }
 0x2da   :  { %v737_v20 = vsel %vm729_vm8, %v708_v36, %v710_v43  ;;  %v736_v40 = vsel %vm729_vm8, %v706_v61, %v708_v36 }
 0x2db   :  { %1206 = vrot.lane.b32.xlu1 %v6000_v27, %s4717_s25  ;;  %1204 = vrot.lane.b32.xlu0 %v6215_v0, %s4717_s25 }
 0x2dc   :  { %2740 = vmatprep.subr.bf16.mxu1 %v737_v20  ;;  %v724_v54 = vpop.permute.xlu1 %723  ;;  %2728 = vmatmul.mubr.bf16.gmra.mrb[20].mxu1 %v7951_v34  ;;  %v7953_v34 = vld [vmem:[#allocation48_spill] sm:$0xff] }
 0x2dd   :  { %2741 = vmatpush1.bf16.msra.mxu1 %v736_v40  ;;  %v722_v28 = vpop.permute.xlu0 %721  ;;  %2768 = vmatprep.mubr.bf16.mxu1 %v4667_v10 }
 0x2de   :  { %v743_v30 = vsel %vm729_vm8, %v722_v28, %v724_v54  ;;  %v742_v8 = vsel %vm729_vm8, %v7952_v49, %v722_v28  ;;  %v7954_v28 = vld [vmem:[#allocation51_spill] sm:$0xff] }
 0x2df   :  { %1210 = vrot.lane.b32.xlu1 %v6015_v62, %s4717_s25  ;;  %1208 = vrot.lane.b32.xlu0 %v6022_v58, %s4717_s25 }
 0x2e0   :  { %2498 = vmatprep.subr.bf16.mxu0 %v743_v30  ;;  %v728_v27 = vpop.permute.xlu1 %727 }
 0x2e1   :  { %2499 = vmatpush1.bf16.msra.mxu0 %v742_v8  ;;  %v726_v0 = vpop.permute.xlu0 %725 }
 0x2e2   :  { %v745_v20 = vsel %vm729_vm8, %v726_v0, %v728_v27  ;;  %v744_v61 = vsel %vm729_vm8, %v724_v54, %v726_v0  ;;  %vm3554_vm8 = vcmask 654336  }
 0x2e3   :  { %1224 = vrot.lane.b32.xlu1 %v6301_v2, %s4717_s25  ;;  %1222 = vrot.lane.b32.xlu0 %v6280_v18, %s4717_s25 }
 0x2e4   :  { %2742 = vmatprep.subr.bf16.mxu1 %v745_v20  ;;  %v775_v43 = vpop.permute.xlu1 %774 }
 0x2e5   :  { %2743 = vmatpush1.bf16.msra.mxu1 %v744_v61  ;;  %v773_v62 = vpop.permute.xlu0 %772 }
 0x2e6   :  { %v804_v58 = vsel %vm798_vm9, %v773_v62, %v775_v43  ;;  %v803_v36 = vsel %vm798_vm9, %v7953_v34, %v773_v62 }
 0x2e7   :  { %1228 = vrot.lane.b32.xlu1 %v6250_v52, %s4717_s25  ;;  %1226 = vrot.lane.b32.xlu0 %v6286_v59, %s4717_s25 }
 0x2e8   :  { %2500 = vmatprep.subr.bf16.mxu0 %v804_v58  ;;  %v779_v2 = vpop.permute.xlu1 %778 }
 0x2e9   :  { %2501 = vmatpush1.bf16.msra.mxu0 %v803_v36  ;;  %v777_v10 = vpop.permute.xlu0 %776 }
 0x2ea   :  { %v806_v18 = vsel %vm798_vm9, %v777_v10, %v779_v2  ;;  %v805_v40 = vsel %vm798_vm9, %v775_v43, %v777_v10 }
 0x2eb   :  { %1242 = vrot.lane.b32.xlu1 %v6331_v33, %s4717_s25  ;;  %1240 = vrot.lane.b32.xlu0 %v6297_v42, %s4717_s25 }
 0x2ec   :  { %2744 = vmatprep.subr.bf16.mxu1 %v806_v18  ;;  %v793_v54 = vpop.permute.xlu1 %792 }
 0x2ed   :  { %2745 = vmatpush1.bf16.msra.mxu1 %v805_v40  ;;  %v791_v52 = vpop.permute.xlu0 %790 }
 0x2ee   :  { %v812_v59 = vsel %vm798_vm9, %v791_v52, %v793_v54  ;;  %v811_v30 = vsel %vm798_vm9, %v7954_v28, %v791_v52  ;;  %v7955_v52 = vld [vmem:[#allocation27_spill] sm:$0xff] }
 0x2ef   :  { %1246 = vrot.lane.b32.xlu1 %v6262_v13, %s4717_s25  ;;  %1244 = vrot.lane.b32.xlu0 %v6307_v1, %s4717_s25 }
 0x2f0   :  { %2502 = vmatprep.subr.bf16.mxu0 %v812_v59 }
 0x2f1   :  { %2503 = vmatpush1.bf16.msra.mxu0 %v811_v30  ;;  %v797_v33 = vpop.permute.xlu1 %796  ;;  %v795_v49 = vpop.permute.xlu0 %794  ;;  %v7956_v30 = vld [vmem:[#allocation28_spill] sm:$0xff] }
 0x2f2   :  { %v814_v42 = vsel %vm798_vm9, %v795_v49, %v797_v33  ;;  %v813_v8 = vsel %vm798_vm9, %v793_v54, %v795_v49  ;;  %v7957_v49 = vld [vmem:[#allocation52_spill] sm:$0xff]  ;;  %vm3912_vm9 = vcmask 1041408  }
 0x2f3   :  { %1260 = vrot.lane.b32.xlu1 %v6354_v39, %s4717_s25  ;;  %1258 = vrot.lane.b32.xlu0 %v6323_v16, %s4717_s25 }
 0x2f4   :  { %2746 = vmatprep.subr.bf16.mxu1 %v814_v42 }
 0x2f5   :  { %2747 = vmatpush1.bf16.msra.mxu1 %v813_v8  ;;  %v844_v13 = vpop.permute.xlu1 %843  ;;  %v842_v27 = vpop.permute.xlu0 %841  ;;  %v7958_v8 = vld [vmem:[#allocation31_spill] sm:$0xff] }
 0x2f6   :  { %v873_v1 = vsel %vm867_vm10, %v842_v27, %v844_v13  ;;  %v872_v0 = vsel %vm867_vm10, %v5561_v3, %v842_v27 }
 0x2f7   :  { %1264 = vrot.lane.b32.xlu1 %v6309_v4, %s4717_s25  ;;  %1262 = vrot.lane.b32.xlu0 %v6327_v23, %s4717_s25 }
 0x2f8   :  { %2504 = vmatprep.subr.bf16.mxu0 %v873_v1 }
 0x2f9   :  { %2505 = vmatpush1.bf16.msra.mxu0 %v872_v0  ;;  %v848_v39 = vpop.permute.xlu1 %847  ;;  %v846_v20 = vpop.permute.xlu0 %845  ;;  %v7959_v0 = vld [vmem:[#allocation30_spill] sm:$0xff] }
 0x2fa   :  { %v875_v16 = vsel %vm867_vm10, %v846_v20, %v848_v39  ;;  %v874_v61 = vsel %vm867_vm10, %v844_v13, %v846_v20  ;;  %v7960_v20 = vld [vmem:[#allocation53_spill] sm:$0xff] }
 0x2fb   :  { %1278 = vrot.lane.b32.xlu1 %v6373_v12, %s4717_s25  ;;  %1276 = vrot.lane.b32.xlu0 %v6346_v29, %s4717_s25 }
 0x2fc   :  { %2748 = vmatprep.subr.bf16.mxu1 %v875_v16 }
 0x2fd   :  { %2749 = vmatpush1.bf16.msra.mxu1 %v874_v61  ;;  %v862_v3 = vpop.permute.xlu1 %861  ;;  %v860_v4 = vpop.permute.xlu0 %859 }
 0x2fe   :  { %v881_v23 = vsel %vm867_vm10, %v860_v4, %v862_v3  ;;  %v880_v43 = vsel %vm867_vm10, %v5579_v6, %v860_v4 }
 0x2ff   :  { %1282 = vrot.lane.b32.xlu1 %v6333_v19, %s4717_s25  ;;  %1280 = vrot.lane.b32.xlu0 %v6350_v50, %s4717_s25 }
 0x300   :  { %2506 = vmatprep.subr.bf16.mxu0 %v881_v23 }
 0x301   :  { %2507 = vmatpush1.bf16.msra.mxu0 %v880_v43  ;;  %v866_v12 = vpop.permute.xlu1 %865  ;;  %v864_v62 = vpop.permute.xlu0 %863 }
 0x302   :  { %v883_v29 = vsel %vm867_vm10, %v864_v62, %v866_v12  ;;  %v882_v58 = vsel %vm867_vm10, %v862_v3, %v864_v62  ;;  %v7961_v3 = vld [vmem:[#allocation34_spill] sm:$0xff]  ;;  %v7962_v12 = vld [vmem:[#allocation35_spill] sm:$0xff] }
 0x303   :  { %1296 = vrot.lane.b32.xlu1 %v6394_v17, %s4717_s25  ;;  %1294 = vrot.lane.b32.xlu0 %v6365_v11, %s4717_s25 }
 0x304   :  { %2750 = vmatprep.subr.bf16.mxu1 %v883_v29 }
 0x305   :  { %2751 = vmatpush1.bf16.msra.mxu1 %v882_v58  ;;  %v913_v6 = vpop.permute.xlu1 %912  ;;  %v911_v19 = vpop.permute.xlu0 %910  ;;  %v7963_v58 = vld [vmem:[#allocation54_spill] sm:$0xff] }
 0x306   :  { %v942_v50 = vsel %vm936_vm11, %v911_v19, %v913_v6  ;;  %v941_v34 = vsel %vm936_vm11, %v5597_v7, %v911_v19  ;;  %v7964_v19 = vld [vmem:[#allocation33_spill] sm:$0xff] }
 0x307   :  { %1300 = vrot.lane.b32.xlu1 %v6376_v38, %s4717_s25  ;;  %1298 = vrot.lane.b32.xlu0 %v6385_v9, %s4717_s25 }
 0x308   :  { %2508 = vmatprep.subr.bf16.mxu0 %v942_v50 }
 0x309   :  { %2509 = vmatpush1.bf16.msra.mxu0 %v941_v34  ;;  %v917_v17 = vpop.permute.xlu1 %916  ;;  %v915_v36 = vpop.permute.xlu0 %914 }
 0x30a   :  { %v944_v11 = vsel %vm936_vm11, %v915_v36, %v917_v17  ;;  %v943_v2 = vsel %vm936_vm11, %v913_v6, %v915_v36  ;;  %v7965_v36 = vld [vmem:[#allocation32_spill] sm:$0xff] }
 0x30b   :  { %1314 = vrot.lane.b32.xlu1 %v6405_v57, %s4717_s25  ;;  %1312 = vrot.lane.b32.xlu0 %v6380_v55, %s4717_s25 }
 0x30c   :  { %2752 = vmatprep.subr.bf16.mxu1 %v944_v11 }
 0x30d   :  { %2753 = vmatpush1.bf16.msra.mxu1 %v943_v2  ;;  %v931_v7 = vpop.permute.xlu1 %930  ;;  %v929_v38 = vpop.permute.xlu0 %928  ;;  %v7966_v2 = vld [vmem:[#allocation55_spill] sm:$0xff] }
 0x30e   :  { %v950_v9 = vsel %vm936_vm11, %v929_v38, %v931_v7  ;;  %v949_v10 = vsel %vm936_vm11, %v5623_v60, %v929_v38 }
 0x30f   :  { %1318 = vrot.lane.b32.xlu1 %v6396_v47, %s4717_s25  ;;  %1316 = vrot.lane.b32.xlu0 %v6402_v24, %s4717_s25 }
 0x310   :  { %2510 = vmatprep.subr.bf16.mxu0 %v950_v9  ;;  %v7969_v9 = vld [vmem:[#allocation39_spill] sm:$0xff] }
 0x311   :  { %2511 = vmatpush1.bf16.msra.mxu0 %v949_v10  ;;  %v935_v57 = vpop.permute.xlu1 %934  ;;  %v933_v18 = vpop.permute.xlu0 %932 }
 0x312   :  { %v952_v55 = vsel %vm936_vm11, %v933_v18, %v935_v57  ;;  %v951_v40 = vsel %vm936_vm11, %v931_v7, %v933_v18 }
 0x313   :  { %1332 = vrot.lane.b32.xlu1 %v6440_v25, %s4717_s25  ;;  %1330 = vrot.lane.b32.xlu0 %v6415_v56, %s4717_s25 }
 0x314   :  { %2754 = vmatprep.subr.bf16.mxu1 %v952_v55  ;;  %v7972_v55 = vld [vmem:[#allocation36_spill] sm:$0xff] }
 0x315   :  { %2755 = vmatpush1.bf16.msra.mxu1 %v951_v40  ;;  %v982_v60 = vpop.permute.xlu1 %981  ;;  %v980_v47 = vpop.permute.xlu0 %979 }
 0x316   :  { %v1011_v24 = vsel %vm1005_vm12, %v980_v47, %v982_v60  ;;  %v1010_v54 = vsel %vm1005_vm12, %v5654_v31, %v980_v47  ;;  %v7973_v47 = vld [vmem:[#allocation5_spill] sm:$0xff] }
 0x317   :  { %1336 = vrot.lane.b32.xlu1 %v7955_v52, %s4717_s25  ;;  %1334 = vrot.lane.b32.xlu0 %v6432_v5, %s4717_s25 }
 0x318   :  { %2512 = vmatprep.subr.bf16.mxu0 %v1011_v24 }
 0x319   :  { %2513 = vmatpush1.bf16.msra.mxu0 %v1010_v54  ;;  %v986_v25 = vpop.permute.xlu1 %985  ;;  %v984_v59 = vpop.permute.xlu0 %983  ;;  %v7976_v54 = vld [vmem:[#allocation37_spill] sm:$0xff] }
 0x31a   :  { %v1013_v56 = vsel %vm1005_vm12, %v984_v59, %v986_v25  ;;  %v1012_v28 = vsel %vm1005_vm12, %v982_v60, %v984_v59 }
 0x31b   :  { %1350 = vrot.lane.b32.xlu1 %v6451_v44, %s4717_s25  ;;  %1348 = vrot.lane.b32.xlu0 %v7956_v30, %s4717_s25 }
 0x31c   :  { %2756 = vmatprep.subr.bf16.mxu1 %v1013_v56  ;;  %v7979_v56 = vld [vmem:[#allocation38_spill] sm:$0xff] }
 0x31d   :  { %2757 = vmatpush1.bf16.msra.mxu1 %v1012_v28  ;;  %v1000_v31 = vpop.permute.xlu1 %999  ;;  %v998_v33 = vpop.permute.xlu0 %997 }
 0x31e   :  { %v1018_v5 = vsel %vm1005_vm12, %v7957_v49, %v998_v33  ;;  %v1019_v42 = vsel %vm1005_vm12, %v998_v33, %v1000_v31  ;;  %v7980_v33 = vld [vmem:[#allocation9_spill] sm:$0xff] }
 0x31f   :  { %1354 = vrot.lane.b32.xlu1 %v6442_v41, %s4717_s25  ;;  %1352 = vrot.lane.b32.xlu0 %v7958_v8, %s4717_s25 }
 0x320   :  { %2514 = vmatprep.subr.bf16.mxu0 %v1019_v42 }
 0x321   :  { %2515 = vmatpush1.bf16.msra.mxu0 %v1018_v5  ;;  %v1004_v44 = vpop.permute.xlu1 %1003  ;;  %v1002_v13 = vpop.permute.xlu0 %1001  ;;  %v7981_v5 = vld [vmem:[#allocation41_spill] sm:$0xff] }
 0x322   :  { %v1020_v27 = vsel %vm1005_vm12, %v1000_v31, %v1002_v13  ;;  %v1021_v1 = vsel %vm1005_vm12, %v1002_v13, %v1004_v44  ;;  %v4669_v31 = vld [vmem:[%s7696_s1 + $0x44] ss:$28 sps:$4 sm:$0xff]  }
 0x323   :  { %1368 = vrot.lane.b32.xlu1 %v6486_v45, %s4717_s25  ;;  %1366 = vrot.lane.b32.xlu0 %v7959_v0, %s4717_s25 }
 0x324   :  { %2758 = vmatprep.subr.bf16.mxu1 %v1021_v1  ;;  %v7983_v1 = vld [vmem:[#allocation40_spill] sm:$0xff] }
 0x325   :  { %2759 = vmatpush1.bf16.msra.mxu1 %v1020_v27  ;;  %v1051_v41 = vpop.permute.xlu1 %1050  ;;  %v1049_v39 = vpop.permute.xlu0 %1048  ;;  %v7982_v27 = vld [vmem:[#allocation42_spill] sm:$0xff] }
 0x326   :  { %v1079_v16 = vsel %vm1074_vm13, %v7960_v20, %v1049_v39  ;;  %v1080_v61 = vsel %vm1074_vm13, %v1049_v39, %v1051_v41  ;;  %v7984_v20 = vld [vmem:[#allocation8_spill] sm:$0xff] }
 0x327   :  { %1372 = vrot.lane.b32.xlu1 %v7961_v3, %s4717_s25  ;;  %1370 = vrot.lane.b32.xlu0 %v6478_v46, %s4717_s25 }
 0x328   :  { %2516 = vmatprep.subr.bf16.mxu0 %v1080_v61 }
 0x329   :  { %2517 = vmatpush1.bf16.msra.mxu0 %v1079_v16  ;;  %v1055_v45 = vpop.permute.xlu1 %1054  ;;  %v1053_v4 = vpop.permute.xlu0 %1052  ;;  %v7985_v16 = vld [vmem:[#allocation6_spill] sm:$0xff] }
 0x32a   :  { %v1081_v23 = vsel %vm1074_vm13, %v1051_v41, %v1053_v4  ;;  %v1082_v43 = vsel %vm1074_vm13, %v1053_v4, %v1055_v45 }
 0x32b   :  { %1386 = vrot.lane.b32.xlu1 %v6497_v35, %s4717_s25  ;;  %1384 = vrot.lane.b32.xlu0 %v7962_v12, %s4717_s25 }
 0x32c   :  { %2760 = vmatprep.subr.bf16.mxu1 %v1082_v43  ;;  %v7987_v43 = vld [vmem:[#allocation45_spill] sm:$0xff] }
 0x32d   :  { %2761 = vmatpush1.bf16.msra.mxu1 %v1081_v23  ;;  %v1069_v62 = vpop.permute.xlu1 %1068  ;;  %v1067_v29 = vpop.permute.xlu0 %1066  ;;  %v7986_v23 = vld [vmem:[#allocation44_spill] sm:$0xff] }
 0x32e   :  { %v1087_v46 = vsel %vm1074_vm13, %v7963_v58, %v1067_v29  ;;  %v1088_v6 = vsel %vm1074_vm13, %v1067_v29, %v1069_v62 }
 0x32f   :  { %1390 = vrot.lane.b32.xlu1 %v6488_v21, %s4717_s25  ;;  %1388 = vrot.lane.b32.xlu0 %v7964_v19, %s4717_s25 }
 0x330   :  { %2518 = vmatprep.subr.bf16.mxu0 %v1088_v6 }
 0x331   :  { %2519 = vmatpush1.bf16.msra.mxu0 %v1087_v46  ;;  %v1073_v35 = vpop.permute.xlu1 %1072  ;;  %v1071_v50 = vpop.permute.xlu0 %1070 }
 0x332   :  { %v1089_v34 = vsel %vm1074_vm13, %v1069_v62, %v1071_v50  ;;  %v1090_v17 = vsel %vm1074_vm13, %v1071_v50, %v1073_v35 }
 0x333   :  { %1404 = vrot.lane.b32.xlu1 %v6532_v15, %s4717_s25  ;;  %1402 = vrot.lane.b32.xlu0 %v7965_v36, %s4717_s25 }
 0x334   :  { %2762 = vmatprep.subr.bf16.mxu1 %v1090_v17  ;;  %v7988_v17 = vld [vmem:[#allocation11_spill] sm:$0xff] }
 0x335   :  { %2763 = vmatpush1.bf16.msra.mxu1 %v1089_v34  ;;  %v1120_v21 = vpop.permute.xlu1 %1119  ;;  %v1118_v11 = vpop.permute.xlu0 %1117 }
 0x336   :  { %v1148_v7 = vsel %vm7967_vm0, %v7966_v2, %v1118_v11  ;;  %v1149_v38 = vsel %vm7968_vm1, %v1118_v11, %v1120_v21  ;;  %v4671_v11 = vld [vmem:[%s7696_s1 + $0x14] ss:$28 sps:$4 sm:$0xff]  }
 0x337   :  { %1408 = vrot.lane.b32.xlu1 %v7969_v9, %s4717_s25  ;;  %1406 = vrot.lane.b32.xlu0 %v6524_v63, %s4717_s25 }
 0x338   :  { %2520 = vmatprep.subr.bf16.mxu0 %v1149_v38  ;;  %v7990_v38 = vld [vmem:[#allocation56_spill] sm:$0xff] }
 0x339   :  { %2521 = vmatpush1.bf16.msra.mxu0 %v1148_v7  ;;  %v1124_v15 = vpop.permute.xlu1 %1123  ;;  %v1122_v10 = vpop.permute.xlu0 %1121 }
 0x33a   :  { %v1150_v57 = vsel %vm7970_vm2, %v1120_v21, %v1122_v10  ;;  %v1151_v18 = vsel %vm7971_vm3, %v1122_v10, %v1124_v15 }
 0x33b   :  { %1422 = vrot.lane.b32.xlu1 %v6543_v53, %s4717_s25  ;;  %1420 = vrot.lane.b32.xlu0 %v7972_v55, %s4717_s25 }
 0x33c   :  { %2764 = vmatprep.subr.bf16.mxu1 %v1151_v18 }
 0x33d   :  { %2765 = vmatpush1.bf16.msra.mxu1 %v1150_v57  ;;  %v1138_v40 = vpop.permute.xlu1 %1137  ;;  %v1136_v60 = vpop.permute.xlu0 %1135 }
 0x33e   :  { %v1156_v63 = vsel %vm7974_vm4, %v7973_v47, %v1136_v60  ;;  %v1157_v24 = vsel %vm7975_vm5, %v1136_v60, %v1138_v40  ;;  %v7991_v47 = vld [vmem:[#allocation43_spill] sm:$0xff] }
 0x33f   :  { %1426 = vrot.lane.b32.xlu1 %v6534_v51, %s4717_s25  ;;  %1424 = vrot.lane.b32.xlu0 %v7976_v54, %s4717_s25  ;;  %v4668_v51 = vld [vmem:[%s7696_s1 + $0x8] ss:$28 sps:$4 sm:$0xff]  }
 0x340   :  { %2522 = vmatprep.subr.bf16.mxu0 %v1157_v24 }
 0x341   :  { %2523 = vmatpush1.bf16.msra.mxu0 %v1156_v63  ;;  %v1142_v53 = vpop.permute.xlu1 %1141  ;;  %v1140_v52 = vpop.permute.xlu0 %1139 }
 0x342   :  { %v1158_v25 = vsel %vm7977_vm6, %v1138_v40, %v1140_v52  ;;  %v1159_v59 = vsel %vm7978_vm7, %v1140_v52, %v1142_v53 }
 0x343   :  { %1440 = vrot.lane.b32.xlu1 %v6578_v14, %s4717_s25  ;;  %1438 = vrot.lane.b32.xlu0 %v7979_v56, %s4717_s25 }
 0x344   :  { %2766 = vmatprep.subr.bf16.mxu1 %v1159_v59  ;;  %2525 = vmatmul.mubr.bf16.vlgmr.msra.gmra.mrb[12].mxu0 %v4668_v51  ;;  %v7992_v59 = vld [vmem:[#allocation10_spill] sm:$0xff] }
 0x345   :  { %2767 = vmatpush1.bf16.msra.mxu1 %v1158_v25  ;;  %v1189_v28 = vpop.permute.xlu1 %1188  ;;  %v1187_v30 = vpop.permute.xlu0 %1186  ;;  %2534 = vmatprep.mubr.bf16.mxu0 %v4669_v31 }
 0x346   :  { %v1505_v14 = vsel %vm1500_vm15, %v7980_v33, %v1187_v30  ;;  %v1506_v49 = vsel %vm1500_vm15, %v1187_v30, %v1189_v28  ;;  %v1810_v33 = vld [vmem:[%s7697_s2 + $0x8] sm:$0xff] }
 0x347   :  { %1444 = vrot.lane.b32.xlu1 %v7981_v5, %s4717_s25  ;;  %1442 = vrot.lane.b32.xlu0 %v6570_v48, %s4717_s25  ;;  %v4670_v48 = vld [vmem:[%s7696_s1 + $0x40] ss:$28 sps:$4 sm:$0xff]  }
 0x348   :  { %2553 = vmatprep.subr.bf16.mxu0 %v1506_v49  ;;  %2769 = vmatmul.mubr.bf16.vlgmr.msra.gmra.mrb[12].mxu1 %v4668_v51  ;;  %v7993_v51 = vld [vmem:[#allocation57_spill] sm:$0xff] }
 0x349   :  { %2554 = vmatpush1.bf16.msra.mxu0 %v1505_v14  ;;  %v1193_v42 = vpop.permute.xlu1 %1192  ;;  %v1191_v8 = vpop.permute.xlu0 %1190  ;;  %2778 = vmatprep.mubr.bf16.mxu1 %v4669_v31  ;;  %v1809_v14 = vld [vmem:[%s7697_s2] sm:$0xff] }
 0x34a   :  { %v1507_v44 = vsel %vm1500_vm15, %v1189_v28, %v1191_v8  ;;  %v1508_v13 = vsel %vm1500_vm15, %v1191_v8, %v1193_v42 }
 0x34b   :  { %1458 = vrot.lane.b32.xlu1 %v7982_v27, %s4717_s25  ;;  %1456 = vrot.lane.b32.xlu0 %v7983_v1, %s4717_s25  ;;  %v1811_v1 = vld [vmem:[%s7697_s2 + $0x10] sm:$0xff] }
 0x34c   :  { %2797 = vmatprep.subr.bf16.mxu1 %v1508_v13  ;;  %v6860_v0 = vpop.f32.mrb[0].mxu0  ;;  %2535 = vmatmul.mubr.bf16.gmra.mrb[16].mxu0 %v4670_v48 }
 0x34d   :  { %2798 = vmatpush1.bf16.msra.mxu1 %v1507_v44  ;;  %v1207_v41 = vpop.permute.xlu1 %1206  ;;  %v1205_v39 = vpop.permute.xlu0 %1204  ;;  %2544 = vmatprep.mubr.bf16.mxu0 %v7984_v20 }
 0x34e   :  { %v1513_v61 = vsel %vm1500_vm15, %v7985_v16, %v1205_v39  ;;  %v6868_v3 = vpop.f32.mrb[1].mxu0  ;;  %v1514_v45 = vsel %vm1500_vm15, %v1205_v39, %v1207_v41 }
 0x34f   :  { %v6871_v4 = vpop.f32.mrb[0].mxu1  ;;  %1462 = vrot.lane.b32.xlu1 %v7986_v23, %s4717_s25  ;;  %1460 = vrot.lane.b32.xlu0 %v7987_v43, %s4717_s25  ;;  %v6877_v12 = vpop.f32.mrb[2].mxu0 }
 0x350   :  { %v6879_v62 = vpop.f32.mrb[1].mxu1  ;;  %2555 = vmatprep.subr.bf16.mxu0 %v1514_v45  ;;  %v6881_v29 = vpop.f32.mrb[3].mxu0  ;;  %2779 = vmatmul.mubr.bf16.gmra.mrb[16].mxu1 %v4670_v48  ;;  %v1812_v48 = vld [vmem:[%s7697_s2 + $0x18] sm:$0xff]  ;;  %v1813_v45 = vld [vmem:[%s7697_s2 + $0x20] sm:$0xff] }
 0x351   :  { %v6883_v58 = vpop.f32.mrb[2].mxu1  ;;  %2556 = vmatpush1.bf16.msra.mxu0 %v1513_v61  ;;  %v1211_v46 = vpop.permute.xlu1 %1210  ;;  %2788 = vmatprep.mubr.bf16.mxu1 %v7984_v20  ;;  %v7995_v20 = vld [vmem:[#allocation14_spill] sm:$0xff] }
 0x352   :  { %v6886_v6 = vpop.f32.mrb[3].mxu1  ;;  %v1209_v19 = vpop.permute.xlu0 %1208 }
 0x353   :  { %v1515_v35 = vsel %vm1500_vm15, %v1207_v41, %v1209_v19  ;;  %1476 = vrot.lane.b32.xlu1 %v6630_v32, %s4717_s25  ;;  %1474 = vrot.lane.b32.xlu0 %v6605_v37, %s4717_s25  ;;  %v1516_v50 = vsel %vm1500_vm15, %v1209_v19, %v1211_v46  ;;  %v7989_v37 = vld [vmem:[#allocation7_spill] sm:$0xff] }
 0x354   :  { %2799 = vmatprep.subr.bf16.mxu1 %v1516_v50  ;;  %v6894_v34 = vpop.f32.mrb[4].mxu0  ;;  %2545 = vmatmul.mubr.bf16.gmra.mrb[20].mxu0 %v7988_v17 }
 0x355   :  { %2800 = vmatpush1.bf16.msra.mxu1 %v1515_v35  ;;  %v1225_v36 = vpop.permute.xlu1 %1224  ;;  %v6897_v21 = vpop.f32.mrb[5].mxu0  ;;  %2585 = vmatprep.mubr.bf16.mxu0 %v4671_v11 }
 0x356   :  { %v1223_v32 = vpop.permute.xlu0 %1222  ;;  %v6902_v2 = vpop.f32.mrb[6].mxu0 }
 0x357   :  { %v1521_v7 = vsel %vm1500_vm15, %v7989_v37, %v1223_v32  ;;  %1480 = vrot.lane.b32.xlu1 %v6613_v26, %s4717_s25  ;;  %1478 = vrot.lane.b32.xlu0 %v7990_v38, %s4717_s25  ;;  %v1522_v9 = vsel %vm1500_vm15, %v1223_v32, %v1225_v36  ;;  %v6911_v15 = vpop.f32.mrb[4].mxu1  ;;  %v6913_v10 = vpop.f32.mrb[7].mxu0 }
 0x358   :  { %2557 = vmatprep.subr.bf16.mxu0 %v1522_v9  ;;  %v6915_v57 = vpop.f32.mrb[5].mxu1  ;;  %2789 = vmatmul.mubr.bf16.gmra.mrb[20].mxu1 %v7988_v17  ;;  %v7996_v17 = vld [vmem:[#allocation15_spill] sm:$0xff] }
 0x359   :  { %2558 = vmatpush1.bf16.msra.mxu0 %v1521_v7  ;;  %v1229_v18 = vpop.permute.xlu1 %1228  ;;  %v6918_v55 = vpop.f32.mrb[6].mxu1  ;;  %2829 = vmatprep.mubr.bf16.mxu1 %v4671_v11 }
 0x35a   :  { %v1227_v26 = vpop.permute.xlu0 %1226  ;;  %v6920_v40 = vpop.f32.mrb[7].mxu1 }
 0x35b   :  { %v1523_v60 = vsel %vm1500_vm15, %v1225_v36, %v1227_v26  ;;  %1494 = vrot.lane.b32.xlu1 %v6644_v22, %s4717_s25  ;;  %1492 = vrot.lane.b32.xlu0 %v7991_v47, %s4717_s25  ;;  %v1524_v63 = vsel %vm1500_vm15, %v1227_v26, %v1229_v18  ;;  %v7994_v22 = vld [vmem:[#allocation58_spill] sm:$0xff]  ;;  %v7997_v26 = vld [vmem:[#allocation13_spill] sm:$0xff] }
 0x35c   :  { %2801 = vmatprep.subr.bf16.mxu1 %v1524_v63  ;;  %v6928_v24 = vpop.f32.mrb[8].mxu0 }
 0x35d   :  { %2802 = vmatpush1.bf16.msra.mxu1 %v1523_v60  ;;  %v1243_v54 = vpop.permute.xlu1 %1242  ;;  %v6930_v53 = vpop.f32.mrb[9].mxu0 }
 0x35e   :  { %v1241_v52 = vpop.permute.xlu0 %1240  ;;  %v2184_v25 = vpop.f32.mrb[10].mxu0 }
 0x35f   :  { %v1529_v56 = vsel %vm1500_vm15, %v7992_v59, %v1241_v52  ;;  %1498 = vrot.lane.b32.xlu1 %v7993_v51, %s4717_s25  ;;  %1496 = vrot.lane.b32.xlu0 %v7994_v22, %s4717_s25  ;;  %v1530_v28 = vsel %vm1500_vm15, %v1241_v52, %v1243_v54  ;;  %v6939_v30 = vpop.f32.mrb[8].mxu1  ;;  %v2185_v31 = vpop.f32.mrb[11].mxu0  ;;  %v7998_v51 = vld [vmem:[#allocation12_spill] sm:$0xff] }
 0x360   :  { %2559 = vmatprep.subr.bf16.mxu0 %v1530_v28  ;;  %v6947_v49 = vpop.f32.mrb[9].mxu1 }
 0x361   :  { %2560 = vmatpush1.bf16.msra.mxu0 %v1529_v56  ;;  %v1247_v5 = vpop.permute.xlu1 %1246  ;;  %v2428_v42 = vpop.f32.mrb[10].mxu1 }
 0x362   :  { %v1245_v8 = vpop.permute.xlu0 %1244  ;;  %v2429_v44 = vpop.f32.mrb[11].mxu1 }
 0x363   :  { %v1531_v13 = vsel %vm1500_vm15, %v1243_v54, %v1245_v8  ;;  %1821 = vperm.xlu1 %4539, %v1810_v33   ;;  %1816 = vperm.xlu0 %4538, %v1809_v14   ;;  %v1532_v27 = vsel %vm1500_vm15, %v1245_v8, %v1247_v5  ;;  %v7999_v44 = vld [vmem:[#allocation19_spill] sm:$0xff] }
 0x364   :  { %2803 = vmatprep.subr.bf16.mxu1 %v1532_v27 }
 0x365   :  { %2804 = vmatpush1.bf16.msra.mxu1 %v1531_v13  ;;  %v1261_v41 = vpop.permute.xlu1 %1260 }
 0x366   :  { %v1259_v39 = vpop.permute.xlu0 %1258 }
 0x367   :  { %v1537_v16 = vsel %vm1500_vm15, %v7995_v20, %v1259_v39  ;;  %1826 = vperm.xlu1 %4539, %v1811_v1   ;;  %1831 = vperm.xlu0 %4538, %v1812_v48   ;;  %v1538_v61 = vsel %vm1500_vm15, %v1259_v39, %v1261_v41 }
 0x368   :  { %2561 = vmatprep.subr.bf16.mxu0 %v1538_v61  ;;  %v8000_v61 = vld [vmem:[#allocation16_spill] sm:$0xff] }
 0x369   :  { %2562 = vmatpush1.bf16.msra.mxu0 %v1537_v16  ;;  %v1265_v23 = vpop.permute.xlu1 %1264 }
 0x36a   :  { %v1263_v43 = vpop.permute.xlu0 %1262 }
 0x36b   :  { %v1539_v46 = vsel %vm1500_vm15, %v1261_v41, %v1263_v43  ;;  %1836 = vperm.xlu1 %4539, %v1813_v45   ;;  %v1540_v19 = vsel %vm1500_vm15, %v1263_v43, %v1265_v23 }
 0x36c   :  { %2805 = vmatprep.subr.bf16.mxu1 %v1540_v19 }
 0x36d   :  { %2806 = vmatpush1.bf16.msra.mxu1 %v1539_v46  ;;  %v1279_v35 = vpop.permute.xlu1 %1278 }
 0x36e   :  { %v1277_v50 = vpop.permute.xlu0 %1276 }
 0x36f   :  { %v1545_v36 = vsel %vm1500_vm15, %v7996_v17, %v1277_v50  ;;  %v1546_v11 = vsel %vm1500_vm15, %v1277_v50, %v1279_v35 }
 0x370   :  { %2563 = vmatprep.subr.bf16.mxu0 %v1546_v11 }
 0x371   :  { %2564 = vmatpush1.bf16.msra.mxu0 %v1545_v36  ;;  %v1283_v32 = vpop.permute.xlu1 %1282  ;;  %v8001_v36 = vld [vmem:[#allocation17_spill] sm:$0xff] }
 0x372   :  { %v1281_v37 = vpop.permute.xlu0 %1280 }
 0x373   :  { %v1547_v7 = vsel %vm1500_vm15, %v1279_v35, %v1281_v37  ;;  %v1548_v38 = vsel %vm1500_vm15, %v1281_v37, %v1283_v32 }
 0x374   :  { %2807 = vmatprep.subr.bf16.mxu1 %v1548_v38 }
 0x375   :  { %2808 = vmatpush1.bf16.msra.mxu1 %v1547_v7  ;;  %v1297_v9 = vpop.permute.xlu1 %1296 }
 0x376   :  { %v1295_v18 = vpop.permute.xlu0 %1294 }
 0x377   :  { %v1553_v60 = vsel %vm1500_vm15, %v7997_v26, %v1295_v18  ;;  %v1554_v47 = vsel %vm1500_vm15, %v1295_v18, %v1297_v9 }
 0x378   :  { %2565 = vmatprep.subr.bf16.mxu0 %v1554_v47 }
 0x379   :  { %2566 = vmatpush1.bf16.msra.mxu0 %v1553_v60  ;;  %v1301_v63 = vpop.permute.xlu1 %1300  ;;  %v8002_v60 = vld [vmem:[#allocation18_spill] sm:$0xff] }
 0x37a   :  { %v1299_v54 = vpop.permute.xlu0 %1298 }
 0x37b   :  { %v1555_v52 = vsel %vm1500_vm15, %v1297_v9, %v1299_v54  ;;  %v1556_v25 = vsel %vm1500_vm15, %v1299_v54, %v1301_v63 }
 0x37c   :  { %2809 = vmatprep.subr.bf16.mxu1 %v1556_v25 }
 0x37d   :  { %2810 = vmatpush1.bf16.msra.mxu1 %v1555_v52  ;;  %v1315_v59 = vpop.permute.xlu1 %1314 }
 0x37e   :  { %v1313_v56 = vpop.permute.xlu0 %1312 }
 0x37f   :  { %v1561_v22 = vsel %vm1500_vm15, %v7998_v51, %v1313_v56  ;;  %v1562_v28 = vsel %vm1500_vm15, %v1313_v56, %v1315_v59 }
 0x380   :  { %2567 = vmatprep.subr.bf16.mxu0 %v1562_v28 }
 0x381   :  { %2568 = vmatpush1.bf16.msra.mxu0 %v1561_v22  ;;  %v1319_v31 = vpop.permute.xlu1 %1318  ;;  %v8003_v22 = vld [vmem:[#allocation21_spill] sm:$0xff] }
 0x382   :  { %v1317_v33 = vpop.permute.xlu0 %1316 }
 0x383   :  { %v1563_v14 = vsel %vm1500_vm15, %v1315_v59, %v1317_v33  ;;  %v1564_v5 = vsel %vm1500_vm15, %v1317_v33, %v1319_v31 }
 0x384   :  { %2811 = vmatprep.subr.bf16.mxu1 %v1564_v5 }
 0x385   :  { %2812 = vmatpush1.bf16.msra.mxu1 %v1563_v14  ;;  %v1333_v42 = vpop.permute.xlu1 %1332 }
 0x386   :  { %v1331_v8 = vpop.permute.xlu0 %1330 }
 0x387   :  { %v1569_v13 = vsel %vm1500_vm15, %v7999_v44, %v1331_v8  ;;  %v1570_v27 = vsel %vm1500_vm15, %v1331_v8, %v1333_v42 }
 0x388   :  { %2569 = vmatprep.subr.bf16.mxu0 %v1570_v27 }
 0x389   :  { %2570 = vmatpush1.bf16.msra.mxu0 %v1569_v13  ;;  %v1337_v1 = vpop.permute.xlu1 %1336  ;;  %v8004_v13 = vld [vmem:[#allocation20_spill] sm:$0xff] }
 0x38a   :  { %v1335_v48 = vpop.permute.xlu0 %1334 }
 0x38b   :  { %v1571_v41 = vsel %vm1500_vm15, %v1333_v42, %v1335_v48  ;;  %v1572_v39 = vsel %vm1500_vm15, %v1335_v48, %v1337_v1 }
 0x38c   :  { %2813 = vmatprep.subr.bf16.mxu1 %v1572_v39 }
 0x38d   :  { %2814 = vmatpush1.bf16.msra.mxu1 %v1571_v41  ;;  %v1351_v20 = vpop.permute.xlu1 %1350 }
 0x38e   :  { %v1349_v16 = vpop.permute.xlu0 %1348 }
 0x38f   :  { %v1577_v45 = vsel %vm1500_vm15, %v8000_v61, %v1349_v16  ;;  %v1578_v23 = vsel %vm1500_vm15, %v1349_v16, %v1351_v20 }
 0x390   :  { %2571 = vmatprep.subr.bf16.mxu0 %v1578_v23 }
 0x391   :  { %2572 = vmatpush1.bf16.msra.mxu0 %v1577_v45  ;;  %v1355_v43 = vpop.permute.xlu1 %1354  ;;  %v8005_v45 = vld [vmem:[#allocation24_spill] sm:$0xff] }
 0x392   :  { %v1353_v46 = vpop.permute.xlu0 %1352 }
 0x393   :  { %v1579_v19 = vsel %vm1500_vm15, %v1351_v20, %v1353_v46  ;;  %v1580_v35 = vsel %vm1500_vm15, %v1353_v46, %v1355_v43 }
 0x394   :  { %2815 = vmatprep.subr.bf16.mxu1 %v1580_v35 }
 0x395   :  { %2816 = vmatpush1.bf16.msra.mxu1 %v1579_v19  ;;  %v1369_v50 = vpop.permute.xlu1 %1368 }
 0x396   :  { %v1367_v17 = vpop.permute.xlu0 %1366 }
 0x397   :  { %v1585_v11 = vsel %vm1500_vm15, %v8001_v36, %v1367_v17  ;;  %v1586_v32 = vsel %vm1500_vm15, %v1367_v17, %v1369_v50 }
 0x398   :  { %2573 = vmatprep.subr.bf16.mxu0 %v1586_v32 }
 0x399   :  { %2574 = vmatpush1.bf16.msra.mxu0 %v1585_v11  ;;  %v1373_v37 = vpop.permute.xlu1 %1372  ;;  %v8006_v11 = vld [vmem:[#allocation25_spill] sm:$0xff] }
 0x39a   :  { %v1371_v7 = vpop.permute.xlu0 %1370 }
 0x39b   :  { %v1587_v38 = vsel %vm1500_vm15, %v1369_v50, %v1371_v7  ;;  %v1588_v9 = vsel %vm1500_vm15, %v1371_v7, %v1373_v37 }
 0x39c   :  { %2817 = vmatprep.subr.bf16.mxu1 %v1588_v9 }
 0x39d   :  { %2818 = vmatpush1.bf16.msra.mxu1 %v1587_v38  ;;  %v1387_v18 = vpop.permute.xlu1 %1386 }
 0x39e   :  { %v1385_v26 = vpop.permute.xlu0 %1384 }
 0x39f   :  { %v1593_v47 = vsel %vm1500_vm15, %v8002_v60, %v1385_v26  ;;  %v1594_v63 = vsel %vm1500_vm15, %v1385_v26, %v1387_v18  ;;  %v4672_v26 = vld [vmem:[%s7696_s1 + $0x10] ss:$28 sps:$4 sm:$0xff]  }
 0x3a0   :  { %2575 = vmatprep.subr.bf16.mxu0 %v1594_v63 }
 0x3a1   :  { %2576 = vmatpush1.bf16.msra.mxu0 %v1593_v47  ;;  %v1391_v54 = vpop.permute.xlu1 %1390  ;;  %v4673_v47 = vld [vmem:[%s7696_s1 + $0x4c] ss:$28 sps:$4 sm:$0xff]  }
 0x3a2   :  { %v1389_v52 = vpop.permute.xlu0 %1388 }
 0x3a3   :  { %v1595_v25 = vsel %vm1500_vm15, %v1387_v18, %v1389_v52  ;;  %v1596_v59 = vsel %vm1500_vm15, %v1389_v52, %v1391_v54  ;;  %v8007_v54 = vld [vmem:[#allocation23_spill] sm:$0xff] }
 0x3a4   :  { %2819 = vmatprep.subr.bf16.mxu1 %v1596_v59 }
 0x3a5   :  { %2820 = vmatpush1.bf16.msra.mxu1 %v1595_v25  ;;  %v1405_v56 = vpop.permute.xlu1 %1404 }
 0x3a6   :  { %v1403_v51 = vpop.permute.xlu0 %1402 }
 0x3a7   :  { %v1601_v28 = vsel %vm1500_vm15, %v8003_v22, %v1403_v51  ;;  %v1602_v31 = vsel %vm1500_vm15, %v1403_v51, %v1405_v56 }
 0x3a8   :  { %2577 = vmatprep.subr.bf16.mxu0 %v1602_v31 }
 0x3a9   :  { %2578 = vmatpush1.bf16.msra.mxu0 %v1601_v28  ;;  %v1409_v33 = vpop.permute.xlu1 %1408  ;;  %v4674_v28 = vld [vmem:[%s7696_s1 + $0x48] ss:$28 sps:$4 sm:$0xff]  }
 0x3aa   :  { %v1407_v14 = vpop.permute.xlu0 %1406 }
 0x3ab   :  { %v1603_v5 = vsel %vm1500_vm15, %v1405_v56, %v1407_v14  ;;  %v1604_v42 = vsel %vm1500_vm15, %v1407_v14, %v1409_v33  ;;  %v8008_v33 = vld [vmem:[#allocation22_spill] sm:$0xff] }
 0x3ac   :  { %2821 = vmatprep.subr.bf16.mxu1 %v1604_v42  ;;  %v8009_v42 = vld [vmem:[#allocation26_spill] sm:$0xff] }
 0x3ad   :  { %2822 = vmatpush1.bf16.msra.mxu1 %v1603_v5  ;;  %v1423_v8 = vpop.permute.xlu1 %1422  ;;  %v7038_v5 = vld [vmem:[%s7698_s3 + $0x40] sm:$0xff]  }
 0x3ae   :  { %v1421_v44 = vpop.permute.xlu0 %1420 }
 0x3af   :  { %v1609_v27 = vsel %vm1500_vm15, %v8004_v13, %v1421_v44  ;;  %v1610_v1 = vsel %vm1500_vm15, %v1421_v44, %v1423_v8 }
 0x3b0   :  { %2579 = vmatprep.subr.bf16.mxu0 %v1610_v1  ;;  %v7048_v1 = vld [vmem:[%s7698_s3 + $0xc0] sm:$0xff]  }
 0x3b1   :  { %2580 = vmatpush1.bf16.msra.mxu0 %v1609_v27  ;;  %v1427_v48 = vpop.permute.xlu1 %1426 }
 0x3b2   :  { %v1425_v41 = vpop.permute.xlu0 %1424 }
 0x3b3   :  { %v1611_v39 = vsel %vm1500_vm15, %v1423_v8, %v1425_v41  ;;  %v1612_v20 = vsel %vm1500_vm15, %v1425_v41, %v1427_v48 }
 0x3b4   :  { %2823 = vmatprep.subr.bf16.mxu1 %v1612_v20  ;;  %v8011_v20 = vmov 0  }
 0x3b5   :  { %2824 = vmatpush1.bf16.msra.mxu1 %v1611_v39  ;;  %v1441_v16 = vpop.permute.xlu1 %1440  ;;  %v8010_v39 = vld [vmem:[#allocation29_spill] sm:$0xff] }
 0x3b6   :  { %v1439_v61 = vpop.permute.xlu0 %1438 }
 0x3b7   :  { %v1617_v23 = vsel %vm1500_vm15, %v8005_v45, %v1439_v61  ;;  %v1618_v43 = vsel %vm1500_vm15, %v1439_v61, %v1441_v16  ;;  %v7065_v61 = vld [vmem:[%s7698_s3 + $0x48] sm:$0xff]   ;;  %v4675_v45 = vld [vmem:[%s7696_s1 + $0x18] ss:$28 sps:$4 sm:$0xff]  }
 0x3b8   :  { %2581 = vmatprep.subr.bf16.mxu0 %v1618_v43  ;;  %v7080_v43 = vld [vmem:[%s7698_s3 + $0x80] sm:$0xff]  }
 0x3b9   :  { %2582 = vmatpush1.bf16.msra.mxu0 %v1617_v23  ;;  %v1445_v46 = vpop.permute.xlu1 %1444  ;;  %v7075_v23 = vld [vmem:[%s7698_s3 + $0x8] sm:$0xff]  }
 0x3ba   :  { %v1443_v19 = vpop.permute.xlu0 %1442 }
 0x3bb   :  { %v1619_v35 = vsel %vm1500_vm15, %v1441_v16, %v1443_v19  ;;  %v1620_v50 = vsel %vm1500_vm15, %v1443_v19, %v1445_v46  ;;  %v7059_v16 = vld [vmem:[%s7698_s3] sm:$0xff]   ;;  %v7087_v46 = vld [vmem:[%s7698_s3 + $0xc8] sm:$0xff]   ;;  %v7092_v19 = vld [vmem:[%s7698_s3 + $0x50] sm:$0xff]  }
 0x3bc   :  { %2825 = vmatprep.subr.bf16.mxu1 %v1620_v50  ;;  %v7105_v50 = vld [vmem:[%s7698_s3 + $0x88] sm:$0xff]  }
 0x3bd   :  { %2826 = vmatpush1.bf16.msra.mxu1 %v1619_v35  ;;  %v1459_v17 = vpop.permute.xlu1 %1458  ;;  %v7100_v35 = vld [vmem:[%s7698_s3 + $0x10] sm:$0xff]  }
 0x3be   :  { %v1457_v36 = vpop.permute.xlu0 %1456 }
 0x3bf   :  { %v1625_v32 = vsel %vm1500_vm15, %v8006_v11, %v1457_v36  ;;  %v1626_v37 = vsel %vm1500_vm15, %v1457_v36, %v1459_v17  ;;  %v7116_v11 = vld [vmem:[%s7698_s3 + $0xd0] sm:$0xff]  }
 0x3c0   :  { %2583 = vmatprep.subr.bf16.mxu0 %v1626_v37 }
 0x3c1   :  { %2584 = vmatpush1.bf16.msra.mxu0 %v1625_v32  ;;  %v1463_v7 = vpop.permute.xlu1 %1462  ;;  %v7121_v32 = vld [vmem:[%s7698_s3 + $0x58] sm:$0xff]  }
 0x3c2   :  { %v1461_v38 = vpop.permute.xlu0 %1460 }
 0x3c3   :  { %v1627_v9 = vsel %vm1500_vm15, %v1459_v17, %v1461_v38  ;;  %v1628_v18 = vsel %vm1500_vm15, %v1461_v38, %v1463_v7 }
 0x3c4   :  { %2586 = vmatmul.mubr.bf16.vlgmr.msra.gmra.mrb[12].mxu0 %v4672_v26  ;;  %2827 = vmatprep.subr.bf16.mxu1 %v1628_v18  ;;  %v4676_v18 = vld [vmem:[%s7696_s1 + $0x50] ss:$28 sps:$4 sm:$0xff]  }
 0x3c5   :  { %2828 = vmatpush1.bf16.msra.mxu1 %v1627_v9  ;;  %v1477_v60 = vpop.permute.xlu1 %1476  ;;  %2595 = vmatprep.mubr.bf16.mxu0 %v4673_v47 }
 0x3c6   :  { %v1475_v63 = vpop.permute.xlu0 %1474 }
 0x3c7   :  { %v1633_v52 = vsel %vm1500_vm15, %v8007_v54, %v1475_v63  ;;  %v1634_v25 = vsel %vm1500_vm15, %v1475_v63, %v1477_v60  ;;  %v7167_v63 = vld [vmem:[%s7698_s3 + $0x60] sm:$0xff]   ;;  %v7172_v54 = vld [vmem:[%s7698_s3 + $0xd8] sm:$0xff]  }
 0x3c8   :  { %2614 = vmatprep.subr.bf16.mxu0 %v1634_v25  ;;  %2830 = vmatmul.mubr.bf16.vlgmr.msra.gmra.mrb[12].mxu1 %v4672_v26 }
 0x3c9   :  { %2615 = vmatpush1.bf16.msra.mxu0 %v1633_v52  ;;  %v1481_v59 = vpop.permute.xlu1 %1480  ;;  %2839 = vmatprep.mubr.bf16.mxu1 %v4673_v47 }
 0x3ca   :  { %v1479_v56 = vpop.permute.xlu0 %1478 }
 0x3cb   :  { %v1635_v51 = vsel %vm1500_vm15, %v1477_v60, %v1479_v56  ;;  %v1636_v22 = vsel %vm1500_vm15, %v1479_v56, %v1481_v59 }
 0x3cc   :  { %2596 = vmatmul.mubr.bf16.gmra.mrb[16].mxu0 %v4674_v28  ;;  %2858 = vmatprep.subr.bf16.mxu1 %v1636_v22 }
 0x3cd   :  { %2859 = vmatpush1.bf16.msra.mxu1 %v1635_v51  ;;  %v1495_v31 = vpop.permute.xlu1 %1494  ;;  %2605 = vmatprep.mubr.bf16.mxu0 %v8008_v33 }
 0x3ce   :  { %v1493_v14 = vpop.permute.xlu0 %1492 }
 0x3cf   :  { %v1641_v8 = vsel %vm1500_vm15, %v8009_v42, %v1493_v14  ;;  %v1642_v44 = vsel %vm1500_vm15, %v1493_v14, %v1495_v31 }
 0x3d0   :  { %2616 = vmatprep.subr.bf16.mxu0 %v1642_v44  ;;  %2840 = vmatmul.mubr.bf16.gmra.mrb[16].mxu1 %v4674_v28 }
 0x3d1   :  { %2617 = vmatpush1.bf16.msra.mxu0 %v1641_v8  ;;  %v1499_v13 = vpop.permute.xlu1 %1498  ;;  %2849 = vmatprep.mubr.bf16.mxu1 %v8008_v33 }
 0x3d2   :  { %v1497_v27 = vpop.permute.xlu0 %1496  ;;  %4025 = vmatprep.subr.bf16.mxu0 %v7038_v5 }
 0x3d3   :  { %v1643_v48 = vsel %vm1500_vm15, %v1495_v31, %v1497_v27  ;;  %v1644_v41 = vsel %vm1500_vm15, %v1497_v27, %v1499_v13 }
 0x3d4   :  { %2606 = vmatmul.mubr.bf16.gmra.mrb[20].mxu0 %v8010_v39  ;;  %2860 = vmatprep.subr.bf16.mxu1 %v1644_v41 }
 0x3d5   :  { %2861 = vmatpush1.bf16.msra.mxu1 %v1643_v48  ;;  %2646 = vmatprep.mubr.bf16.mxu0 %v8011_v20 }
 0x3d6   :  { %4059 = vmatprep.subr.bf16.mxu1 %v7048_v1 }
 0x3d8   :  { %2850 = vmatmul.mubr.bf16.gmra.mrb[20].mxu1 %v8010_v39 }
 0x3d9   :  { %2890 = vmatprep.mubr.bf16.mxu1 %v8011_v20 }
 0x3dc   :  { %3984 = vmatmul.mubr.msk.bf16.vlgmr.msra.gmra.mrb[12].mxu0 %vm1933_vm14, %v4675_v45 }
 0x3dd   :  { %4026 = vmatpush3.bf16.msra.mxu0 %v7059_v16  ;;  %2656 = vmatprep.mubr.bf16.mxu0 %v8011_v20 }
 0x3de   :  { %4027 = vmatprep.subr.bf16.mxu0 %v7065_v61 }
 0x3e0   :  { %3987 = vmatmul.mubr.msk.bf16.vlgmr.msra.gmra.mrb[12].mxu1 %vm1933_vm14, %v4675_v45 }
 0x3e1   :  { %4028 = vmatpush3.bf16.msra.mxu0 %v7075_v23  ;;  %4060 = vmatpush3.bf16.msra.mxu1 %v7080_v43 }
 0x3e2   :  { %v7107_v17 = vpop.permute.xlu1 %1821  ;;  %4061 = vmatprep.subr.bf16.mxu1 %v7087_v46  ;;  %v7110_v36 = vpop.permute.xlu0 %1816  ;;  %4029 = vmatprep.subr.bf16.mxu0 %v7092_v19 }
 0x3e3   :  { %2900 = vmatprep.mubr.bf16.mxu1 %v8011_v20  ;;  %v4336_v37 = vadd.f32 %v6868_v3, %v7110_v36  ;;  %v4338_v7 = vadd.f32 %v6881_v29, %v7107_v17  ;;  %v4346_v38 = vadd.f32 %v6879_v62, %v7110_v36  ;;  %v4348_v9 = vadd.f32 %v6886_v6, %v7107_v17  ;;  %v7149_v6 = vld [vmem:[%s7698_s3 + $0x18] sm:$0xff]  }
 0x3e4   :  { %3985 = vmatmul.mubr.msk.bf16.gmra.mrb[16].mxu0 %vm1933_vm14, %v4676_v18  ;;  %v4335_v26 = vadd.f32 %v6860_v0, %v7110_v36  ;;  %v4337_v3 = vadd.f32 %v6877_v12, %v7107_v17  ;;  %v4345_v29 = vadd.f32 %v6871_v4, %v7110_v36  ;;  %v4347_v62 = vadd.f32 %v6883_v58, %v7107_v17  ;;  %v7154_v0 = vld [vmem:[%s7698_s3 + $0x90] sm:$0xff]  }
 0x3e5   :  { %4030 = vmatpush3.bf16.msra.mxu0 %v7100_v35  ;;  %4062 = vmatpush3.bf16.msra.mxu1 %v7105_v50  ;;  %v2920_v12 = vmul.f32 %v4336_v37, %v4336_v37  ;;  %v2928_v60 = vmul.f32 %v4338_v7, %v4338_v7  ;;  %v7156_v4 = vmul.f32 %v4346_v38, %v4346_v38  ;;  %v4677_v7 = vld [vmem:[%s7696_s1 + $0x88] ss:$0 sps:$4 sm:$0xff]  }
 0x3e6   :  { %v7158_v47 = vpop.permute.xlu1 %1826  ;;  %4063 = vmatprep.subr.bf16.mxu1 %v7116_v11  ;;  %v7161_v58 = vpop.permute.xlu0 %1831  ;;  %4031 = vmatprep.subr.bf16.mxu0 %v7121_v32  ;;  %v2930_v52 = vmul.f32 %v4348_v9, %v4348_v9  ;;  %v7174_v25 = vmul.f32 %v4335_v26, %v4335_v26  ;;  %v7176_v59 = vmul.f32 %v4337_v3, %v4337_v3  ;;  %v7244_v9 = vld [vmem:[%s7698_s3 + $0xa0] sm:$0xff]  }
 0x3e7   :  { %2666 = vmatprep.mubr.bf16.mxu0 %v8011_v20  ;;  %v2960_v56 = vpack.c.bf16 %v2928_v60, %v2920_v12  ;;  %v4340_v51 = vadd.f32 %v6897_v21, %v7158_v47  ;;  %v4342_v22 = vadd.f32 %v6913_v10, %v7161_v58  ;;  %v7183_v28 = vmul.f32 %v4345_v29, %v4345_v29  ;;  %v7198_v21 = vld [vmem:[%s7698_s3 + $0x20] sm:$0xff]   ;;  %v7203_v10 = vld [vmem:[%s7698_s3 + $0x98] sm:$0xff]   ;;  %v7256_v29 = vld [vmem:[%s7698_s3 + $0xe8] sm:$0xff]  }
 0x3e8   :  { %3988 = vmatmul.mubr.msk.bf16.gmra.mrb[16].mxu1 %vm1933_vm14, %v4676_v18  ;;  %v2962_v31 = vpack.c.bf16 %v2930_v52, %v7156_v4  ;;  %v2959_v33 = vpack.c.bf16 %v7176_v59, %v7174_v25  ;;  %v7189_v14 = vmul.f32 %v4347_v62, %v4347_v62  ;;  %v4350_v42 = vadd.f32 %v6915_v57, %v7158_v47  ;;  %v7212_v57 = vld [vmem:[%s7698_s3 + $0x68] sm:$0xff]   ;;  %v7264_v60 = vld [vmem:[%s7698_s3 + $0x30] sm:$0xff]   ;;  %v7275_v52 = vld [vmem:[%s7698_s3 + $0x78] sm:$0xff]  }
 0x3e9   :  { %4032 = vmatpush3.bf16.msra.mxu0 %v7149_v6  ;;  %4064 = vmatpush3.bf16.msra.mxu1 %v7154_v0  ;;  %v2936_v8 = vmul.f32 %v4340_v51, %v4340_v51  ;;  %v2944_v44 = vmul.f32 %v4342_v22, %v4342_v22  ;;  %v4352_v13 = vadd.f32 %v6920_v40, %v7161_v58  ;;  %v7222_v40 = vld [vmem:[%s7698_s3 + $0xe0] sm:$0xff]   ;;  %v7269_v4 = vld [vmem:[%s7698_s3 + $0xa8] sm:$0xff]   ;;  %v4621_v51 = vld [vmem:[%s7698_s3 + $0x38] sm:$0xff]  }
 0x3ea   :  { %4033 = vmatprep.subr.bf16.mxu0 %v7167_v63  ;;  %4065 = vmatprep.subr.bf16.mxu1 %v7172_v54  ;;  %v2961_v27 = vpack.c.bf16 %v7189_v14, %v7183_v28  ;;  %v2938_v48 = vmul.f32 %v4350_v42, %v4350_v42  ;;  %v4339_v41 = vadd.f32 %v6894_v34, %v7158_v47  ;;  %v4622_v22 = vld [vmem:[%s7698_s3 + $0xb0] sm:$0xff]   ;;  %v4623_v28 = vld [vmem:[%s7698_s3 + $0xf8] sm:$0xff]  }
 0x3eb   :  { %2910 = vmatprep.mubr.bf16.mxu1 %v8011_v20  ;;  %v2968_v39 = vpack.c.bf16 %v2944_v44, %v2936_v8  ;;  %v2946_v45 = vmul.f32 %v4352_v13, %v4352_v13  ;;  %v4341_v37 = vadd.f32 %v6902_v2, %v7161_v58  ;;  %v4349_v34 = vadd.f32 %v6911_v15, %v7158_v47  ;;  %v7239_v2 = vld [vmem:[%s7698_s3 + $0x28] sm:$0xff]   ;;  %v7250_v15 = vld [vmem:[%s7698_s3 + $0x70] sm:$0xff]   ;;  %v4624_v14 = vld [vmem:[%s7698_s3 + $0xb8] sm:$0xff]  }
 0x3ec   :  { %3986 = vmatmul.mubr.msk.bf16.gmra.mrb[20].mxu0 %vm1933_vm14, %v4677_v7  ;;  %v2935_v38 = vmul.f32 %v4339_v41, %v4339_v41  ;;  %v4351_v20 = vadd.f32 %v6918_v55, %v7161_v58 }
 0x3ed   :  { %4034 = vmatpush3.bf16.msra.mxu0 %v7198_v21  ;;  %4066 = vmatpush3.bf16.msra.mxu1 %v7203_v10  ;;  %v2970_v18 = vpack.c.bf16 %v2946_v45, %v2938_v48  ;;  %v2943_v26 = vmul.f32 %v4341_v37, %v4341_v37  ;;  %v2937_v55 = vmul.f32 %v4349_v34, %v4349_v34 }
 0x3ee   :  { %3291 = vmatprep.mubr.bf16.mxu0 %v2960_v56  ;;  %4035 = vmatprep.subr.bf16.mxu0 %v7212_v57  ;;  %v2945_v3 = vmul.f32 %v4351_v20, %v4351_v20  ;;  %v4620_v56 = vld [vmem:[%s7698_s3 + $0xf0] sm:$0xff]  }
 0x3ef   :  { %4067 = vmatprep.subr.bf16.mxu1 %v7222_v40  ;;  %v2967_v62 = vpack.c.bf16 %v2943_v26, %v2935_v38 }
 0x3f0   :  { %3989 = vmatmul.mubr.msk.bf16.gmra.mrb[20].mxu1 %vm1933_vm14, %v4677_v7  ;;  %v2969_v12 = vpack.c.bf16 %v2945_v3, %v2937_v55 }
 0x3f1   :  { %4036 = vmatpush3.bf16.msra.mxu0 %v7239_v2  ;;  %4068 = vmatpush3.bf16.msra.mxu1 %v7244_v9 }
 0x3f2   :  { %3347 = vmatprep.mubr.bf16.mxu1 %v2962_v31  ;;  %4037 = vmatprep.subr.bf16.mxu0 %v7250_v15  ;;  %v7293_v31 = vpop.permute.xlu1 %1836 }
 0x3f3   :  { %4069 = vmatprep.subr.bf16.mxu1 %v7256_v29  ;;  %v4344_v42 = vadd.f32 %v6930_v53, %v7293_v31  ;;  %v4354_v44 = vadd.f32 %v6947_v49, %v7293_v31  ;;  %v4343_v53 = vadd.f32 %v6928_v24, %v7293_v31 }
 0x3f5   :  { %4038 = vmatpush3.bf16.msra.mxu0 %v7264_v60  ;;  %4070 = vmatpush3.bf16.msra.mxu1 %v7269_v4  ;;  %v2952_v8 = vmul.f32 %v4344_v42, %v4344_v42  ;;  %v2951_v49 = vmul.f32 %v4343_v53, %v4343_v53 }
 0x3f6   :  { %4039 = vmatprep.subr.bf16.mxu0 %v7275_v52  ;;  %4071 = vmatprep.subr.bf16.mxu1 %v4620_v56 }
 0x3f9   :  { %4040 = vmatpush3.bf16.msra.mxu0 %v4621_v51  ;;  %4072 = vmatpush3.bf16.msra.mxu1 %v4622_v22 }
 0x3fa   :  { %4073 = vmatprep.subr.bf16.mxu1 %v4623_v28  ;;  %4093 = vmatprep.subr.bf16.mxu0 %v7038_v5  ;;  %v2976_v5 = vpack.c.bf16 %v2952_v8, %v2952_v8 }
 0x3fc   :  { %3292 = vmatmul.mubr.bf16.vlgmr.msra.gmra.mrb[24].mxu0 %v2959_v33 }
 0x3fd   :  { %3299 = vmatprep.mubr.bf16.mxu0 %v2968_v39  ;;  %4074 = vmatpush3.bf16.msra.mxu1 %v4624_v14 }
 0x3fe   :  { %4094 = vmatpush3.bf16.msra.mxu0 %v7059_v16  ;;  %4127 = vmatprep.subr.bf16.mxu1 %v7048_v1  ;;  %v2954_v16 = vmul.f32 %v4354_v44, %v4354_v44  ;;  %v4353_v1 = vadd.f32 %v6939_v30, %v7293_v31 }
 0x3ff   :  { %4095 = vmatprep.subr.bf16.mxu0 %v7065_v61  ;;  %v2975_v61 = vpack.c.bf16 %v2951_v49, %v2951_v49 }
 0x400   :  { %3348 = vmatmul.mubr.bf16.vlgmr.msra.gmra.mrb[24].mxu1 %v2961_v27  ;;  %v2978_v24 = vpack.c.bf16 %v2954_v16, %v2954_v16 }
 0x401   :  { %3355 = vmatprep.mubr.bf16.mxu1 %v2970_v18  ;;  %4128 = vmatpush3.bf16.msra.mxu1 %v7080_v43 }
 0x402   :  { %4096 = vmatpush3.bf16.msra.mxu0 %v7075_v23  ;;  %4129 = vmatprep.subr.bf16.mxu1 %v7087_v46  ;;  %v2953_v23 = vmul.f32 %v4353_v1, %v4353_v1 }
 0x403   :  { %4097 = vmatprep.subr.bf16.mxu0 %v7092_v19 }
 0x404   :  { %3300 = vmatmul.mubr.bf16.gmra.mrb[28].mxu0 %v2967_v62  ;;  %v2977_v30 = vpack.c.bf16 %v2953_v23, %v2953_v23 }
 0x405   :  { %3307 = vmatprep.mubr.bf16.mxu0 %v2976_v5  ;;  %4130 = vmatpush3.bf16.msra.mxu1 %v7105_v50 }
 0x406   :  { %4098 = vmatpush3.bf16.msra.mxu0 %v7100_v35  ;;  %4131 = vmatprep.subr.bf16.mxu1 %v7116_v11 }
 0x407   :  { %4099 = vmatprep.subr.bf16.mxu0 %v7121_v32 }
 0x408   :  { %3356 = vmatmul.mubr.bf16.gmra.mrb[28].mxu1 %v2969_v12 }
 0x409   :  { %3363 = vmatprep.mubr.bf16.mxu1 %v2978_v24  ;;  %4132 = vmatpush3.bf16.msra.mxu1 %v7154_v0 }
 0x40a   :  { %4100 = vmatpush3.bf16.msra.mxu0 %v7149_v6  ;;  %4133 = vmatprep.subr.bf16.mxu1 %v7172_v54 }
 0x40b   :  { %4101 = vmatprep.subr.bf16.mxu0 %v7167_v63 }
 0x40c   :  { %3308 = vmatmul.mubr.bf16.gmra.mrb[32].mxu0 %v2975_v61 }
 0x40d   :  { %4134 = vmatpush3.bf16.msra.mxu1 %v7203_v10 }
 0x40e   :  { %4102 = vmatpush3.bf16.msra.mxu0 %v7198_v21  ;;  %4135 = vmatprep.subr.bf16.mxu1 %v7222_v40 }
 0x40f   :  { %4103 = vmatprep.subr.bf16.mxu0 %v7212_v57 }
 0x410   :  { %3364 = vmatmul.mubr.bf16.gmra.mrb[32].mxu1 %v2977_v30 }
 0x411   :  { %4136 = vmatpush3.bf16.msra.mxu1 %v7244_v9 }
 0x412   :  { %4104 = vmatpush3.bf16.msra.mxu0 %v7239_v2  ;;  %4137 = vmatprep.subr.bf16.mxu1 %v7256_v29 }
 0x413   :  { %4105 = vmatprep.subr.bf16.mxu0 %v7250_v15 }
 0x415   :  { %4138 = vmatpush3.bf16.msra.mxu1 %v7269_v4 }
 0x416   :  { %4106 = vmatpush3.bf16.msra.mxu0 %v7264_v60  ;;  %4139 = vmatprep.subr.bf16.mxu1 %v4620_v56 }
 0x417   :  { %4107 = vmatprep.subr.bf16.mxu0 %v7275_v52 }
 0x419   :  { %4140 = vmatpush3.bf16.msra.mxu1 %v4622_v22 }
 0x41a   :  { %4108 = vmatpush3.bf16.msra.mxu0 %v4621_v51  ;;  %4141 = vmatprep.subr.bf16.mxu1 %v4623_v28 }
 0x41d   :  { %4142 = vmatpush3.bf16.msra.mxu1 %v4624_v14 }
 0x4af   :  { %v2648_v43 = vpop.f32.mrb[12].mxu0 }
 0x4b0   :  { %v4355_v46 = vadd.f32 %v2648_v43, %v7110_v36  ;;  %v2650_v19 = vpop.f32.mrb[13].mxu0 }
 0x4b1   :  { %v4356_v35 = vadd.f32 %v2650_v19, %v7110_v36  ;;  %v2652_v50 = vpop.f32.mrb[14].mxu0 }
 0x4b2   :  { %v4357_v11 = vadd.f32 %v2652_v50, %v7107_v17  ;;  %v2654_v32 = vpop.f32.mrb[15].mxu0  ;;  %v2923_v63 = vmul.f32 %v4355_v46, %v4355_v46 }
 0x4b3   :  { %v4358_v6 = vadd.f32 %v2654_v32, %v7107_v17  ;;  %v2892_v0 = vpop.f32.mrb[12].mxu1  ;;  %v2924_v33 = vmul.f32 %v4356_v35, %v4356_v35 }
 0x4b4   :  { %v2931_v54 = vmul.f32 %v4357_v11, %v4357_v11  ;;  %v4365_v25 = vadd.f32 %v2892_v0, %v7110_v36  ;;  %v2894_v59 = vpop.f32.mrb[13].mxu1 }
 0x4b5   :  { %v2932_v21 = vmul.f32 %v4358_v6, %v4358_v6  ;;  %v4366_v10 = vadd.f32 %v2894_v59, %v7110_v36  ;;  %v2896_v13 = vpop.f32.mrb[14].mxu1 }
 0x4b6   :  { %v2963_v57 = vpack.c.bf16 %v2931_v54, %v2923_v63  ;;  %v4367_v27 = vadd.f32 %v2896_v13, %v7107_v17  ;;  %v2898_v48 = vpop.f32.mrb[15].mxu1  ;;  %v2925_v45 = vmul.f32 %v4365_v25, %v4365_v25 }
 0x4b7   :  { %v2964_v41 = vpack.c.bf16 %v2932_v21, %v2924_v33  ;;  %v4368_v40 = vadd.f32 %v2898_v48, %v7107_v17  ;;  %v2658_v39 = vpop.f32.mrb[16].mxu0  ;;  %v2926_v34 = vmul.f32 %v4366_v10, %v4366_v10 }
 0x4b8   :  { %v2933_v37 = vmul.f32 %v4367_v27, %v4367_v27  ;;  %v4359_v7 = vadd.f32 %v2658_v39, %v7158_v47  ;;  %v2660_v38 = vpop.f32.mrb[17].mxu0 }
 0x4b9   :  { %v2934_v20 = vmul.f32 %v4368_v40, %v4368_v40  ;;  %v4360_v2 = vadd.f32 %v2660_v38, %v7158_v47  ;;  %v2662_v9 = vpop.f32.mrb[18].mxu0  ;;  %3438 = vmatprep.mubr.bf16.mxu0 %v2964_v41 }
 0x4ba   :  { %v2965_v36 = vpack.c.bf16 %v2933_v37, %v2925_v45  ;;  %v4361_v18 = vadd.f32 %v2662_v9, %v7161_v58  ;;  %v2664_v26 = vpop.f32.mrb[19].mxu0  ;;  %3439 = vmatmul.mubr.bf16.vlgmr.msra.gmra.mrb[36].mxu0 %v2963_v57  ;;  %v2939_v3 = vmul.f32 %v4359_v7, %v4359_v7 }
 0x4bb   :  { %v2966_v15 = vpack.c.bf16 %v2934_v20, %v2926_v34  ;;  %v4362_v17 = vadd.f32 %v2664_v26, %v7161_v58  ;;  %v2902_v55 = vpop.f32.mrb[16].mxu1  ;;  %v2940_v60 = vmul.f32 %v4360_v2, %v4360_v2 }
 0x4bc   :  { %v2947_v29 = vmul.f32 %v4361_v18, %v4361_v18  ;;  %v4369_v62 = vadd.f32 %v2902_v55, %v7158_v47  ;;  %v2904_v12 = vpop.f32.mrb[17].mxu1 }
 0x4bd   :  { %v2948_v4 = vmul.f32 %v4362_v17, %v4362_v17  ;;  %v4370_v52 = vadd.f32 %v2904_v12, %v7158_v47  ;;  %v2906_v56 = vpop.f32.mrb[18].mxu1  ;;  %3494 = vmatprep.mubr.bf16.mxu1 %v2966_v15 }
 0x4be   :  { %v2971_v51 = vpack.c.bf16 %v2947_v29, %v2939_v3  ;;  %v4371_v22 = vadd.f32 %v2906_v56, %v7161_v58  ;;  %v2908_v28 = vpop.f32.mrb[19].mxu1  ;;  %3495 = vmatmul.mubr.bf16.vlgmr.msra.gmra.mrb[36].mxu1 %v2965_v36  ;;  %v2941_v44 = vmul.f32 %v4369_v62, %v4369_v62 }
 0x4bf   :  { %v2972_v14 = vpack.c.bf16 %v2948_v4, %v2940_v60  ;;  %v4372_v42 = vadd.f32 %v2908_v28, %v7161_v58  ;;  %v2668_v8 = vpop.f32.mrb[20].mxu0  ;;  %v2942_v49 = vmul.f32 %v4370_v52, %v4370_v52 }
 0x4c0   :  { %v2949_v53 = vmul.f32 %v4371_v22, %v4371_v22  ;;  %v4363_v5 = vadd.f32 %v2668_v8, %v7293_v31  ;;  %v2670_v16 = vpop.f32.mrb[21].mxu0 }
 0x4c1   :  { %v2950_v1 = vmul.f32 %v4372_v42, %v4372_v42  ;;  %v4364_v47 = vadd.f32 %v2670_v16, %v7293_v31  ;;  %v2672_v24 = vpop.f32.mrb[22].mxu0  ;;  %3446 = vmatprep.mubr.bf16.mxu0 %v2972_v14  ;;  %v7359_v16 = vld [vmem:[%s7699_s4 + $0x8] sm:$0xff] }
 0x4c2   :  { %v2973_v61 = vpack.c.bf16 %v2949_v53, %v2941_v44  ;;  %v2673_v23 = vpop.f32.mrb[23].mxu0  ;;  %3447 = vmatmul.mubr.bf16.gmra.mrb[40].mxu0 %v2971_v51  ;;  %v2955_v19 = vmul.f32 %v4363_v5, %v4363_v5  ;;  %v7369_v24 = vld [vmem:[%s7699_s4 + $0x28] sm:$0xff] }
 0x4c3   :  { %v2974_v30 = vpack.c.bf16 %v2950_v1, %v2942_v49  ;;  %v2956_v43 = vmul.f32 %v4364_v47, %v4364_v47  ;;  %v2912_v46 = vpop.f32.mrb[20].mxu1  ;;  %v7364_v49 = vld [vmem:[%s7699_s4 + $0x18] sm:$0xff]  ;;  %v7379_v23 = vld [vmem:[%s7699_s4 + $0x10] sm:$0xff] }
 0x4c4   :  { %v4373_v58 = vadd.f32 %v2912_v46, %v7293_v31  ;;  %v2914_v35 = vpop.f32.mrb[21].mxu1  ;;  %v2979_v63 = vpack.c.bf16 %v2955_v19, %v2955_v19  ;;  %v7386_v46 = vld [vmem:[%s7699_s4 + $0x38] sm:$0xff]  ;;  %v7391_v19 = vld [vmem:[%s7699_s4 + $0x20] sm:$0xff] }
 0x4c5   :  { %v2980_v50 = vpack.c.bf16 %v2956_v43, %v2956_v43  ;;  %v4374_v11 = vadd.f32 %v2914_v35, %v7293_v31  ;;  %v2916_v32 = vpop.f32.mrb[22].mxu1  ;;  %3502 = vmatprep.mubr.bf16.mxu1 %v2974_v30 }
 0x4c6   :  { %v2917_v6 = vpop.f32.mrb[23].mxu1  ;;  %3503 = vmatmul.mubr.bf16.gmra.mrb[40].mxu1 %v2973_v61  ;;  %v2957_v54 = vmul.f32 %v4373_v58, %v4373_v58  ;;  %v7374_v61 = vld [vmem:[%s7699_s4] sm:$0xff]  ;;  %v7396_v58 = vld [vmem:[%s7699_s4 + $0x30] sm:$0xff] }
 0x4c7   :  { %v2958_v0 = vmul.f32 %v4374_v11, %v4374_v11  ;;  %3454 = vmatprep.mubr.bf16.mxu0 %v2980_v50 }
 0x4c8   :  { %v2981_v59 = vpack.c.bf16 %v2957_v54, %v2957_v54 }
 0x4c9   :  { %v2982_v25 = vpack.c.bf16 %v2958_v0, %v2958_v0 }
 0x4ca   :  { %3455 = vmatmul.mubr.bf16.gmra.mrb[44].mxu0 %v2979_v63 }
 0x4cb   :  { %3510 = vmatprep.mubr.bf16.mxu1 %v2982_v25 }
 0x4ce   :  { %3511 = vmatmul.mubr.bf16.gmra.mrb[44].mxu1 %v2981_v59 }
 0x4cf   :  { %v4041_v33 = vpop.f32.mrb[24].mxu0 }
 0x4d0   :  { %v4042_v21 = vpop.f32.mrb[25].mxu0 }
 0x4d1   :  { %v4043_v10 = vadd.f32 %v4042_v21, %v4041_v33  ;;  %v4044_v13 = vpop.f32.mrb[26].mxu0 }
 0x4d2   :  { %v4045_v57 = vpop.f32.mrb[27].mxu0 }
 0x4d3   :  { %v4046_v27 = vadd.f32 %v4045_v57, %v4044_v13  ;;  %v4075_v31 = vpop.f32.mrb[24].mxu1  ;;  %v7409_v57 = vld [vmem:[%s7699_s4 + $0x48] sm:$0xff] }
 0x4d4   :  { %v4076_v48 = vpop.f32.mrb[25].mxu1 }
 0x4d5   :  { %v4077_v41 = vadd.f32 %v4076_v48, %v4075_v31  ;;  %v4078_v40 = vpop.f32.mrb[26].mxu1  ;;  %v7419_v48 = vld [vmem:[%s7699_s4 + $0x68] sm:$0xff] }
 0x4d6   :  { %v4079_v39 = vpop.f32.mrb[27].mxu1 }
 0x4d7   :  { %v3350_v45 = vadd.f32 %v4077_v41, %v4043_v10  ;;  %v4080_v37 = vadd.f32 %v4079_v39, %v4078_v40  ;;  %v4047_v7 = vpop.f32.mrb[28].mxu0  ;;  %v7424_v41 = vld [vmem:[%s7699_s4 + $0x40] sm:$0xff]  ;;  %v7429_v40 = vld [vmem:[%s7699_s4 + $0x50] sm:$0xff] }
 0x4d8   :  { %v4048_v38 = vpop.f32.mrb[29].mxu0 }
 0x4d9   :  { %v3371_v34 = vmax.f32 %v3350_v45, 1e-30  ;;  %v3353_v20 = vadd.f32 %v4080_v37, %v4046_v27  ;;  %v4049_v2 = vadd.f32 %v4048_v38, %v4047_v7  ;;  %v4050_v9 = vpop.f32.mrb[30].mxu0  ;;  %v7414_v27 = vld [vmem:[%s7699_s4 + $0x58] sm:$0xff]  ;;  %v7439_v37 = vld [vmem:[%s7699_s4 + $0x60] sm:$0xff]  ;;  %v7444_v7 = vld [vmem:[%s7699_s4 + $0x70] sm:$0xff] }
 0x4da   :  { %v4051_v36 = vpop.f32.mrb[31].mxu0  ;;  %v7434_v45 = vld [vmem:[%s7699_s4 + $0x78] sm:$0xff] }
 0x4db   :  { %4625 = vlog2.f32 %v3371_v34  ;;  %v3372_v18 = vmax.f32 %v3353_v20, 1e-30  ;;  %v4052_v26 = vadd.f32 %v4051_v36, %v4050_v9  ;;  %v4081_v15 = vpop.f32.mrb[28].mxu1 }
 0x4dc   :  { %v4082_v17 = vpop.f32.mrb[29].mxu1 }
 0x4dd   :  { %4627 = vlog2.f32 %v3372_v18  ;;  %v4083_v55 = vadd.f32 %v4082_v17, %v4081_v15  ;;  %v4084_v3 = vpop.f32.mrb[30].mxu1 }
 0x4de   :  { %v4085_v29 = vpop.f32.mrb[31].mxu1 }
 0x4df   :  { %v3358_v62 = vadd.f32 %v4083_v55, %v4049_v2  ;;  %v4086_v12 = vadd.f32 %v4085_v29, %v4084_v3  ;;  %v4053_v60 = vpop.f32.mrb[32].mxu0 }
 0x4e0   :  { %v4054_v4 = vpop.f32.mrb[33].mxu0 }
 0x4e1   :  { %v3373_v52 = vmax.f32 %v3358_v62, 1e-30  ;;  %v3361_v56 = vadd.f32 %v4086_v12, %v4052_v26  ;;  %v4055_v51 = vadd.f32 %v4054_v4, %v4053_v60  ;;  %v4056_v22 = vpop.f32.mrb[34].mxu0  ;;  %v4719_v62 = vmov 0.0  }
 0x4e2   :  { %v4057_v28 = vpop.f32.mrb[35].mxu0  ;;  %3622 = vmatprep.mubr.f32.mxu0 %v4719_v62  ;;  %3693 = vmatprep.mubr.f32.mxu1 %v4719_v62  ;;  %v3063_v62 = vld [vmem:[%s7699_s4 + $0x80] sm:$0xff] }
 0x4e3   :  { %4629 = vlog2.f32 %v3373_v52  ;;  %v3374_v14 = vmax.f32 %v3361_v56, 1e-30  ;;  %v4087_v42 = vpop.f32.mrb[32].mxu1 }
 0x4e4   :  { %v4088_v8 = vpop.f32.mrb[33].mxu1 }
 0x4e5   :  { %v4626_v44 = vpop.eup %4625  ;;  %4631 = vlog2.f32 %v3374_v14  ;;  %v4089_v53 = vadd.f32 %v4088_v8, %v4087_v42  ;;  %v4090_v5 = vpop.f32.mrb[34].mxu1 }
 0x4e6   :  { %v3377_v1 = vmul.f32 0.6931472, %v4626_v44  ;;  %v4091_v47 = vpop.f32.mrb[35].mxu1 }
 0x4e7   :  { %v4628_v30 = vpop.eup %4627  ;;  %v7381_v43 = vadd.f32 %v4089_v53, %v4055_v51 }
 0x4e8   :  { %v3379_v35 = vmul.f32 0.6931472, %v4628_v30  ;;  %v3387_v50 = vmul.f32 %v3377_v1, %v7359_v16  ;;  %v3389_v11 = vmul.f32 %v3377_v1, %v7364_v49  ;;  %v3386_v32 = vmul.f32 %v3377_v1, %v7374_v61 }
 0x4e9   :  { %v3388_v6 = vmul.f32 %v3377_v1, %v7379_v23  ;;  %v3375_v56 = vmax.f32 %v7381_v43, 1e-30 }
 0x4ea   :  { %v3391_v0 = vmul.f32 %v3379_v35, %v7369_v24  ;;  %v3393_v63 = vmul.f32 %v3379_v35, %v7386_v46  ;;  %v3390_v54 = vmul.f32 %v3379_v35, %v7391_v19  ;;  %v3392_v25 = vmul.f32 %v3379_v35, %v7396_v58 }
 0x4eb   :  { %4633 = vlog2.f32 %v3375_v56 }
 0x4ec   :  { %v4231_v59 = vpack.c.bf16 %v3391_v0, %v3387_v50  ;;  %v4251_v33 = vpack.c.bf16 %v3393_v63, %v3389_v11  ;;  %v4233_v21 = vpack.c.bf16 %v3390_v54, %v3386_v32  ;;  %v4253_v10 = vpack.c.bf16 %v3392_v25, %v3388_v6 }
 0x4ed   :  { %v4630_v13 = vpop.eup %4629 }
 0x4ee   :  { %v3381_v31 = vmul.f32 0.6931472, %v4630_v13  ;;  %4232 = vmatprep.subr.bf16.mxu0 %v4231_v59  ;;  %4252 = vmatprep.subr.bf16.mxu1 %v4251_v33 }
 0x4ef   :  { %v4632_v39 = vpop.eup %4631  ;;  %4234 = vmatpush1.bf16.msra.mxu0 %v4233_v21  ;;  %4254 = vmatpush1.bf16.msra.mxu1 %v4253_v10 }
 0x4f0   :  { %v3383_v38 = vmul.f32 0.6931472, %v4632_v39  ;;  %v3395_v34 = vmul.f32 %v3381_v31, %v7409_v57  ;;  %v3397_v20 = vmul.f32 %v3381_v31, %v7414_v27  ;;  %v3394_v2 = vmul.f32 %v3381_v31, %v7424_v41 }
 0x4f1   :  { %v3396_v9 = vmul.f32 %v3381_v31, %v7429_v40 }
 0x4f2   :  { %v3399_v36 = vmul.f32 %v3383_v38, %v7419_v48  ;;  %v3401_v18 = vmul.f32 %v3383_v38, %v7434_v45  ;;  %v3398_v26 = vmul.f32 %v3383_v38, %v7439_v37  ;;  %v3400_v15 = vmul.f32 %v3383_v38, %v7444_v7 }
 0x4f4   :  { %v4235_v17 = vpack.c.bf16 %v3399_v36, %v3395_v34  ;;  %v4255_v55 = vpack.c.bf16 %v3401_v18, %v3397_v20  ;;  %v4237_v3 = vpack.c.bf16 %v3398_v26, %v3394_v2  ;;  %v4257_v29 = vpack.c.bf16 %v3400_v15, %v3396_v9  ;;  %v3064_v15 = vld [vmem:[%s7699_s4 + $0x88] sm:$0xff] }
 0x4f5   :  { %v4634_v13 = vpop.eup %4633 }
 0x4f6   :  { %4236 = vmatprep.subr.bf16.mxu0 %v4235_v17  ;;  %4256 = vmatprep.subr.bf16.mxu1 %v4255_v55  ;;  %v3385_v9 = vmul.f32 0.6931472, %v4634_v13  ;;  %v3066_v17 = vld [vmem:[%s7699_s4 + $0x98] sm:$0xff] }
 0x4f7   :  { %4238 = vmatpush1.bf16.msra.mxu0 %v4237_v3  ;;  %4258 = vmatpush1.bf16.msra.mxu1 %v4257_v29 }
 0x4f8   :  { %v3403_v56 = vmul.f32 %v3385_v9, %v3064_v15 }
 0x58d   :  { %v4109_v12 = vpop.f32.mrb[36].mxu0 }
 0x58e   :  { %v4110_v60 = vpop.f32.mrb[37].mxu0 }
 0x58f   :  { %v4111_v4 = vadd.f32 %v4110_v60, %v4109_v12  ;;  %v4112_v52 = vpop.f32.mrb[38].mxu0 }
 0x590   :  { %v4113_v51 = vpop.f32.mrb[39].mxu0 }
 0x591   :  { %v4114_v22 = vadd.f32 %v4113_v51, %v4112_v52  ;;  %v4143_v28 = vpop.f32.mrb[36].mxu1  ;;  %v3405_v51 = vmul.f32 %v3385_v9, %v3066_v17 }
 0x592   :  { %v4144_v14 = vpop.f32.mrb[37].mxu1 }
 0x593   :  { %v4145_v42 = vadd.f32 %v4144_v14, %v4143_v28  ;;  %v4146_v8 = vpop.f32.mrb[38].mxu1 }
 0x594   :  { %v4147_v44 = vpop.f32.mrb[39].mxu1 }
 0x595   :  { %v3497_v53 = vadd.f32 %v4145_v42, %v4111_v4  ;;  %v4148_v5 = vadd.f32 %v4147_v44, %v4146_v8  ;;  %v4115_v1 = vpop.f32.mrb[40].mxu0  ;;  %v3065_v4 = vld [vmem:[%s7699_s4 + $0x90] sm:$0xff]  ;;  %v3402_v42 = vmul.f32 %v3385_v9, %v3063_v62 }
 0x596   :  { %v4116_v47 = vpop.f32.mrb[41].mxu0 }
 0x597   :  { %v3518_v30 = vmax.f32 %v3497_v53, 1e-30  ;;  %v3500_v35 = vadd.f32 %v4148_v5, %v4114_v22  ;;  %v4117_v50 = vadd.f32 %v4116_v47, %v4115_v1  ;;  %v4118_v11 = vpop.f32.mrb[42].mxu0  ;;  %v3404_v53 = vmul.f32 %v3385_v9, %v3065_v4 }
 0x598   :  { %v4119_v32 = vpop.f32.mrb[43].mxu0 }
 0x599   :  { %4635 = vlog2.f32 %v3518_v30  ;;  %v3519_v6 = vmax.f32 %v3500_v35, 1e-30  ;;  %v4120_v43 = vadd.f32 %v4119_v32, %v4118_v11  ;;  %v4149_v0 = vpop.f32.mrb[40].mxu1 }
 0x59a   :  { %v4150_v63 = vpop.f32.mrb[41].mxu1 }
 0x59b   :  { %v4151_v54 = vadd.f32 %v4150_v63, %v4149_v0  ;;  %v4152_v25 = vpop.f32.mrb[42].mxu1  ;;  %4637 = vlog2.f32 %v3519_v6 }
 0x59c   :  { %v4153_v59 = vpop.f32.mrb[43].mxu1 }
 0x59d   :  { %v3505_v33 = vadd.f32 %v4151_v54, %v4117_v50  ;;  %v4154_v21 = vadd.f32 %v4153_v59, %v4152_v25  ;;  %v4121_v10 = vpop.f32.mrb[44].mxu0 }
 0x59e   :  { %v4122_v31 = vpop.f32.mrb[45].mxu0 }
 0x59f   :  { %v3520_v39 = vmax.f32 %v3505_v33, 1e-30  ;;  %v3508_v38 = vadd.f32 %v4154_v21, %v4120_v43  ;;  %v4123_v34 = vadd.f32 %v4122_v31, %v4121_v10  ;;  %v4124_v20 = vpop.f32.mrb[46].mxu0 }
 0x5a0   :  { %v4125_v2 = vpop.f32.mrb[47].mxu0 }
 0x5a1   :  { %4639 = vlog2.f32 %v3520_v39  ;;  %v3521_v36 = vmax.f32 %v3508_v38, 1e-30  ;;  %v4155_v18 = vpop.f32.mrb[44].mxu1 }
 0x5a2   :  { %v4156_v26 = vpop.f32.mrb[45].mxu1 }
 0x5a3   :  { %v4636_v55 = vpop.eup %4635  ;;  %v4157_v3 = vadd.f32 %v4156_v26, %v4155_v18  ;;  %v4158_v29 = vpop.f32.mrb[46].mxu1  ;;  %4641 = vlog2.f32 %v3521_v36  ;;  %v3700_v36 = vld [vmem:[%s7701_s6] sm:$0xff] }
 0x5a4   :  { %v3524_v12 = vmul.f32 0.6931472, %v4636_v55  ;;  %v4159_v60 = vpop.f32.mrb[47].mxu1  ;;  %v3719_v55 = vld [vmem:[%s7701_s6 + $0x98] sm:$0xff] }
 0x5a5   :  { %v3513_v52 = vadd.f32 %v4157_v3, %v4123_v34  ;;  %v4638_v22 = vpop.eup %4637  ;;  %v3750_v3 = vld [vmem:[%s7701_s6 + $0x190] sm:$0xff]  ;;  %v3751_v29 = vld [vmem:[%s7701_s6 + $0x198] sm:$0xff] }
 0x5a6   :  { %v3534_v28 = vmul.f32 %v3524_v12, %v7359_v16  ;;  %v3536_v14 = vmul.f32 %v3524_v12, %v7364_v49  ;;  %v3533_v8 = vmul.f32 %v3524_v12, %v7374_v61  ;;  %v3535_v5 = vmul.f32 %v3524_v12, %v7379_v23 }
 0x5a7   :  { %v3522_v44 = vmax.f32 %v3513_v52, 1e-30  ;;  %v3526_v35 = vmul.f32 0.6931472, %v4638_v22  ;;  %v3703_v52 = vld [vmem:[%s7701_s6 + $0x18] sm:$0xff]  ;;  %v3734_v22 = vld [vmem:[%s7701_s6 + $0x110] sm:$0xff] }
 0x5a8   :  { %v4239_v1 = vpack.c.bf16 %v3534_v28, %v3403_v56  ;;  %v4259_v47 = vpack.c.bf16 %v3536_v14, %v3405_v51  ;;  %v4241_v30 = vpack.c.bf16 %v3533_v8, %v3402_v42  ;;  %v4261_v50 = vpack.c.bf16 %v3535_v5, %v3404_v53  ;;  %v3735_v28 = vld [vmem:[%s7701_s6 + $0x118] sm:$0xff]  ;;  %v3720_v14 = vld [vmem:[%s7701_s6 + $0xa0] sm:$0xff]  ;;  %v3721_v42 = vld [vmem:[%s7701_s6 + $0xa8] sm:$0xff] }
 0x5a9   :  { %4643 = vlog2.f32 %v3522_v44  ;;  %v3538_v49 = vmul.f32 %v3526_v35, %v7369_v24  ;;  %v3540_v61 = vmul.f32 %v3526_v35, %v7386_v46  ;;  %v3537_v43 = vmul.f32 %v3526_v35, %v7391_v19  ;;  %v3716_v19 = vld [vmem:[%s7701_s6 + $0x80] sm:$0xff]  ;;  %v3753_v44 = vld [vmem:[%s7701_s6 + $0x1a8] sm:$0xff] }
 0x5aa   :  { %4240 = vmatprep.subr.bf16.mxu0 %v4239_v1  ;;  %4260 = vmatprep.subr.bf16.mxu1 %v4259_v47  ;;  %v3539_v63 = vmul.f32 %v3526_v35, %v7396_v58  ;;  %v3717_v58 = vld [vmem:[%s7701_s6 + $0x88] sm:$0xff]  ;;  %v4307_v51 = vpack.c.bf16 %v3751_v29, %v3750_v3  ;;  %v3752_v8 = vld [vmem:[%s7701_s6 + $0x1a0] sm:$0xff]  ;;  %v4309_v5 = vpack.c.bf16 %v3735_v28, %v3734_v22  ;;  %v3762_v22 = vld [vmem:[%s7701_s6 + $0x1f0] sm:$0xff] }
 0x5ab   :  { %v4640_v11 = vpop.eup %4639  ;;  %4242 = vmatpush1.bf16.msra.mxu0 %v4241_v30  ;;  %4262 = vmatpush1.bf16.msra.mxu1 %v4261_v50  ;;  %v4271_v2 = vpack.c.bf16 %v3717_v58, %v3716_v19  ;;  %v3704_v1 = vld [vmem:[%s7701_s6 + $0x20] sm:$0xff]  ;;  %v3705_v47 = vld [vmem:[%s7701_s6 + $0x28] sm:$0xff]  ;;  %v4279_v30 = vpack.c.bf16 %v3721_v42, %v3720_v14  ;;  %v4311_v35 = vpack.c.bf16 %v3753_v44, %v3752_v8  ;;  %v3763_v28 = vld [vmem:[%s7701_s6 + $0x1f8] sm:$0xff] }
 0x5ac   :  { %v3528_v16 = vmul.f32 0.6931472, %v4640_v11  ;;  %v3736_v50 = vld [vmem:[%s7701_s6 + $0x120] sm:$0xff]  ;;  %v3737_v11 = vld [vmem:[%s7701_s6 + $0x128] sm:$0xff]  ;;  %v4331_v44 = vpack.c.bf16 %v3763_v28, %v3762_v22 }
 0x5ad   :  { %v4642_v32 = vpop.eup %4641  ;;  %v3708_v58 = vld [vmem:[%s7701_s6 + $0x40] sm:$0xff] }
 0x5ae   :  { %v3542_v6 = vmul.f32 %v3528_v16, %v7409_v57  ;;  %v3544_v23 = vmul.f32 %v3528_v16, %v7414_v27  ;;  %v3541_v0 = vmul.f32 %v3528_v16, %v7424_v41  ;;  %v3543_v54 = vmul.f32 %v3528_v16, %v7429_v40  ;;  %v3748_v27 = vld [vmem:[%s7701_s6 + $0x180] sm:$0xff]  ;;  %v3749_v41 = vld [vmem:[%s7701_s6 + $0x188] sm:$0xff]  ;;  %v3722_v16 = vld [vmem:[%s7701_s6 + $0xb0] sm:$0xff] }
 0x5af   :  { %v3530_v21 = vmul.f32 0.6931472, %v4642_v32  ;;  %v4303_v9 = vpack.c.bf16 %v3749_v41, %v3748_v27  ;;  %v3755_v32 = vld [vmem:[%s7701_s6 + $0x1b8] sm:$0xff]  ;;  %v3709_v27 = vld [vmem:[%s7701_s6 + $0x48] sm:$0xff]  ;;  %v3712_v29 = vld [vmem:[%s7701_s6 + $0x60] sm:$0xff] }
 0x5b0   :  { %v4243_v25 = vpack.c.bf16 %v3542_v6, %v3538_v49  ;;  %v4263_v59 = vpack.c.bf16 %v3544_v23, %v3540_v61  ;;  %v4245_v33 = vpack.c.bf16 %v3541_v0, %v3537_v43  ;;  %v4265_v24 = vpack.c.bf16 %v3543_v54, %v3539_v63  ;;  %v3723_v49 = vld [vmem:[%s7701_s6 + $0xb8] sm:$0xff]  ;;  %v3754_v61 = vld [vmem:[%s7701_s6 + $0x1b0] sm:$0xff] }
 0x5b1   :  { %v3546_v40 = vmul.f32 %v3530_v21, %v7419_v48  ;;  %v3548_v10 = vmul.f32 %v3530_v21, %v7434_v45  ;;  %v3545_v13 = vmul.f32 %v3530_v21, %v7439_v37  ;;  %v3547_v31 = vmul.f32 %v3530_v21, %v7444_v7  ;;  %v3701_v48 = vld [vmem:[%s7701_s6 + $0x8] sm:$0xff]  ;;  %v3732_v7 = vld [vmem:[%s7701_s6 + $0x100] sm:$0xff]  ;;  %v3706_v43 = vld [vmem:[%s7701_s6 + $0x30] sm:$0xff] }
 0x5b2   :  { %4244 = vmatprep.subr.bf16.mxu0 %v4243_v25  ;;  %4264 = vmatprep.subr.bf16.mxu1 %v4263_v59  ;;  %v4273_v12 = vpack.c.bf16 %v3701_v48, %v3700_v36  ;;  %v4281_v6 = vpack.c.bf16 %v3705_v47, %v3704_v1  ;;  %v4313_v23 = vpack.c.bf16 %v3737_v11, %v3736_v50  ;;  %v3707_v0 = vld [vmem:[%s7701_s6 + $0x38] sm:$0xff]  ;;  %v3738_v25 = vld [vmem:[%s7701_s6 + $0x130] sm:$0xff]  ;;  %v3725_v21 = vld [vmem:[%s7701_s6 + $0xc8] sm:$0xff] }
 0x5b3   :  { %v4644_v46 = vpop.eup %4643  ;;  %4246 = vmatpush1.bf16.msra.mxu0 %v4245_v33  ;;  %4266 = vmatpush1.bf16.msra.mxu1 %v4265_v24  ;;  %v4283_v63 = vpack.c.bf16 %v3723_v49, %v3722_v16  ;;  %v4315_v54 = vpack.c.bf16 %v3755_v32, %v3754_v61  ;;  %v3739_v59 = vld [vmem:[%s7701_s6 + $0x138] sm:$0xff]  ;;  %v3724_v33 = vld [vmem:[%s7701_s6 + $0xc0] sm:$0xff]  ;;  %v4285_v19 = vpack.c.bf16 %v3707_v0, %v3706_v43  ;;  %v3746_v1 = vld [vmem:[%s7701_s6 + $0x170] sm:$0xff] }
 0x5b4   :  { %v3532_v57 = vmul.f32 0.6931472, %v4644_v46  ;;  %v3756_v24 = vld [vmem:[%s7701_s6 + $0x1c0] sm:$0xff]  ;;  %v3757_v46 = vld [vmem:[%s7701_s6 + $0x1c8] sm:$0xff]  ;;  %v4287_v41 = vpack.c.bf16 %v3725_v21, %v3724_v33  ;;  %v3711_v36 = vld [vmem:[%s7701_s6 + $0x58] sm:$0xff] }
 0x5b6   :  { %v3550_v39 = vmul.f32 %v3532_v57, %v3064_v15  ;;  %v3552_v38 = vmul.f32 %v3532_v57, %v3066_v17  ;;  %v3549_v34 = vmul.f32 %v3532_v57, %v3063_v62  ;;  %v3551_v20 = vmul.f32 %v3532_v57, %v3065_v4  ;;  %v3733_v15 = vld [vmem:[%s7701_s6 + $0x108] sm:$0xff]  ;;  %v3718_v17 = vld [vmem:[%s7701_s6 + $0x90] sm:$0xff]  ;;  %v3553_v62 = vld [vmem:[%s7700_s5] sm:$0xff] }
 0x5b7   :  { %v4305_v60 = vpack.c.bf16 %v3733_v15, %v3732_v7  ;;  %v3702_v4 = vld [vmem:[%s7701_s6 + $0x10] sm:$0xff]  ;;  %v4275_v56 = vpack.c.bf16 %v3719_v55, %v3718_v17  ;;  %v4317_v57 = vpack.c.bf16 %v3739_v59, %v3738_v25  ;;  %v3729_v7 = vld [vmem:[%s7701_s6 + $0xe8] sm:$0xff]  ;;  %v3760_v15 = vld [vmem:[%s7701_s6 + $0x1e0] sm:$0xff] }
 0x5b8   :  { %v4247_v18 = vpack.c.bf16 %v3550_v39, %v3546_v40  ;;  %v4267_v45 = vpack.c.bf16 %v3552_v38, %v3548_v10  ;;  %v4249_v26 = vpack.c.bf16 %v3549_v34, %v3545_v13  ;;  %v4269_v37 = vpack.c.bf16 %v3551_v20, %v3547_v31  ;;  %v3740_v10 = vld [vmem:[%s7701_s6 + $0x140] sm:$0xff]  ;;  %v3741_v13 = vld [vmem:[%s7701_s6 + $0x148] sm:$0xff]  ;;  %v3726_v31 = vld [vmem:[%s7701_s6 + $0xd0] sm:$0xff] }
 0x5b9   :  { %v4277_v53 = vpack.c.bf16 %v3703_v52, %v3702_v4  ;;  %v4319_v40 = vpack.c.bf16 %v3757_v46, %v3756_v24  ;;  %v3727_v39 = vld [vmem:[%s7701_s6 + $0xd8] sm:$0xff]  ;;  %v3758_v38 = vld [vmem:[%s7701_s6 + $0x1d0] sm:$0xff]  ;;  %v4289_v20 = vpack.c.bf16 %v3709_v27, %v3708_v58  ;;  %v3761_v17 = vld [vmem:[%s7701_s6 + $0x1e8] sm:$0xff] }
 0x5ba   :  { %4248 = vmatprep.subr.bf16.mxu0 %v4247_v18  ;;  %4268 = vmatprep.subr.bf16.mxu1 %v4267_v45  ;;  %v3759_v34 = vld [vmem:[%s7701_s6 + $0x1d8] sm:$0xff]  ;;  %v4291_v48 = vpack.c.bf16 %v3727_v39, %v3726_v31  ;;  %v3742_v45 = vld [vmem:[%s7701_s6 + $0x150] sm:$0xff]  ;;  %v3744_v4 = vld [vmem:[%s7701_s6 + $0x160] sm:$0xff] }
 0x5bb   :  { %4250 = vmatpush1.bf16.msra.mxu0 %v4249_v26  ;;  %4270 = vmatpush1.bf16.msra.mxu1 %v4269_v37  ;;  %v4323_v18 = vpack.c.bf16 %v3759_v34, %v3758_v38  ;;  %v3743_v26 = vld [vmem:[%s7701_s6 + $0x158] sm:$0xff]  ;;  %v3728_v37 = vld [vmem:[%s7701_s6 + $0xe0] sm:$0xff]  ;;  %v3745_v52 = vld [vmem:[%s7701_s6 + $0x168] sm:$0xff] }
 0x5bc   :  { %4272 = vmatprep.subr.bf16.mxu0 %v4271_v2  ;;  %4304 = vmatprep.subr.bf16.mxu1 %v4303_v9  ;;  %v4321_v2 = vpack.c.bf16 %v3741_v13, %v3740_v10  ;;  %v3710_v9 = vld [vmem:[%s7701_s6 + $0x50] sm:$0xff]  ;;  %v4325_v3 = vpack.c.bf16 %v3743_v26, %v3742_v45  ;;  %v4329_v42 = vpack.c.bf16 %v3745_v52, %v3744_v4 }
 0x5bd   :  { %v4293_v55 = vpack.c.bf16 %v3711_v36, %v3710_v9 }
 0x5be   :  { %4022 = vmatmul.mubr.msk.f32.vlgmr.msra.gmra.mrb[48].mxu0 %vm3554_vm8, %v3553_v62  ;;  %4023 = vmatmul.mubr.msk.f32.vlgmr.msra.gmra.mrb[48].mxu1 %vm3554_vm8, %v3553_v62  ;;  %v3713_v62 = vld [vmem:[%s7701_s6 + $0x68] sm:$0xff] }
 0x5bf   :  { %4274 = vmatpush3.bf16.msra.mxu0 %v4273_v12  ;;  %4306 = vmatpush3.bf16.msra.mxu1 %v4305_v60  ;;  %v4295_v12 = vpack.c.bf16 %v3729_v7, %v3728_v37  ;;  %v4327_v60 = vpack.c.bf16 %v3761_v17, %v3760_v15  ;;  %v4297_v14 = vpack.c.bf16 %v3713_v62, %v3712_v29 }
 0x5c0   :  { %4276 = vmatprep.subr.bf16.mxu0 %v4275_v56  ;;  %4308 = vmatprep.subr.bf16.mxu1 %v4307_v51  ;;  %v3730_v56 = vld [vmem:[%s7701_s6 + $0xf0] sm:$0xff]  ;;  %v3731_v51 = vld [vmem:[%s7701_s6 + $0xf8] sm:$0xff] }
 0x5c1   :  { %v4299_v8 = vpack.c.bf16 %v3731_v51, %v3730_v56 }
 0x5c3   :  { %4278 = vmatpush3.bf16.msra.mxu0 %v4277_v53  ;;  %4310 = vmatpush3.bf16.msra.mxu1 %v4309_v5  ;;  %v3714_v53 = vld [vmem:[%s7701_s6 + $0x70] sm:$0xff]  ;;  %v3715_v5 = vld [vmem:[%s7701_s6 + $0x78] sm:$0xff] }
 0x5c4   :  { %4280 = vmatprep.subr.bf16.mxu0 %v4279_v30  ;;  %4312 = vmatprep.subr.bf16.mxu1 %v4311_v35  ;;  %v4301_v47 = vpack.c.bf16 %v3715_v5, %v3714_v53  ;;  %v3747_v30 = vld [vmem:[%s7701_s6 + $0x178] sm:$0xff]  ;;  %s4720_s6 = smov [#allocation2]  }
 0x5c5   :  { %v4333_v35 = vpack.c.bf16 %v3747_v30, %v3746_v1  ;;  %s3931_s16 = sshll.u32 %s4720_s6, 4  ;;  %s3932_s16 = int_to_ptr.vmem [resolvable:$true] %s3931_s16 }
 0x5c6   :  { %p4683_p1 = scmp.lt.s32.totalorder %s3932_s16, %s3932_s16 }
 0x5c7   :  { %4282 = vmatpush3.bf16.msra.mxu0 %v4281_v6  ;;  %4314 = vmatpush3.bf16.msra.mxu1 %v4313_v23 }
 0x5c8   :  { %4284 = vmatprep.subr.bf16.mxu0 %v4283_v63  ;;  %4316 = vmatprep.subr.bf16.mxu1 %v4315_v54  ;;  %v4024_v63 = vld [vmem:[%s7702_s7] ss:$0 sm:$0xff]  ;;  %s4678_s7 = scalar_lea.vmem %s3932_s16, 32 }
 0x5c9   :  { %p4679_p0 = scmp.ne.s32.totalorder %s3932_s16, %s4678_s7  ;;  %p4684_p2 = scmp.lt.s32.totalorder %s4678_s7, %s4678_s7 }
 0x5cb   :  { %4286 = vmatpush3.bf16.msra.mxu0 %v4285_v19  ;;  %4318 = vmatpush3.bf16.msra.mxu1 %v4317_v57  ;;  %p4685_p3 = por %p4684_p2, %p4683_p1 }
 0x5cc   :  { %4288 = vmatprep.subr.bf16.mxu0 %v4287_v41  ;;  %4320 = vmatprep.subr.bf16.mxu1 %v4319_v40 }
 0x5cd   :  { %p4686_p4 = pnand %p4685_p3, %p4679_p0 }
 0x5cf   :  { %4290 = vmatpush3.bf16.msra.mxu0 %v4289_v20  ;;  %4322 = vmatpush3.bf16.msra.mxu1 %v4321_v2 }
 0x5d0   :  { %4292 = vmatprep.subr.bf16.mxu0 %v4291_v48  ;;  %4324 = vmatprep.subr.bf16.mxu1 %v4323_v18 }
 0x5d3   :  { %4294 = vmatpush3.bf16.msra.mxu0 %v4293_v55  ;;  %4326 = vmatpush3.bf16.msra.mxu1 %v4325_v3 }
 0x5d4   :  { %4296 = vmatprep.subr.bf16.mxu0 %v4295_v12  ;;  %4328 = vmatprep.subr.bf16.mxu1 %v4327_v60 }
 0x5d7   :  { %4298 = vmatpush3.bf16.msra.mxu0 %v4297_v14  ;;  %4330 = vmatpush3.bf16.msra.mxu1 %v4329_v42 }
 0x5d8   :  { %4300 = vmatprep.subr.bf16.mxu0 %v4299_v8  ;;  %4332 = vmatprep.subr.bf16.mxu1 %v4331_v44 }
 0x5db   :  { %4302 = vmatpush3.bf16.msra.mxu0 %v4301_v47  ;;  %4334 = vmatpush3.bf16.msra.mxu1 %v4333_v35 }
 0x691   :  { %v3624_v50 = vpop.f32.mrb[48].mxu0  ;;  %v3695_v11 = vpop.f32.mrb[48].mxu1 }
 0x692   :  { %v3626_v16 = vpop.f32.mrb[49].mxu0  ;;  %v3697_v49 = vpop.f32.mrb[49].mxu1 }
 0x693   :  { %3828 = vmatprep.mubr.f32.mxu0 %v3626_v16  ;;  %3898 = vmatprep.mubr.f32.mxu1 %v3697_v49 }
 0x694   :  { %3829 = vmatmul.mubr.f32.vlgmr.msra.gmra.mrb[50].mxu0 %v3624_v50  ;;  %3899 = vmatmul.mubr.f32.vlgmr.msra.gmra.mrb[50].mxu1 %v3695_v11 }
 0x767   :  { %v4193_v61 = vpop.f32.mrb[50].mxu0  ;;  %v4228_v32 = vpop.f32.mrb[50].mxu1 }
 0x768   :  { %v4194_v6 = vpop.f32.mrb[51].mxu0  ;;  %v4229_v23 = vpop.f32.mrb[51].mxu1 }
 0x769   :  { %v4195_v43 = vadd.f32 %v4194_v6, %v4193_v61  ;;  %v4230_v0 = vadd.f32 %v4229_v23, %v4228_v32 }
 0x76b   :  { %v3901_v54 = vadd.f32 %v4230_v0, %v4195_v43 }
 0x76d   :  { %v3911_v25 = vadd.f32 %v4024_v63, %v3901_v54 }
 0x76f   :  { %v3913_v59 = vsel %vm3912_vm9, %v3911_v25, -inf }
 0x770   :  { %3914 = vmax.xlane.f32.xlu0 %v3913_v59 }
 0x7fd   :  { %v3915_v33 = vpop.xlane.xlu0 %3914 }
 0x7fe   :  { %v3916_v21 = vsub.f32 %v3911_v25, %v3915_v33 }
 0x800   :  { %v3917_v24 = vmul.f32 1.442695, %v3916_v21 }
 0x802   :  { %4645 = vpow2.f32 %v3917_v24 }
 0x80c   :  { %v4646_v46 = vpop.eup %4645 }
 0x80d   :  { %v3919_v19 = vsel %vm3912_vm9, %v4646_v46, 0.0 }
 0x80e   :  { %3920 = vadd.xlane.f32.xlu1 %v3919_v19 }
 0x89b   :  { %v3921_v57 = vpop.xlane.xlu1 %3920 }
 0x89c   :  { %4647 = vrcp.f32 %v3921_v57 }
 0x8a6   :  { %v4648_v58 = vpop.eup %4647 }
 0x8a7   :  { %v3923_v27 = vmul.f32 %v4648_v58, %v4646_v46 }
 0x8a9   :  { %3924 = vst [vmem:[#allocation2] sm:$0x3] %v3923_v27 }
 0x8aa   :  { %4689 = shalt.err (!%p4686_p4)
}
 0x8ab   :  { %s4690_s9 = scalar_lea.hbm %s7703_s8, 32 }
 0x8ac   :  { %p4691_p5 = scmp.ne.s32.totalorder %s7703_s8, %s4690_s9  ;;  %p4694_p6 = scmp.lt.u32.totalorder %s4690_s9, %s7703_s8 }
 0x8ae   :  { %p4696_p7 = pnand %p4694_p6, %p4691_p5 }
 0x8b0   :  { %4699 = shalt.err (!%p4696_p7)
}
 0x8b1   :  { %3934 = dma.vmem_to_hbm [thread:$0]  %s3932_s16, 32, %s7703_s8, [#allocation3]  }
 0x8b2   :  { %4700 = dma.done.wait [#allocation3], 32  }
 0x8b3   :  { %4701 = vsyncadd [#allocation3], 4294967264 }
 0x8b4   :  { %3938 = vsyncpa [#allocation3], 1 }

</bundles_post_ra>
